<compile_context>
chip_gen: v6e
topology: v6e:2x2x1
jax: 0.10.0
libtpu: 0.0.40
codegen_flags: <defaults>
</compile_context>

<pallas_src>
import functools

import jax
import jax.numpy as jnp
from jax.experimental import pallas as pl
from jax.experimental.pallas import tpu as pltpu


# ----------------------------------------------------------------------------
# Fused forward kernel
# ----------------------------------------------------------------------------

def _layernorm(x, gamma, beta, eps):
    """Row-wise LayerNorm over the last axis in f32 (matches nn.LayerNorm)."""
    mean = jnp.mean(x, axis=-1, keepdims=True)
    var = jnp.mean(jnp.square(x - mean), axis=-1, keepdims=True)
    return (x - mean) * jax.lax.rsqrt(var + eps) * gamma + beta


def _fused_forward_kernel(
        x_ref, pe_ref, enc_w_ref, enc_b_ref,
        wqkv_ref, bqkv_ref, wo_ref, bo_ref,
        ln1_g_ref, ln1_b_ref,
        ff1_w_ref, ff1_b_ref, ff2_w_ref, ff2_b_ref,
        ln2_g_ref, ln2_b_ref,
        dec_w_ref, dec_b_ref,
        o_ref, *, num_heads, num_layers, eps):
    """Whole TemporalTransformer forward for one batch element (one grid step).

    All intermediates live in VMEM/vregs; weights (constant index_maps) stay
    resident in VMEM across grid steps.  f32 accumulation everywhere.
    """
    # Positional encoding over the node axis (applied BEFORE the encoder,
    # exactly like the reference forward).
    x = x_ref[0].astype(jnp.float32) + pe_ref[...].astype(jnp.float32)

    # Encoder linear: (N, d_model) @ (d_model, H) + b
    h = jnp.dot(x, enc_w_ref[...], preferred_element_type=jnp.float32)
    h = h + enc_b_ref[...]

    n, hidden = h.shape
    dh = hidden // num_heads
    scale = 1.0 / float(dh) ** 0.5

    for li in range(num_layers):                       # static unroll
        # --- NodeWiseSelfAttention: fused QKV projection (H -> 3H) ---
        qkv = jnp.dot(h, wqkv_ref[li], preferred_element_type=jnp.float32)
        qkv = qkv + bqkv_ref[li]                       # (N, 3H)

        # One transpose of the stacked QKV (instead of three); the q/k/v
        # splits below are leading-axis static slices (free vreg selects).
        qkv = jnp.transpose(qkv.reshape(n, 3 * num_heads, dh), (1, 0, 2))
        q = qkv[0 * num_heads:1 * num_heads] * scale   # (heads, N, dh)
        k = qkv[1 * num_heads:2 * num_heads]
        v = qkv[2 * num_heads:3 * num_heads]

        # Batched-over-heads attention (no per-head loop, no concat).
        s = jnp.einsum('hqd,hkd->hqk', q, k,
                       preferred_element_type=jnp.float32)
        s = s - jnp.max(s, axis=-1, keepdims=True)
        p = jnp.exp(s)
        p = p * pl.reciprocal(jnp.sum(p, axis=-1, keepdims=True), approx=True)
        av = jnp.einsum('hqk,hkd->hqd', p, v,
                        preferred_element_type=jnp.float32)   # (heads, N, dh)
        attn = jnp.transpose(av, (1, 0, 2)).reshape(n, hidden)

        # Output projection of the attention block.
        h = jnp.dot(attn, wo_ref[li], preferred_element_type=jnp.float32)
        h = h + bo_ref[li]

        # --- LayerNorm -> (Dropout=id) -> Linear+ReLU -> (Dropout=id) ->
        #     Linear -> LayerNorm  (exactly the nn.Sequential ordering; the
        #     spec's Sequential has no residual adds). ---
        h = _layernorm(h, ln1_g_ref[li], ln1_b_ref[li], eps)
        f1 = jnp.dot(h, ff1_w_ref[li], preferred_element_type=jnp.float32)
        f1 = jnp.maximum(f1 + ff1_b_ref[li], 0.0)
        h = jnp.dot(f1, ff2_w_ref[li], preferred_element_type=jnp.float32)
        h = h + ff2_b_ref[li]
        h = _layernorm(h, ln2_g_ref[li], ln2_b_ref[li], eps)

    # Decoder linear.
    out = jnp.dot(h, dec_w_ref[...], preferred_element_type=jnp.float32)
    out = out + dec_b_ref[...]
    o_ref[0] = out.astype(o_ref.dtype)


# ----------------------------------------------------------------------------
# Wrapper around pallas_call
# ----------------------------------------------------------------------------

def temporal_transformer_forward(params, x, edge_index, edge_weight, num_heads):
    """x: (B, T, N, F) -> (B, N, hidden)."""
    del edge_index, edge_weight   # the reference forward never uses them
    b, t, n, f = x.shape
    d_model = t * f
    hidden = params["enc_w"].shape[1]
    num_layers = params["wqkv"].shape[0]
    if hidden % num_heads != 0:
        raise ValueError("hidden_size must be divisible by num_heads")

    # permute + flatten time into feature, exactly like the PyTorch forward.
    x = jnp.transpose(x, (0, 2, 1, 3)).reshape(b, n, d_model)
    pe = params["pe"][:n]

    kernel = functools.partial(_fused_forward_kernel, num_heads=num_heads,
                               num_layers=num_layers, eps=1e-5)

    def per_batch_spec(shape):
        nzeros = len(shape) - 1
        return pl.BlockSpec((1,) + tuple(shape[1:]),
                            lambda i: (i,) + (0,) * nzeros)

    def resident_spec(shape):
        nd = len(shape)
        return pl.BlockSpec(tuple(shape), lambda i: (0,) * nd)

    weight_order = ("enc_w", "enc_b", "wqkv", "bqkv", "wo", "bo",
                    "ln1_g", "ln1_b", "ff1_w", "ff1_b", "ff2_w", "ff2_b",
                    "ln2_g", "ln2_b", "dec_w", "dec_b")
    weights = [pe] + [params[name] for name in weight_order]

    # VMEM budget: all weights + per-batch activation block total ~1.3 MB f32
    # double-buffered -- far under the scoped default on v5e/v6e/v7x, so no
    # vmem_limit_bytes override is needed at these sizes.
    return pl.pallas_call(
        kernel,
        out_shape=jax.ShapeDtypeStruct((b, n, hidden), x.dtype),
        grid=(b,),   # B blocks, "parallel" -> multi-TC chips split the batch
        in_specs=[per_batch_spec(x.shape)]
                 + [resident_spec(w.shape) for w in weights],
        out_specs=per_batch_spec((b, n, hidden)),
        compiler_params=pltpu.CompilerParams(
            dimension_semantics=("parallel",)),
    )(x, *weights)


# ----------------------------------------------------------------------------
# Parameter construction (deterministic, synthetic)
# ----------------------------------------------------------------------------

def _sinusoidal_pe(max_len, d_model):
    pos = jnp.arange(max_len, dtype=jnp.float32)[:, None]
    div = jnp.exp(jnp.arange(0, d_model, 2, dtype=jnp.float32)
                  * (-jnp.log(10000.0) / d_model))
    pe = jnp.zeros((max_len, d_model), dtype=jnp.float32)
    pe = pe.at[:, 0::2].set(jnp.sin(pos * div))
    pe = pe.at[:, 1::2].set(jnp.cos(pos * div))
    return pe


def init_params(key, input_size, hidden_size, window, num_layers, max_nodes):
    d_model = input_size * window

    def lin(k, din, dout):
        kw, kb = jax.random.split(k)
        scale = 1.0 / jnp.sqrt(jnp.float32(din))
        w = jax.random.uniform(kw, (din, dout), jnp.float32, -scale, scale)
        bias = jax.random.uniform(kb, (1, dout), jnp.float32, -scale, scale)
        return w, bias

    keys = jax.random.split(key, 2 + num_layers)
    enc_w, enc_b = lin(keys[0], d_model, hidden_size)
    dec_w, dec_b = lin(keys[1], hidden_size, hidden_size)

    wqkv, bqkv, wo, bo = [], [], [], []
    ff1_w, ff1_b, ff2_w, ff2_b = [], [], [], []
    for li in range(num_layers):
        lk = jax.random.split(keys[2 + li], 6)
        wq, bq = lin(lk[0], hidden_size, hidden_size)
        wk, bk = lin(lk[1], hidden_size, hidden_size)
        wv, bv = lin(lk[2], hidden_size, hidden_size)
        wqkv.append(jnp.concatenate([wq, wk, wv], axis=1))   # (H, 3H)
        bqkv.append(jnp.concatenate([bq, bk, bv], axis=1))   # (1, 3H)
        w, b_ = lin(lk[3], hidden_size, hidden_size)
        wo.append(w); bo.append(b_)
        w, b_ = lin(lk[4], hidden_size, 2 * hidden_size)
        ff1_w.append(w); ff1_b.append(b_)
        w, b_ = lin(lk[5], 2 * hidden_size, hidden_size)
        ff2_w.append(w); ff2_b.append(b_)

    ones = jnp.ones((num_layers, 1, hidden_size), jnp.float32)
    zeros = jnp.zeros((num_layers, 1, hidden_size), jnp.float32)
    return {
        "pe": _sinusoidal_pe(max_nodes, d_model),
        "enc_w": enc_w, "enc_b": enc_b,
        "dec_w": dec_w, "dec_b": dec_b,
        "wqkv": jnp.stack(wqkv), "bqkv": jnp.stack(bqkv),
        "wo": jnp.stack(wo), "bo": jnp.stack(bo),
        "ff1_w": jnp.stack(ff1_w), "ff1_b": jnp.stack(ff1_b),
        "ff2_w": jnp.stack(ff2_w), "ff2_b": jnp.stack(ff2_b),
        "ln1_g": ones, "ln1_b": zeros,
        "ln2_g": ones, "ln2_b": zeros,
    }


# ----------------------------------------------------------------------------
# Main
# ----------------------------------------------------------------------------

if __name__ == "__main__":
    # Small shapes consistent with the module's forward.  hidden=128 keeps
    # every matmul operand / output lane-dense (128 / 256 / 384 lanes).
    B, T, N, F = 2, 4, 16, 16        # batch, window, nodes, features
    INPUT_SIZE = F
    WINDOW = T
    HIDDEN = 128
    NUM_HEADS = 8                    # head_dim = 16
    NUM_LAYERS = 1

    key = jax.random.PRNGKey(0)
    k_x, k_p = jax.random.split(key)

    x = jax.random.normal(k_x, (B, T, N, F), dtype=jnp.float32)
    # Graph inputs (unused by the forward path, kept for interface parity).
    edge_index = jnp.stack([jnp.arange(N, dtype=jnp.int32),
                            (jnp.arange(N, dtype=jnp.int32) + 1) % N])
    edge_weight = jnp.ones((N,), dtype=jnp.float32)

    params = init_params(k_p, INPUT_SIZE, HIDDEN, WINDOW, NUM_LAYERS,
                         max_nodes=64)

    out = temporal_transformer_forward(params, x, edge_index, edge_weight,
                                       NUM_HEADS)
    out = jax.block_until_ready(out)
    assert out.shape == (B, N, HIDDEN)
    print("KERNEL_OK")
</pallas_src>

<mosaic_0001>
module attributes {stable_mosaic.version = 11 : i64} {
  func.func @_fused_forward_kernel(%arg0: i32, %arg1: memref<1x16x64xf32, #tpu.memory_space<vmem>>, %arg2: memref<16x64xf32, #tpu.memory_space<vmem>>, %arg3: memref<64x128xf32, #tpu.memory_space<vmem>>, %arg4: memref<1x128xf32, #tpu.memory_space<vmem>>, %arg5: memref<1x128x384xf32, #tpu.memory_space<vmem>>, %arg6: memref<1x1x384xf32, #tpu.memory_space<vmem>>, %arg7: memref<1x128x128xf32, #tpu.memory_space<vmem>>, %arg8: memref<1x1x128xf32, #tpu.memory_space<vmem>>, %arg9: memref<1x1x128xf32, #tpu.memory_space<vmem>>, %arg10: memref<1x1x128xf32, #tpu.memory_space<vmem>>, %arg11: memref<1x128x256xf32, #tpu.memory_space<vmem>>, %arg12: memref<1x1x256xf32, #tpu.memory_space<vmem>>, %arg13: memref<1x256x128xf32, #tpu.memory_space<vmem>>, %arg14: memref<1x1x128xf32, #tpu.memory_space<vmem>>, %arg15: memref<1x1x128xf32, #tpu.memory_space<vmem>>, %arg16: memref<1x1x128xf32, #tpu.memory_space<vmem>>, %arg17: memref<128x128xf32, #tpu.memory_space<vmem>>, %arg18: memref<1x128xf32, #tpu.memory_space<vmem>>, %arg19: memref<1x16x128xf32, #tpu.memory_space<vmem>>) attributes {dimension_semantics = [#tpu.dimension_semantics<parallel>], iteration_bounds = array<i64: 2>, scalar_prefetch = 0 : i64, scratch_operands = 0 : i64, tpu.core_type = #tpu.core_type<tc>, window_params = [{transform_indices = @transform_0, window_bounds = array<i64: 1, 16, 64>}, {pipeline_mode = #tpu.pipeline_mode<synchronous>, transform_indices = @transform_1, window_bounds = array<i64: 16, 64>}, {pipeline_mode = #tpu.pipeline_mode<synchronous>, transform_indices = @transform_2, window_bounds = array<i64: 64, 128>}, {pipeline_mode = #tpu.pipeline_mode<synchronous>, transform_indices = @transform_3, window_bounds = array<i64: 1, 128>}, {pipeline_mode = #tpu.pipeline_mode<synchronous>, transform_indices = @transform_4, window_bounds = array<i64: 1, 128, 384>}, {pipeline_mode = #tpu.pipeline_mode<synchronous>, transform_indices = @transform_5, window_bounds = array<i64: 1, 1, 384>}, {pipeline_mode = #tpu.pipeline_mode<synchronous>, transform_indices = @transform_6, window_bounds = array<i64: 1, 128, 128>}, {pipeline_mode = #tpu.pipeline_mode<synchronous>, transform_indices = @transform_7, window_bounds = array<i64: 1, 1, 128>}, {pipeline_mode = #tpu.pipeline_mode<synchronous>, transform_indices = @transform_8, window_bounds = array<i64: 1, 1, 128>}, {pipeline_mode = #tpu.pipeline_mode<synchronous>, transform_indices = @transform_9, window_bounds = array<i64: 1, 1, 128>}, {pipeline_mode = #tpu.pipeline_mode<synchronous>, transform_indices = @transform_10, window_bounds = array<i64: 1, 128, 256>}, {pipeline_mode = #tpu.pipeline_mode<synchronous>, transform_indices = @transform_11, window_bounds = array<i64: 1, 1, 256>}, {pipeline_mode = #tpu.pipeline_mode<synchronous>, transform_indices = @transform_12, window_bounds = array<i64: 1, 256, 128>}, {pipeline_mode = #tpu.pipeline_mode<synchronous>, transform_indices = @transform_13, window_bounds = array<i64: 1, 1, 128>}, {pipeline_mode = #tpu.pipeline_mode<synchronous>, transform_indices = @transform_14, window_bounds = array<i64: 1, 1, 128>}, {pipeline_mode = #tpu.pipeline_mode<synchronous>, transform_indices = @transform_15, window_bounds = array<i64: 1, 1, 128>}, {pipeline_mode = #tpu.pipeline_mode<synchronous>, transform_indices = @transform_16, window_bounds = array<i64: 128, 128>}, {pipeline_mode = #tpu.pipeline_mode<synchronous>, transform_indices = @transform_17, window_bounds = array<i64: 1, 128>}, {transform_indices = @transform_18, window_bounds = array<i64: 1, 16, 128>}]} {
    %c0 = arith.constant 0 : index
    %c0_0 = arith.constant 0 : index
    %c0_1 = arith.constant 0 : index
    %0 = vector.load %arg1[%c0, %c0_0, %c0_1] : memref<1x16x64xf32, #tpu.memory_space<vmem>>, vector<1x16x64xf32>
    %1 = vector.shape_cast %0 : vector<1x16x64xf32> to vector<16x64xf32>
    %c0_2 = arith.constant 0 : index
    %c0_3 = arith.constant 0 : index
    %2 = vector.load %arg2[%c0_2, %c0_3] : memref<16x64xf32, #tpu.memory_space<vmem>>, vector<16x64xf32>
    %3 = arith.addf %1, %2 : vector<16x64xf32>
    %c0_4 = arith.constant 0 : index
    %c0_5 = arith.constant 0 : index
    %4 = vector.load %arg3[%c0_4, %c0_5] : memref<64x128xf32, #tpu.memory_space<vmem>>, vector<64x128xf32>
    %cst = arith.constant dense<0.000000e+00> : vector<16x128xf32>
    %5 = tpu.matmul %3, %4, %cst {dimension_numbers = #tpu.dot_dimension_numbers<[1], [0], [0], [1], [0, 0, 1, 1], [], []>} : vector<16x64xf32>, vector<64x128xf32>, vector<16x128xf32> -> vector<16x128xf32>
    %c0_6 = arith.constant 0 : index
    %c0_7 = arith.constant 0 : index
    %6 = vector.load %arg4[%c0_6, %c0_7] : memref<1x128xf32, #tpu.memory_space<vmem>>, vector<1x128xf32>
    %7 = vector.broadcast %6 : vector<1x128xf32> to vector<16x128xf32>
    %8 = arith.addf %5, %7 : vector<16x128xf32>
    %c0_8 = arith.constant 0 : index
    %c0_9 = arith.constant 0 : index
    %c0_10 = arith.constant 0 : index
    %9 = vector.load %arg5[%c0_8, %c0_9, %c0_10] : memref<1x128x384xf32, #tpu.memory_space<vmem>>, vector<1x128x384xf32>
    %10 = vector.shape_cast %9 : vector<1x128x384xf32> to vector<128x384xf32>
    %cst_11 = arith.constant dense<0.000000e+00> : vector<16x384xf32>
    %11 = tpu.matmul %8, %10, %cst_11 {dimension_numbers = #tpu.dot_dimension_numbers<[1], [0], [0], [1], [0, 0, 1, 1], [], []>} : vector<16x128xf32>, vector<128x384xf32>, vector<16x384xf32> -> vector<16x384xf32>
    %c0_12 = arith.constant 0 : index
    %c0_13 = arith.constant 0 : index
    %c0_14 = arith.constant 0 : index
    %12 = vector.load %arg6[%c0_12, %c0_13, %c0_14] : memref<1x1x384xf32, #tpu.memory_space<vmem>>, vector<1x1x384xf32>
    %13 = vector.shape_cast %12 : vector<1x1x384xf32> to vector<1x384xf32>
    %14 = vector.broadcast %13 : vector<1x384xf32> to vector<16x384xf32>
    %15 = arith.addf %11, %14 : vector<16x384xf32>
    %16 = vector.shape_cast %15 : vector<16x384xf32> to vector<16x24x16xf32>
    %17 = tpu.transpose %16, [1, 0, 2] : vector<16x24x16xf32> -> vector<24x16x16xf32>
    %18 = vector.extract_strided_slice %17 {offsets = [0, 0, 0], sizes = [8, 16, 16], strides = [1, 1, 1]} : vector<24x16x16xf32> to vector<8x16x16xf32>
    %cst_15 = arith.constant 2.500000e-01 : f32
    %19 = vector.broadcast %cst_15 : f32 to vector<8x16x16xf32>
    %20 = arith.mulf %18, %19 : vector<8x16x16xf32>
    %21 = vector.extract_strided_slice %17 {offsets = [8, 0, 0], sizes = [8, 16, 16], strides = [1, 1, 1]} : vector<24x16x16xf32> to vector<8x16x16xf32>
    %22 = vector.extract_strided_slice %17 {offsets = [16, 0, 0], sizes = [8, 16, 16], strides = [1, 1, 1]} : vector<24x16x16xf32> to vector<8x16x16xf32>
    "tpu.trace_start"() <{level = 10 : i32, message = "hqd,hkd->hqk"}> : () -> ()
    %cst_16 = arith.constant dense<0.000000e+00> : vector<8x16x16xf32>
    %23 = tpu.matmul %20, %21, %cst_16 {dimension_numbers = #tpu.dot_dimension_numbers<[2], [2], [1], [1], [0, 0, 0, 1, 1, 1], [0], [0]>} : vector<8x16x16xf32>, vector<8x16x16xf32>, vector<8x16x16xf32> -> vector<8x16x16xf32>
    "tpu.trace_stop"() : () -> ()
    %cst_17 = arith.constant dense<0xFF800000> : vector<8x16xf32>
    %24 = vector.multi_reduction <maximumf>, %23, %cst_17 [2] : vector<8x16x16xf32> to vector<8x16xf32>
    %25 = vector.shape_cast %24 : vector<8x16xf32> to vector<8x16x1xf32>
    %26 = vector.broadcast %25 : vector<8x16x1xf32> to vector<8x16x16xf32>
    %27 = arith.subf %23, %26 : vector<8x16x16xf32>
    %28 = math.exp %27 : vector<8x16x16xf32>
    %cst_18 = arith.constant dense<0.000000e+00> : vector<8x16xf32>
    %29 = vector.multi_reduction <add>, %28, %cst_18 [2] : vector<8x16x16xf32> to vector<8x16xf32>
    %30 = vector.shape_cast %29 : vector<8x16xf32> to vector<8x16x1xf32>
    %31 = tpu.reciprocal %30 {approx = true} : vector<8x16x1xf32> -> vector<8x16x1xf32>
    %32 = vector.broadcast %31 : vector<8x16x1xf32> to vector<8x16x16xf32>
    %33 = arith.mulf %28, %32 : vector<8x16x16xf32>
    "tpu.trace_start"() <{level = 10 : i32, message = "hqk,hkd->hqd"}> : () -> ()
    %cst_19 = arith.constant dense<0.000000e+00> : vector<8x16x16xf32>
    %34 = tpu.matmul %33, %22, %cst_19 {dimension_numbers = #tpu.dot_dimension_numbers<[2], [1], [1], [2], [0, 0, 0, 1, 1, 2], [0], [0]>} : vector<8x16x16xf32>, vector<8x16x16xf32>, vector<8x16x16xf32> -> vector<8x16x16xf32>
    "tpu.trace_stop"() : () -> ()
    %35 = tpu.transpose %34, [1, 0, 2] : vector<8x16x16xf32> -> vector<16x8x16xf32>
    %36 = vector.shape_cast %35 : vector<16x8x16xf32> to vector<16x128xf32>
    %c0_20 = arith.constant 0 : index
    %c0_21 = arith.constant 0 : index
    %c0_22 = arith.constant 0 : index
    %37 = vector.load %arg7[%c0_20, %c0_21, %c0_22] : memref<1x128x128xf32, #tpu.memory_space<vmem>>, vector<1x128x128xf32>
    %38 = vector.shape_cast %37 : vector<1x128x128xf32> to vector<128x128xf32>
    %cst_23 = arith.constant dense<0.000000e+00> : vector<16x128xf32>
    %39 = tpu.matmul %36, %38, %cst_23 {dimension_numbers = #tpu.dot_dimension_numbers<[1], [0], [0], [1], [0, 0, 1, 1], [], []>} : vector<16x128xf32>, vector<128x128xf32>, vector<16x128xf32> -> vector<16x128xf32>
    %c0_24 = arith.constant 0 : index
    %c0_25 = arith.constant 0 : index
    %c0_26 = arith.constant 0 : index
    %40 = vector.load %arg8[%c0_24, %c0_25, %c0_26] : memref<1x1x128xf32, #tpu.memory_space<vmem>>, vector<1x1x128xf32>
    %41 = vector.shape_cast %40 : vector<1x1x128xf32> to vector<1x128xf32>
    %42 = vector.broadcast %41 : vector<1x128xf32> to vector<16x128xf32>
    %43 = arith.addf %39, %42 : vector<16x128xf32>
    %c0_27 = arith.constant 0 : index
    %c0_28 = arith.constant 0 : index
    %c0_29 = arith.constant 0 : index
    %44 = vector.load %arg9[%c0_27, %c0_28, %c0_29] : memref<1x1x128xf32, #tpu.memory_space<vmem>>, vector<1x1x128xf32>
    %45 = vector.shape_cast %44 : vector<1x1x128xf32> to vector<1x128xf32>
    %c0_30 = arith.constant 0 : index
    %c0_31 = arith.constant 0 : index
    %c0_32 = arith.constant 0 : index
    %46 = vector.load %arg10[%c0_30, %c0_31, %c0_32] : memref<1x1x128xf32, #tpu.memory_space<vmem>>, vector<1x1x128xf32>
    %47 = vector.shape_cast %46 : vector<1x1x128xf32> to vector<1x128xf32>
    %cst_33 = arith.constant dense<0.000000e+00> : vector<16xf32>
    %48 = vector.multi_reduction <add>, %43, %cst_33 [1] : vector<16x128xf32> to vector<16xf32>
    %49 = vector.shape_cast %48 : vector<16xf32> to vector<16x1xf32>
    %cst_34 = arith.constant 1.280000e+02 : f32
    %50 = vector.broadcast %cst_34 : f32 to vector<16x1xf32>
    %51 = arith.divf %49, %50 : vector<16x1xf32>
    %52 = vector.broadcast %51 : vector<16x1xf32> to vector<16x128xf32>
    %53 = arith.subf %43, %52 : vector<16x128xf32>
    %54 = arith.mulf %53, %53 : vector<16x128xf32>
    %cst_35 = arith.constant dense<0.000000e+00> : vector<16xf32>
    %55 = vector.multi_reduction <add>, %54, %cst_35 [1] : vector<16x128xf32> to vector<16xf32>
    %56 = vector.shape_cast %55 : vector<16xf32> to vector<16x1xf32>
    %cst_36 = arith.constant 1.280000e+02 : f32
    %57 = vector.broadcast %cst_36 : f32 to vector<16x1xf32>
    %58 = arith.divf %56, %57 : vector<16x1xf32>
    %59 = vector.broadcast %51 : vector<16x1xf32> to vector<16x128xf32>
    %60 = arith.subf %43, %59 : vector<16x128xf32>
    %cst_37 = arith.constant 9.99999974E-6 : f32
    %61 = vector.broadcast %cst_37 : f32 to vector<16x1xf32>
    %62 = arith.addf %58, %61 : vector<16x1xf32>
    %63 = math.rsqrt %62 : vector<16x1xf32>
    %64 = vector.broadcast %63 : vector<16x1xf32> to vector<16x128xf32>
    %65 = arith.mulf %60, %64 : vector<16x128xf32>
    %66 = vector.broadcast %45 : vector<1x128xf32> to vector<16x128xf32>
    %67 = arith.mulf %65, %66 : vector<16x128xf32>
    %68 = vector.broadcast %47 : vector<1x128xf32> to vector<16x128xf32>
    %69 = arith.addf %67, %68 : vector<16x128xf32>
    %c0_38 = arith.constant 0 : index
    %c0_39 = arith.constant 0 : index
    %c0_40 = arith.constant 0 : index
    %70 = vector.load %arg11[%c0_38, %c0_39, %c0_40] : memref<1x128x256xf32, #tpu.memory_space<vmem>>, vector<1x128x256xf32>
    %71 = vector.shape_cast %70 : vector<1x128x256xf32> to vector<128x256xf32>
    %cst_41 = arith.constant dense<0.000000e+00> : vector<16x256xf32>
    %72 = tpu.matmul %69, %71, %cst_41 {dimension_numbers = #tpu.dot_dimension_numbers<[1], [0], [0], [1], [0, 0, 1, 1], [], []>} : vector<16x128xf32>, vector<128x256xf32>, vector<16x256xf32> -> vector<16x256xf32>
    %c0_42 = arith.constant 0 : index
    %c0_43 = arith.constant 0 : index
    %c0_44 = arith.constant 0 : index
    %73 = vector.load %arg12[%c0_42, %c0_43, %c0_44] : memref<1x1x256xf32, #tpu.memory_space<vmem>>, vector<1x1x256xf32>
    %74 = vector.shape_cast %73 : vector<1x1x256xf32> to vector<1x256xf32>
    %75 = vector.broadcast %74 : vector<1x256xf32> to vector<16x256xf32>
    %76 = arith.addf %72, %75 : vector<16x256xf32>
    %cst_45 = arith.constant 0.000000e+00 : f32
    %77 = vector.broadcast %cst_45 : f32 to vector<16x256xf32>
    %78 = arith.maximumf %76, %77 : vector<16x256xf32>
    %c0_46 = arith.constant 0 : index
    %c0_47 = arith.constant 0 : index
    %c0_48 = arith.constant 0 : index
    %79 = vector.load %arg13[%c0_46, %c0_47, %c0_48] : memref<1x256x128xf32, #tpu.memory_space<vmem>>, vector<1x256x128xf32>
    %80 = vector.shape_cast %79 : vector<1x256x128xf32> to vector<256x128xf32>
    %cst_49 = arith.constant dense<0.000000e+00> : vector<16x128xf32>
    %81 = tpu.matmul %78, %80, %cst_49 {dimension_numbers = #tpu.dot_dimension_numbers<[1], [0], [0], [1], [0, 0, 1, 1], [], []>} : vector<16x256xf32>, vector<256x128xf32>, vector<16x128xf32> -> vector<16x128xf32>
    %c0_50 = arith.constant 0 : index
    %c0_51 = arith.constant 0 : index
    %c0_52 = arith.constant 0 : index
    %82 = vector.load %arg14[%c0_50, %c0_51, %c0_52] : memref<1x1x128xf32, #tpu.memory_space<vmem>>, vector<1x1x128xf32>
    %83 = vector.shape_cast %82 : vector<1x1x128xf32> to vector<1x128xf32>
    %84 = vector.broadcast %83 : vector<1x128xf32> to vector<16x128xf32>
    %85 = arith.addf %81, %84 : vector<16x128xf32>
    %c0_53 = arith.constant 0 : index
    %c0_54 = arith.constant 0 : index
    %c0_55 = arith.constant 0 : index
    %86 = vector.load %arg15[%c0_53, %c0_54, %c0_55] : memref<1x1x128xf32, #tpu.memory_space<vmem>>, vector<1x1x128xf32>
    %87 = vector.shape_cast %86 : vector<1x1x128xf32> to vector<1x128xf32>
    %c0_56 = arith.constant 0 : index
    %c0_57 = arith.constant 0 : index
    %c0_58 = arith.constant 0 : index
    %88 = vector.load %arg16[%c0_56, %c0_57, %c0_58] : memref<1x1x128xf32, #tpu.memory_space<vmem>>, vector<1x1x128xf32>
    %89 = vector.shape_cast %88 : vector<1x1x128xf32> to vector<1x128xf32>
    %cst_59 = arith.constant dense<0.000000e+00> : vector<16xf32>
    %90 = vector.multi_reduction <add>, %85, %cst_59 [1] : vector<16x128xf32> to vector<16xf32>
    %91 = vector.shape_cast %90 : vector<16xf32> to vector<16x1xf32>
    %cst_60 = arith.constant 1.280000e+02 : f32
    %92 = vector.broadcast %cst_60 : f32 to vector<16x1xf32>
    %93 = arith.divf %91, %92 : vector<16x1xf32>
    %94 = vector.broadcast %93 : vector<16x1xf32> to vector<16x128xf32>
    %95 = arith.subf %85, %94 : vector<16x128xf32>
    %96 = arith.mulf %95, %95 : vector<16x128xf32>
    %cst_61 = arith.constant dense<0.000000e+00> : vector<16xf32>
    %97 = vector.multi_reduction <add>, %96, %cst_61 [1] : vector<16x128xf32> to vector<16xf32>
    %98 = vector.shape_cast %97 : vector<16xf32> to vector<16x1xf32>
    %cst_62 = arith.constant 1.280000e+02 : f32
    %99 = vector.broadcast %cst_62 : f32 to vector<16x1xf32>
    %100 = arith.divf %98, %99 : vector<16x1xf32>
    %101 = vector.broadcast %93 : vector<16x1xf32> to vector<16x128xf32>
    %102 = arith.subf %85, %101 : vector<16x128xf32>
    %cst_63 = arith.constant 9.99999974E-6 : f32
    %103 = vector.broadcast %cst_63 : f32 to vector<16x1xf32>
    %104 = arith.addf %100, %103 : vector<16x1xf32>
    %105 = math.rsqrt %104 : vector<16x1xf32>
    %106 = vector.broadcast %105 : vector<16x1xf32> to vector<16x128xf32>
    %107 = arith.mulf %102, %106 : vector<16x128xf32>
    %108 = vector.broadcast %87 : vector<1x128xf32> to vector<16x128xf32>
    %109 = arith.mulf %107, %108 : vector<16x128xf32>
    %110 = vector.broadcast %89 : vector<1x128xf32> to vector<16x128xf32>
    %111 = arith.addf %109, %110 : vector<16x128xf32>
    %c0_64 = arith.constant 0 : index
    %c0_65 = arith.constant 0 : index
    %112 = vector.load %arg17[%c0_64, %c0_65] : memref<128x128xf32, #tpu.memory_space<vmem>>, vector<128x128xf32>
    %cst_66 = arith.constant dense<0.000000e+00> : vector<16x128xf32>
    %113 = tpu.matmul %111, %112, %cst_66 {dimension_numbers = #tpu.dot_dimension_numbers<[1], [0], [0], [1], [0, 0, 1, 1], [], []>} : vector<16x128xf32>, vector<128x128xf32>, vector<16x128xf32> -> vector<16x128xf32>
    %c0_67 = arith.constant 0 : index
    %c0_68 = arith.constant 0 : index
    %114 = vector.load %arg18[%c0_67, %c0_68] : memref<1x128xf32, #tpu.memory_space<vmem>>, vector<1x128xf32>
    %115 = vector.broadcast %114 : vector<1x128xf32> to vector<16x128xf32>
    %116 = arith.addf %113, %115 : vector<16x128xf32>
    %c0_69 = arith.constant 0 : index
    %c0_70 = arith.constant 0 : index
    %c0_71 = arith.constant 0 : index
    %117 = vector.load %arg19[%c0_69, %c0_70, %c0_71] : memref<1x16x128xf32, #tpu.memory_space<vmem>>, vector<1x16x128xf32>
    %118 = vector.shape_cast %117 : vector<1x16x128xf32> to vector<16x128xf32>
    %119 = vector.shape_cast %116 : vector<16x128xf32> to vector<1x16x128xf32>
    tpu.vector_store %arg19[%c0_69, %c0_70, %c0_71], %119 {strides = array<i32>} : memref<1x16x128xf32, #tpu.memory_space<vmem>>, vector<1x16x128xf32>,
    return
  }
  func.func @transform_0(%arg0: i32) -> (i32, i32, i32) {
    %c0_i32 = arith.constant 0 : i32
    %c0_i32_0 = arith.constant 0 : i32
    %c0_i32_1 = arith.constant 0 : i32
    return %arg0, %c0_i32, %c0_i32_0 : i32, i32, i32
  }
  func.func @transform_1(%arg0: i32) -> (i32, i32) {
    %c0_i32 = arith.constant 0 : i32
    %c0_i32_0 = arith.constant 0 : i32
    %c0_i32_1 = arith.constant 0 : i32
    return %c0_i32, %c0_i32_0 : i32, i32
  }
  func.func @transform_2(%arg0: i32) -> (i32, i32) {
    %c0_i32 = arith.constant 0 : i32
    %c0_i32_0 = arith.constant 0 : i32
    %c0_i32_1 = arith.constant 0 : i32
    return %c0_i32, %c0_i32_0 : i32, i32
  }
  func.func @transform_3(%arg0: i32) -> (i32, i32) {
    %c0_i32 = arith.constant 0 : i32
    %c0_i32_0 = arith.constant 0 : i32
    %c0_i32_1 = arith.constant 0 : i32
    return %c0_i32, %c0_i32_0 : i32, i32
  }
  func.func @transform_4(%arg0: i32) -> (i32, i32, i32) {
    %c0_i32 = arith.constant 0 : i32
    %c0_i32_0 = arith.constant 0 : i32
    %c0_i32_1 = arith.constant 0 : i32
    %c0_i32_2 = arith.constant 0 : i32
    return %c0_i32, %c0_i32_0, %c0_i32_1 : i32, i32, i32
  }
  func.func @transform_5(%arg0: i32) -> (i32, i32, i32) {
    %c0_i32 = arith.constant 0 : i32
    %c0_i32_0 = arith.constant 0 : i32
    %c0_i32_1 = arith.constant 0 : i32
    %c0_i32_2 = arith.constant 0 : i32
    return %c0_i32, %c0_i32_0, %c0_i32_1 : i32, i32, i32
  }
  func.func @transform_6(%arg0: i32) -> (i32, i32, i32) {
    %c0_i32 = arith.constant 0 : i32
    %c0_i32_0 = arith.constant 0 : i32
    %c0_i32_1 = arith.constant 0 : i32
    %c0_i32_2 = arith.constant 0 : i32
    return %c0_i32, %c0_i32_0, %c0_i32_1 : i32, i32, i32
  }
  func.func @transform_7(%arg0: i32) -> (i32, i32, i32) {
    %c0_i32 = arith.constant 0 : i32
    %c0_i32_0 = arith.constant 0 : i32
    %c0_i32_1 = arith.constant 0 : i32
    %c0_i32_2 = arith.constant 0 : i32
    return %c0_i32, %c0_i32_0, %c0_i32_1 : i32, i32, i32
  }
  func.func @transform_8(%arg0: i32) -> (i32, i32, i32) {
    %c0_i32 = arith.constant 0 : i32
    %c0_i32_0 = arith.constant 0 : i32
    %c0_i32_1 = arith.constant 0 : i32
    %c0_i32_2 = arith.constant 0 : i32
    return %c0_i32, %c0_i32_0, %c0_i32_1 : i32, i32, i32
  }
  func.func @transform_9(%arg0: i32) -> (i32, i32, i32) {
    %c0_i32 = arith.constant 0 : i32
    %c0_i32_0 = arith.constant 0 : i32
    %c0_i32_1 = arith.constant 0 : i32
    %c0_i32_2 = arith.constant 0 : i32
    return %c0_i32, %c0_i32_0, %c0_i32_1 : i32, i32, i32
  }
  func.func @transform_10(%arg0: i32) -> (i32, i32, i32) {
    %c0_i32 = arith.constant 0 : i32
    %c0_i32_0 = arith.constant 0 : i32
    %c0_i32_1 = arith.constant 0 : i32
    %c0_i32_2 = arith.constant 0 : i32
    return %c0_i32, %c0_i32_0, %c0_i32_1 : i32, i32, i32
  }
  func.func @transform_11(%arg0: i32) -> (i32, i32, i32) {
    %c0_i32 = arith.constant 0 : i32
    %c0_i32_0 = arith.constant 0 : i32
    %c0_i32_1 = arith.constant 0 : i32
    %c0_i32_2 = arith.constant 0 : i32
    return %c0_i32, %c0_i32_0, %c0_i32_1 : i32, i32, i32
  }
  func.func @transform_12(%arg0: i32) -> (i32, i32, i32) {
    %c0_i32 = arith.constant 0 : i32
    %c0_i32_0 = arith.constant 0 : i32
    %c0_i32_1 = arith.constant 0 : i32
    %c0_i32_2 = arith.constant 0 : i32
    return %c0_i32, %c0_i32_0, %c0_i32_1 : i32, i32, i32
  }
  func.func @transform_13(%arg0: i32) -> (i32, i32, i32) {
    %c0_i32 = arith.constant 0 : i32
    %c0_i32_0 = arith.constant 0 : i32
    %c0_i32_1 = arith.constant 0 : i32
    %c0_i32_2 = arith.constant 0 : i32
    return %c0_i32, %c0_i32_0, %c0_i32_1 : i32, i32, i32
  }
  func.func @transform_14(%arg0: i32) -> (i32, i32, i32) {
    %c0_i32 = arith.constant 0 : i32
    %c0_i32_0 = arith.constant 0 : i32
    %c0_i32_1 = arith.constant 0 : i32
    %c0_i32_2 = arith.constant 0 : i32
    return %c0_i32, %c0_i32_0, %c0_i32_1 : i32, i32, i32
  }
  func.func @transform_15(%arg0: i32) -> (i32, i32, i32) {
    %c0_i32 = arith.constant 0 : i32
    %c0_i32_0 = arith.constant 0 : i32
    %c0_i32_1 = arith.constant 0 : i32
    %c0_i32_2 = arith.constant 0 : i32
    return %c0_i32, %c0_i32_0, %c0_i32_1 : i32, i32, i32
  }
  func.func @transform_16(%arg0: i32) -> (i32, i32) {
    %c0_i32 = arith.constant 0 : i32
    %c0_i32_0 = arith.constant 0 : i32
    %c0_i32_1 = arith.constant 0 : i32
    return %c0_i32, %c0_i32_0 : i32, i32
  }
  func.func @transform_17(%arg0: i32) -> (i32, i32) {
    %c0_i32 = arith.constant 0 : i32
    %c0_i32_0 = arith.constant 0 : i32
    %c0_i32_1 = arith.constant 0 : i32
    return %c0_i32, %c0_i32_0 : i32, i32
  }
  func.func @transform_18(%arg0: i32) -> (i32, i32, i32) {
    %c0_i32 = arith.constant 0 : i32
    %c0_i32_0 = arith.constant 0 : i32
    %c0_i32_1 = arith.constant 0 : i32
    return %arg0, %c0_i32, %c0_i32_0 : i32, i32, i32
  }
}

</mosaic_0001>

<bundles_post_ra>
// kernel: tpu_custom_call.1
= control target key start
LH: loop header
LB: loop body
LE: loop exit
PB: predicated region body
PF: predicated region fallthrough
CT: control target
= control target key end

     0   :  { %s8124_s0 = inlined_call_operand.hbm [shape: f32[2,16,64], index: 0, kind: input, shape index: {}]   ;;  %s8125_s1 = inlined_call_operand.hbm [shape: f32[16,64], index: 1, kind: input, shape index: {}]   ;;  %s8126_s2 = inlined_call_operand.hbm [shape: f32[64,128], index: 2, kind: input, shape index: {}]   ;;  %s8127_s3 = inlined_call_operand.hbm [shape: f32[1,128], index: 3, kind: input, shape index: {}]   ;;  %s8128_s4 = inlined_call_operand.hbm [shape: f32[1,128,384], index: 4, kind: input, shape index: {}]   ;;  %s8129_s5 = inlined_call_operand.vmem [shape: f32[1,1,384], index: 5, kind: input, shape index: {}]   ;;  %s8130_s6 = inlined_call_operand.hbm [shape: f32[1,128,128], index: 6, kind: input, shape index: {}]   ;;  %s8131_s7 = inlined_call_operand.vmem [shape: f32[1,1,128], index: 7, kind: input, shape index: {}]   ;;  %s8132_s8 = inlined_call_operand.vmem [shape: f32[1,1,128], index: 8, kind: input, shape index: {}]   ;;  %s8133_s9 = inlined_call_operand.vmem [shape: f32[1,1,128], index: 9, kind: input, shape index: {}]   ;;  %s8134_s10 = inlined_call_operand.hbm [shape: f32[1,128,256], index: 10, kind: input, shape index: {}]   ;;  %s8135_s11 = inlined_call_operand.vmem [shape: f32[1,1,256], index: 11, kind: input, shape index: {}]   ;;  %s8136_s12 = inlined_call_operand.hbm [shape: f32[1,256,128], index: 12, kind: input, shape index: {}]   ;;  %s8137_s13 = inlined_call_operand.vmem [shape: f32[1,1,128], index: 13, kind: input, shape index: {}]   ;;  %s8138_s14 = inlined_call_operand.vmem [shape: f32[1,1,128], index: 14, kind: input, shape index: {}]   ;;  %s8139_s15 = inlined_call_operand.vmem [shape: f32[1,1,128], index: 15, kind: input, shape index: {}]   ;;  %s8140_s16 = inlined_call_operand.hbm [shape: f32[128,128], index: 16, kind: input, shape index: {}]   ;;  %s8141_s17 = inlined_call_operand.vmem [shape: f32[1,128], index: 17, kind: input, shape index: {}]   ;;  %s8142_s18 = inlined_call_operand.hbm [shape: f32[2,16,128], index: 18, kind: output, shape index: {}]  }
   0x1   :  { %8151 = sst [smem:[#allocation24_spill]] %s8124_s0 }
   0x2   :  { %8152 = sst [smem:[#allocation25_spill]] %s8125_s1 }
   0x3   :  { %8153 = sst [smem:[#allocation26_spill]] %s8126_s2 }
   0x4   :  { %8154 = sst [smem:[#allocation27_spill]] %s8127_s3 }
   0x5   :  { %8155 = sst [smem:[#allocation28_spill]] %s8128_s4 }
   0x6   :  { %8156 = sst [smem:[#allocation29_spill]] %s8130_s6 }
   0x7   :  { %8157 = sst [smem:[#allocation30_spill]] %s8134_s10 }
   0x8   :  { %8158 = sst [smem:[#allocation31_spill]] %s8136_s12 }
   0x9   :  { %8159 = sst [smem:[#allocation32_spill]] %s8137_s13 }
   0xa   :  { %8160 = sst [smem:[#allocation33_spill]] %s8138_s14 }
   0xb   :  { %8161 = sst [smem:[#allocation34_spill]] %s8139_s15 }
   0xc   :  { %8162 = sst [smem:[#allocation35_spill]] %s8141_s17 }
   0xd   :  { %8163 = sst [smem:[#allocation36_spill]] %s8142_s18 }
   0xe   :  { %23 = vsyncpa [#allocation3], 0 }
   0xf   :  { %25 = vsyncpa [#allocation3 + $0x1], 0 }
  0x10   :  { %26 = vsyncpa [#allocation6], 0 }
  0x11   :  { %27 = vsyncpa [#allocation9], 0 }
  0x12   :  { %28 = vsyncpa [#allocation12], 0 }
  0x13   :  { %29 = vsyncpa [#allocation15], 0 }
  0x14   :  { %30 = vsyncpa [#allocation4], 0 }
  0x15   :  { %32 = vsyncpa [#allocation4 + $0x1], 0  ;;  %s6878_s27 = smov 0   ;;  %s6880_s28 = smov 0  }
  0x16   :  { %s6882_s29 = smov 0   ;;  %s6884_s30 = smov 0  }
  0x17 LB: > { %s6755_s0 = smov [#allocation5]   ;;  %s6899_s1 = sadd.s32 4294967295, %s6753_s30   ;;  %s6753_s30 = sphi %s6884_s30, %s8203_s30   ;;  %s6749_s29 = sphi %s6882_s29, %s8202_s29   ;;  %s6745_s28 = sphi %s6880_s28, %s8201_s28   ;;  %s6741_s27 = sphi %s6878_s27, %s8200_s27  }
  0x18   : > { %s464_s19 = sshll.u32 %s6755_s0, 4  ;;  %p5630_p0 = scmp.ge.s32.totalorder %s6753_s30, 1  ;;  %s465_s19 = int_to_ptr.vmem [resolvable:$true] %s464_s19 }
  0x19   : > { %p8147_p1 = scmp.eq.s32.totalorder %s6899_s1, 0  ;;  %p452_p2 = scmp.lt.s32.totalorder %s6753_s30, 3 }
  0x1a   : > { %s6756_s21 = smov [#allocation8]   ;;  %s6757_s23 = smov [#allocation11]  }
  0x1b   : > { %p6904_p3 = pnand %p5630_p0, %p452_p2  ;;  %s491_s22 = sshll.u32 %s6756_s21, 4  ;;  %s492_s22 = int_to_ptr.vmem [resolvable:$true] %s491_s22 }
  0x1c   : > { %s517_s24 = sshll.u32 %s6757_s23, 4  ;;  %s6448_s26 = scalar_lea.vmem %s465_s19, 256  ;;  %s6917_s24 = int_to_ptr.vmem [resolvable:$true] %s517_s24 }
  0x1d   : > { %s8164_s20 = scalar_select %p6904_p3, 1, 0 }
  0x1e   : > { %p6221_p5 = pneg %p6904_p3  ;;  %p6449_p8 = scmp.ne.s32.totalorder %s465_s19, %s6448_s26 }
  0x1f   : > { %p6456_p11 = scmp.lt.s32.totalorder %s465_s19, %s465_s19  ;;  %p6457_p12 = scmp.lt.s32.totalorder %s6448_s26, %s6448_s26 }
  0x20   : > { %p6913_p6 = pnand %p6221_p5, %p8147_p1 }
  0x21   : > { %p6458_p13 = por %p6457_p12, %p6456_p11 }
  0x22   : > { %p6921_p7 = pneg %p6913_p6 }
  0x24   : > { %p6451_p9 = pnand %p6449_p8, %p6921_p7 }
  0x26   : > { %p6452_p10 = pneg %p6451_p9 }
  0x28   : > { %p6459_p0 = pnand %p6458_p13, %p6452_p10 }
  0x2a   : > { %6462 = shalt.err (!%p6459_p0)
}
  0x2b   : > { %s8145_s0 = smov 128   ;;  %s8146_s21 = smov 8  }
  0x2c   : > { %s8167_s17 = sld [smem:[#allocation25_spill]]  ;;  %s6474_s15 = scalar_lea.vmem %s492_s22, 16 }
  0x2d   : > { %p6475_p2 = scmp.ne.s32.totalorder %s492_s22, %s6474_s15  ;;  %s6481_s26 = scalar_lea.vmem %s492_s22, 32 }
  0x2e   : > { %p6482_p9 = scmp.lt.s32.totalorder %s492_s22, %s492_s22  ;;  %p6483_p10 = scmp.lt.s32.totalorder %s6481_s26, %s6474_s15 }
  0x2f   : > { %p6477_p5 = pnand %p6475_p2, %p6921_p7 }
  0x30   : > { %p6484_p11 = por %p6483_p10, %p6482_p9 }
  0x31   : > { %p6478_p8 = pneg %p6477_p5 }
  0x32   : > { %6224 = dma.hbm_to_vmem [thread:$0]  (!%p6913_p6), %s8167_s17, 256, %s465_s19, [#allocation6], %s8145_s0, %s8145_s0, %s8146_s21  }
  0x33   : > { %p6485_p12 = pnand %p6484_p11, %p6478_p8 }
  0x35   : > { %6488 = shalt.err (!%p6485_p12)
}
  0x36   : > { %s8168_s3 = sld [smem:[#allocation27_spill]]  ;;  %s6500_s17 = scalar_lea.vmem %s6917_s24, 2048 }
  0x37   : > { %p6501_p13 = scmp.ne.s32.totalorder %s6917_s24, %s6500_s17  ;;  %p6508_p5 = scmp.lt.s32.totalorder %s6917_s24, %s6917_s24 }
  0x38   : > { %p6509_p9 = scmp.lt.s32.totalorder %s6500_s17, %s6500_s17 }
  0x39   : > { %p6503_p0 = pnand %p6501_p13, %p6921_p7 }
  0x3a   : > { %p6510_p8 = por %p6509_p9, %p6508_p5 }
  0x3b   : > { %p6504_p2 = pneg %p6503_p0 }
  0x3c   : > { %6230 = dma.hbm_to_vmem [thread:$0]  (!%p6913_p6), %s8168_s3, 16, %s492_s22, [#allocation9]  }
  0x3d   : > { %p6511_p10 = pnand %p6510_p8, %p6504_p2 }
  0x3f   : > { %6514 = shalt.err (!%p6511_p10)
}
  0x40   : > { %s8169_s6 = sld [smem:[#allocation29_spill]]  ;;  %s6760_s15 = smov [#allocation14]  }
  0x41   : > { %s555_s18 = sshll.u32 %s6760_s15, 4  ;;  %s6761_s19 = smov [#allocation7]   ;;  %s556_s18 = int_to_ptr.vmem [resolvable:$true] %s555_s18 }
  0x42   : > { %s477_s22 = sshll.u32 %s6761_s19, 4  ;;  %s6526_s23 = scalar_lea.vmem %s556_s18, 4096  ;;  %s478_s22 = int_to_ptr.vmem [resolvable:$true] %s477_s22 }
  0x43   : > { %p6527_p11 = scmp.ne.s32.totalorder %s556_s18, %s6526_s23  ;;  %p6534_p0 = scmp.lt.s32.totalorder %s556_s18, %s556_s18 }
  0x44   : > { %p6535_p2 = scmp.lt.s32.totalorder %s6526_s23, %s6526_s23 }
  0x45   : > { %p6529_p12 = pnand %p6527_p11, %p6921_p7 }
  0x46   : > { %6236 = dma.hbm_to_vmem [thread:$0]  (!%p6913_p6), %s8169_s6, 2048, %s6917_s24, [#allocation12], %s8145_s0, %s8145_s0, %s8146_s21  }
  0x47   : > { %p6530_p13 = pneg %p6529_p12  ;;  %p6536_p5 = por %p6535_p2, %p6534_p0 }
  0x49   : > { %p6537_p9 = pnand %p6536_p5, %p6530_p13 }
  0x4b   : > { %6540 = shalt.err (!%p6537_p9)
}
  0x4c   : > { %s8170_s12 = sld [smem:[#allocation31_spill]]  ;;  %s6552_s17 = scalar_lea.vmem %s478_s22, 1024 }
  0x4d   : > { %p6553_p8 = scmp.ne.s32.totalorder %s478_s22, %s6552_s17  ;;  %p6560_p12 = scmp.lt.s32.totalorder %s478_s22, %s478_s22 }
  0x4e   : > { %p6561_p0 = scmp.lt.s32.totalorder %s6552_s17, %s6552_s17 }
  0x4f   : > { %p6555_p10 = pnand %p6553_p8, %p6921_p7 }
  0x50   : > { %p6562_p13 = por %p6561_p0, %p6560_p12 }
  0x51   : > { %p6556_p11 = pneg %p6555_p10 }
  0x52   : > { %6242 = dma.hbm_to_vmem [thread:$0]  (!%p6913_p6), %s8170_s12, 4096, %s556_s18, [#allocation15], %s8145_s0, %s8145_s0, %s8146_s21  }
  0x53   : > { %p6563_p2 = pnand %p6562_p13, %p6556_p11 }
  0x55   : > { %6566 = shalt.err (!%p6563_p2)
}
  0x56   : > { %s8171_s15 = sld [smem:[#allocation26_spill]]  ;;  %s6762_s18 = smov [#allocation10]  }
  0x57   : > { %s501_s19 = sshll.u32 %s6762_s18, 4  ;;  %s502_s19 = int_to_ptr.vmem [resolvable:$true] %s501_s19 }
  0x58   : > { %s6578_s23 = scalar_lea.vmem %s502_s19, 6144  ;;  %p6586_p10 = scmp.lt.s32.totalorder %s502_s19, %s502_s19 }
  0x59   : > { %p6579_p5 = scmp.ne.s32.totalorder %s502_s19, %s6578_s23  ;;  %p6587_p11 = scmp.lt.s32.totalorder %s6578_s23, %s6578_s23 }
  0x5b   : > { %p6581_p9 = pnand %p6579_p5, %p6921_p7  ;;  %p6588_p12 = por %p6587_p11, %p6586_p10 }
  0x5c   : > { %6227 = dma.hbm_to_vmem [thread:$0]  (!%p6913_p6), %s8171_s15, 1024, %s478_s22, [#allocation6], %s8145_s0, %s8145_s0, %s8146_s21  }
  0x5d   : > { %p6582_p8 = pneg %p6581_p9 }
  0x5f   : > { %p6589_p0 = pnand %p6588_p12, %p6582_p8 }
  0x61   : > { %6592 = shalt.err (!%p6589_p0)
}
  0x62   : > { %s6763_s24 = smov 384   ;;  %s6764_s26 = smov 24  }
  0x63   : > { %s8172_s4 = sld [smem:[#allocation28_spill]]  ;;  %s6765_s13 = smov [#allocation13]  }
  0x64   : > { %s539_s14 = sshll.u32 %s6765_s13, 4  ;;  %s540_s14 = int_to_ptr.vmem [resolvable:$true] %s539_s14 }
  0x65   : > { %s6604_s15 = scalar_lea.vmem %s540_s14, 4096  ;;  %p6612_p9 = scmp.lt.s32.totalorder %s540_s14, %s540_s14 }
  0x66   : > { %p6605_p13 = scmp.ne.s32.totalorder %s540_s14, %s6604_s15  ;;  %p6613_p8 = scmp.lt.s32.totalorder %s6604_s15, %s6604_s15 }
  0x68   : > { %p6607_p2 = pnand %p6605_p13, %p6921_p7  ;;  %p6614_p10 = por %p6613_p8, %p6612_p9 }
  0x69   : > { %6233 = dma.hbm_to_vmem [thread:$0]  (!%p6913_p6), %s8172_s4, 6144, %s502_s19, [#allocation9], %s6763_s24, %s6763_s24, %s6764_s26  }
  0x6a   : > { %p6608_p5 = pneg %p6607_p2 }
  0x6c   : > { %p6615_p11 = pnand %p6614_p10, %p6608_p5 }
  0x6e   : > { %6618 = shalt.err (!%p6615_p11)
}
  0x6f   : > { %s6766_s18 = smov 256   ;;  %s6767_s23 = smov 16  }
  0x70   : > { %s8173_s10 = sld [smem:[#allocation30_spill]]  ;;  %s6768_s24 = smov [#allocation16]  }
  0x71   : > { %s577_s26 = sshll.u32 %s6768_s24, 4  ;;  %s578_s26 = int_to_ptr.vmem [resolvable:$true] %s577_s26 }
  0x72   : > { %s6630_s22 = scalar_lea.vmem %s578_s26, 2048  ;;  %p6638_p2 = scmp.lt.s32.totalorder %s578_s26, %s578_s26 }
  0x73   : > { %p6631_p12 = scmp.ne.s32.totalorder %s578_s26, %s6630_s22  ;;  %p6639_p5 = scmp.lt.s32.totalorder %s6630_s22, %s6630_s22 }
  0x75   : > { %p6633_p0 = pnand %p6631_p12, %p6921_p7  ;;  %p6640_p9 = por %p6639_p5, %p6638_p2 }
  0x76   : > { %6239 = dma.hbm_to_vmem [thread:$0]  (!%p6913_p6), %s8173_s10, 4096, %s540_s14, [#allocation12], %s6766_s18, %s6766_s18, %s6767_s23  }
  0x77   : > { %p6634_p13 = pneg %p6633_p0 }
  0x79   : > { %p6641_p8 = pnand %p6640_p9, %p6634_p13 }
  0x7b   : > { %6644 = shalt.err (!%p6641_p8)
}
  0x7c   : > { %6245 = dma.hbm_to_vmem [thread:$0]  (!%p6913_p6), %s8140_s16, 2048, %s578_s26, [#allocation15], %s8145_s0, %s8145_s0, %s8146_s21  }
  0x7d   : > { %s5629_s2 = sadd.s32 4294967294, %s6753_s30   ;;  %s7003_s25 = sadd.s32 1, %s6753_s30  }
  0x7e   : > { %s42_s15 = ssub.s32 %s6753_s30, %s7003_s25  ;;  %s45_s18 = sadd.s32 1, %s6749_s29 }
  0x7f   : > { %p43_p7 = scmp.eq.s32.totalorder %s42_s15, 0  ;;  %p52_p10 = scmp.ne.s32.totalorder %s6749_s29, %s6745_s28 }
  0x80   : > { %p53_p11 = scmp.eq.s32.totalorder %s6753_s30, 0  ;;  %p58_p12 = scmp.ne.s32.totalorder %s6745_s28, %s6741_s27 }
  0x81   : > { %s7014_s23 = scalar_select %p43_p7, %s6749_s29, %s45_s18  }
  0x82   : > { %p7016_p0 = por %p53_p11, %p52_p10  ;;  %p7022_p6 = por %p8147_p1, %p58_p12 }
  0x83   : > { %p439_p13 = scmp.eq.s32.totalorder %s6899_s1, 1  ;;  %p445_p2 = scmp.eq.s32.totalorder %s5629_s2, 1 }
  0x84   : > { %s8175_s19 = scalar_select %p7022_p6, 1, 0 }
  0x85   : > { %p6262_p5 = scmp.lt.s32.totalorder %s6753_s30, 2  ;;  %s594_s24 = sand.u32 1, %s6749_s29  }
  0x86   : > { %p7029_p9 = por %p439_p13, %p52_p10  ;;  %p7033_p8 = por %p445_p2, %p58_p12 }
  0x87   : > { %s5640_s13 = sshll.u32 %s594_s24, 4  ;;  %s5781_s14 = sshll.u32 %s6753_s30, 8 }
  0x88   : > { %s8176_s26 = scalar_select %p7029_p9, 1, 0 }
  0x89   : > { %s8177_s22 = scalar_select %p7033_p8, 1, 0 }
  0x8a   : > { %s8178_s0 = sld [smem:[#allocation24_spill]]  ;;  %s598_s2 = scalar_lea.vmem [#allocation2], %s5640_s13 }
  0x8b   : > { %s605_s3 = sshll.u32 %s598_s2, 4  ;;  %p7047_p7 = pnand %p6262_p5, %p7016_p0  ;;  %s7043_s3 = int_to_ptr.vmem [resolvable:$true] %s605_s3 }
  0x8c   : > { %s7051_s6 = scalar_lea.sflag [#allocation3], %s594_s24 }
  0x8d   : > { %p6647_p11 = pneg %p7047_p7 }
  0x90   : > { %s7041_s21 = scalar_lea.hbm %s8178_s0, %s5781_s14  ;;  %s6650_s13 = scalar_lea.hbm %s8178_s0, 512 }
  0x91   : > { %s6645_s10 = scalar_lea.hbm %s7041_s21, 256  ;;  %p6651_p0 = scmp.lt.s32.totalorder %s7041_s21, %s8178_s0 }
  0x92   : > { %p6646_p10 = scmp.ne.s32.totalorder %s7041_s21, %s6645_s10  ;;  %p6652_p2 = scmp.lt.s32.totalorder %s6650_s13, %s6645_s10 }
  0x94   : > { %p6648_p12 = pnand %p6647_p11, %p6646_p10  ;;  %p6653_p5 = por %p6652_p2, %p6651_p0 }
  0x96   : > { %p6649_p13 = pneg %p6648_p12 }
  0x98   : > { %p6654_p4 = pnand %p6653_p5, %p6649_p13 }
  0x9a   : > { %6657 = shalt.err (!%p6654_p4)
}
  0x9b   : > { %s6658_s17 = scalar_lea.vmem %s7043_s3, 256  ;;  %s6769_s24 = smov [#allocation2]  }
  0x9c   : > { %p6659_p1 = scmp.ne.s32.totalorder %s7043_s3, %s6658_s17  ;;  %s6663_s12 = sshll.u32 %s6769_s24, 4  ;;  %s6664_s12 = int_to_ptr.vmem [resolvable:$false] %s6663_s12 }
  0x9d   : > { %s6665_s14 = scalar_lea.vmem %s6664_s12, 512  ;;  %p6666_p12 = scmp.lt.s32.totalorder %s7043_s3, %s6664_s12 }
  0x9e   : > { %p6661_p8 = pnand %p6659_p1, %p6647_p11  ;;  %p6667_p9 = scmp.lt.s32.totalorder %s6665_s14, %s6658_s17 }
  0xa0   : > { %p6662_p10 = pneg %p6661_p8  ;;  %p6668_p6 = por %p6667_p9, %p6666_p12 }
  0xa2   : > { %p6669_p3 = pnand %p6668_p6, %p6662_p10 }
  0xa4   : > { %6672 = shalt.err (!%p6669_p3)
}
  0xa5   : > { %s8180_s10 = smov 8   ;;  %s8181_s15 = smov 128  }
  0xa6   : > { %6249 = dma.hbm_to_vmem [thread:$0]  (!%p7047_p7), %s7041_s21, 256, %s7043_s3, %s7051_s6, %s8181_s15, %s8181_s15, %s8180_s10  }
  0xa7   : > { %p8182_p1 = scmp.ne.s32.totalorder %s8164_s20, 0 }
  0xa8   : > { %s7078_s13 = sand.u32 (!%p8182_p1), 1, %s6745_s28   ;;  %p8183_p3 = scmp.ne.s32.totalorder (!%p8182_p1), %s8175_s19, 0 }
  0xa9   : > { %617 = sbr.rel (%p8182_p1) target bundleno = 3112 (0xc28), region = 92  ;;  %s5644_s12 = sshll.u32 (!%p8182_p1), %s7078_s13, 4 }
  0xaa   : > { %s620_s18 = scalar_lea.sflag (!%p8182_p1), [#allocation3], %s7078_s13  ;;  %s7084_s4 = scalar_lea.vmem (!%p8182_p1), [#allocation2], %s5644_s12 }
  0xae   : > { %6716 = dma.done.wait (%p8183_p3), %s620_s18, 256  }
  0xaf   : > { %6718 = vsyncadd (%p8183_p3), %s620_s18, 4294967040  ;;  %p8184_p4 = scmp.eq.s32.totalorder %s6899_s1, 0 }
  0xb1   : > { %6720 = dma.done.wait (%p8184_p4), [#allocation6], 1280   ;;  %p8185_p6 = pmov %p8184_p4 }
  0xb2   : > { %p8186_p9 = pmov %p8184_p4 }
  0xb3   : > { %6722 = vsyncadd (%p8185_p6), [#allocation6], 4294966016 }
  0xb4   : > { %6724 = dma.done.wait (%p8186_p9), [#allocation9], 6160   ;;  %p8187_p8 = pmov %p8184_p4 }
  0xb5   : > { %p8188_p7 = pmov %p8184_p4 }
  0xb6   : > { %6726 = vsyncadd (%p8187_p8), [#allocation9], 4294961136 }
  0xb7   : > { %6728 = dma.done.wait (%p8188_p7), [#allocation12], 6144   ;;  %p8189_p11 = pmov %p8184_p4 }
  0xb8   : > { %p8190_p13 = pmov %p8184_p4 }
  0xb9   : > { %6730 = vsyncadd (%p8189_p11), [#allocation12], 4294961152 }
  0xba   : > { %6732 = dma.done.wait (%p8190_p13), [#allocation15], 6144   ;;  %p8191_p0 = pmov %p8184_p4 }
  0xbb   : > { %v721_v0 = vld [vmem:[#allocation7 + $0x38] sm:$0xff]  ;;  %v720_v1 = vld [vmem:[#allocation7 + $0x30] sm:$0xff]  ;;  %v719_v2 = vld [vmem:[#allocation7 + $0x28] sm:$0xff]  ;;  %vm729_vm0 = vcmask 523264   ;;  %v6770_v62 = vmov 0.0   ;;  %s6771_s20 = smov 96  }
  0xbc   : > { %6734 = vsyncadd (%p8191_p0), [#allocation15], 4294961152  ;;  %5949 = vmatprep.subr.mxu0 %v721_v0  ;;  %v708_v3 = vld [vmem:[%s7084_s4] sm:$0xff]  ;;  %v717_v10 = vld [vmem:[#allocation7 + $0x18] sm:$0xff]  ;;  %940 = vmatprep.mubr.f32.mxu1 %v6770_v62  ;;  %s6772_s21 = smov 112   ;;  %s6773_s19 = smov 80  }
  0xbd   : > { %5950 = vmatpush3.msra.mxu0 %v721_v0  ;;  %v710_v4 = vld [vmem:[#allocation5] sm:$0xff]  ;;  %v718_v5 = vld [vmem:[#allocation7 + $0x20] sm:$0xff]  ;;  %v715_v15 = vld [vmem:[#allocation7 + $0x8] sm:$0xff]  ;;  %s6774_s2 = smov 48   ;;  %s6775_s17 = smov 64   ;;  %vm2808_vm1 = vcmask 130048  }
  0xbe   : > { %5951 = vmatprep.subr.mxu0 %v720_v1  ;;  %v712_v6 = vadd.f32 %v710_v4, %v708_v3  ;;  %v857_v7 = vld [vmem:[#allocation10 + $0x170] sm:$0xff]  ;;  %v856_v8 = vld [vmem:[#allocation10 + $0x168] sm:$0xff]  ;;  %v854_v9 = vld [vmem:[#allocation10 + $0x158] sm:$0xff]  ;;  %v861_v4 = vlaneseq  ;;  %s6776_s24 = smov 16   ;;  %s6777_s14 = smov 32   ;;  %vm4931_vm2 = vcmask 261120  }
  0xbf   : > { %5952 = vmatpush3.msra.mxu0 %v720_v1  ;;  %876 = vmatprep.subr.mxu1 %v857_v7  ;;  %v853_v11 = vld [vmem:[#allocation10 + $0x150] sm:$0xff]  ;;  %v851_v12 = vld [vmem:[#allocation10 + $0x140] sm:$0xff]  ;;  %v850_v14 = vld [vmem:[#allocation10 + $0x138] sm:$0xff]  ;;  %vm4934_vm3 = vcmask 392192   ;;  %vm4939_vm4 = vcmask 654336   ;;  %vm4942_vm5 = vcmask 785408  }
  0xc0   : > { %5953 = vmatprep.subr.mxu0 %v719_v2  ;;  %5965 = vmatprep.mubr.msk.f32.mxu0 %vm729_vm0, %v712_v6  ;;  %v716_v13 = vld [vmem:[#allocation7 + $0x10] sm:$0xff]  ;;  %v709_v17 = vld [vmem:[%s7084_s4 + $0x8] sm:$0xff]  ;;  %v714_v21 = vld [vmem:[#allocation7] sm:$0xff]  ;;  %vm4945_vm6 = vcmask 916480   ;;  %s8193_s10 = sld [smem:[#allocation33_spill]]  ;;  %s5467_s15 = scalar_lea.sflag [#allocation4], %s7078_s13 }
  0xc1   : > { %5954 = vmatpush3.msra.mxu0 %v719_v2  ;;  %877 = vmatpush1.msra.mxu1 %v856_v8  ;;  %v848_v16 = vld [vmem:[#allocation10 + $0x128] sm:$0xff]  ;;  %v711_v18 = vld [vmem:[#allocation5 + $0x8] sm:$0xff]  ;;  %v847_v19 = vld [vmem:[#allocation10 + $0x120] sm:$0xff]  ;;  %s8194_s4 = sld [smem:[#allocation34_spill]]  ;;  %p8197_p5 = scmp.ne.s32.totalorder %s8176_s26, 0 }
  0xc2   : > { %5955 = vmatprep.subr.mxu0 %v718_v5  ;;  %878 = vmatprep.subr.mxu1 %v854_v9  ;;  %v845_v20 = vld [vmem:[#allocation10 + $0x110] sm:$0xff]  ;;  %v844_v22 = vld [vmem:[#allocation10 + $0x108] sm:$0xff]  ;;  %v713_v23 = vadd.f32 %v711_v18, %v709_v17  ;;  %v842_v24 = vld [vmem:[#allocation10 + $0xf8] sm:$0xff] }
  0xc3   : > { %5956 = vmatpush3.msra.mxu0 %v718_v5  ;;  %879 = vmatpush1.msra.mxu1 %v853_v11  ;;  %v858_v25 = vld [vmem:[#allocation10 + $0x178] sm:$0xff]  ;;  %v841_v26 = vld [vmem:[#allocation10 + $0xf0] sm:$0xff]  ;;  %v855_v27 = vld [vmem:[#allocation10 + $0x160] sm:$0xff]  ;;  %v7112_v5 = vshrl.u32 %v861_v4, 7 }
  0xc4   : > { %5957 = vmatprep.subr.mxu0 %v717_v10  ;;  %880 = vmatprep.subr.mxu1 %v851_v12  ;;  %v839_v28 = vld [vmem:[#allocation10 + $0xe0] sm:$0xff]  ;;  %v838_v29 = vld [vmem:[#allocation10 + $0xd8] sm:$0xff]  ;;  %v852_v30 = vld [vmem:[#allocation10 + $0x148] sm:$0xff] }
  0xc5   : > { %5958 = vmatpush3.msra.mxu0 %v717_v10  ;;  %881 = vmatpush1.msra.mxu1 %v850_v14  ;;  %v836_v31 = vld [vmem:[#allocation10 + $0xc8] sm:$0xff]  ;;  %v835_v32 = vld [vmem:[#allocation10 + $0xc0] sm:$0xff]  ;;  %v849_v33 = vld [vmem:[#allocation10 + $0x130] sm:$0xff]  ;;  %v863_v6 = vsub.s32 0, %v7112_v5  ;;  %v867_v9 = vsub.s32 1, %v7112_v5 }
  0xc6   : > { %5959 = vmatprep.subr.mxu0 %v716_v13  ;;  %882 = vmatprep.subr.mxu1 %v848_v16  ;;  %v833_v34 = vld [vmem:[#allocation10 + $0xb0] sm:$0xff]  ;;  %v832_v35 = vld [vmem:[#allocation10 + $0xa8] sm:$0xff]  ;;  %v846_v36 = vld [vmem:[#allocation10 + $0x118] sm:$0xff] }
  0xc7   : > { %5960 = vmatpush3.msra.mxu0 %v716_v13  ;;  %883 = vmatpush1.msra.mxu1 %v847_v19  ;;  %v830_v37 = vld [vmem:[#allocation10 + $0x98] sm:$0xff]  ;;  %v829_v38 = vld [vmem:[#allocation10 + $0x90] sm:$0xff]  ;;  %v843_v39 = vld [vmem:[#allocation10 + $0x100] sm:$0xff]  ;;  %v871_v19 = vsub.s32 2, %v7112_v5 }
  0xc8   : > { %5961 = vmatprep.subr.mxu0 %v715_v15  ;;  %884 = vmatprep.subr.mxu1 %v845_v20  ;;  %v827_v40 = vld [vmem:[#allocation10 + $0x80] sm:$0xff]  ;;  %v826_v41 = vld [vmem:[#allocation10 + $0x78] sm:$0xff]  ;;  %v840_v42 = vld [vmem:[#allocation10 + $0xe8] sm:$0xff] }
  0xc9   : > { %5962 = vmatpush3.msra.mxu0 %v715_v15  ;;  %885 = vmatpush1.msra.mxu1 %v844_v22  ;;  %v824_v43 = vld [vmem:[#allocation10 + $0x68] sm:$0xff]  ;;  %v823_v44 = vld [vmem:[#allocation10 + $0x60] sm:$0xff]  ;;  %v837_v45 = vld [vmem:[#allocation10 + $0xd0] sm:$0xff] }
  0xca   : > { %5963 = vmatprep.subr.mxu0 %v714_v21  ;;  %886 = vmatprep.subr.mxu1 %v842_v24  ;;  %v821_v46 = vld [vmem:[#allocation10 + $0x50] sm:$0xff]  ;;  %v820_v47 = vld [vmem:[#allocation10 + $0x48] sm:$0xff]  ;;  %v834_v48 = vld [vmem:[#allocation10 + $0xb8] sm:$0xff] }
  0xcb   : > { %5964 = vmatpush3.msra.mxu0 %v714_v21  ;;  %887 = vmatpush1.msra.mxu1 %v841_v26  ;;  %v818_v49 = vld [vmem:[#allocation10 + $0x38] sm:$0xff]  ;;  %v831_v50 = vld [vmem:[#allocation10 + $0xa0] sm:$0xff]  ;;  %v828_v51 = vld [vmem:[#allocation10 + $0x88] sm:$0xff] }
  0xcc   : > { %5966 = vmatmul.mubr.msk.f32.vlgmr.msra.gmra.mxu0 %vm729_vm0, %v713_v23  ;;  %5968 = vmatprep.subr.mxu0 %v858_v25  ;;  %v825_v52 = vld [vmem:[#allocation10 + $0x70] sm:$0xff]  ;;  %v822_v53 = vld [vmem:[#allocation10 + $0x58] sm:$0xff]  ;;  %v819_v55 = vld [vmem:[#allocation10 + $0x40] sm:$0xff] }
  0xcd   : > { %5969 = vmatpush3.msra.mxu0 %v858_v25  ;;  %888 = vmatprep.subr.mxu1 %v839_v28  ;;  %v817_v54 = vld [vmem:[#allocation10 + $0x30] sm:$0xff]  ;;  %v815_v56 = vld [vmem:[#allocation10 + $0x20] sm:$0xff]  ;;  %v814_v57 = vld [vmem:[#allocation10 + $0x18] sm:$0xff]  ;;  %v6778_v25 = vmov 1983009808  }
  0xce   : > { %5970 = vmatprep.subr.mxu0 %v855_v27  ;;  %889 = vmatpush1.msra.mxu1 %v838_v29  ;;  %v816_v58 = vld [vmem:[#allocation10 + $0x28] sm:$0xff]  ;;  %v811_v60 = vld [vmem:[#allocation10] sm:$0xff]  ;;  %v813_v61 = vld [vmem:[#allocation10 + $0x10] sm:$0xff]  ;;  %v1163_v26 = vunpack.c.l.s4 %v6778_v25 }
  0xcf   : > { %5971 = vmatpush3.msra.mxu0 %v855_v27  ;;  %890 = vmatprep.subr.mxu1 %v836_v31  ;;  %v812_v59 = vld [vmem:[#allocation10 + $0x8] sm:$0xff]  ;;  %v5654_v0 = vld [vmem:[#allocation8] ss:$0 sm:$0xff]  ;;  %v6779_v27 = vmov 1934713408  }
  0xd0   : > { %5972 = vmatprep.subr.mxu0 %v852_v30  ;;  %891 = vmatpush1.msra.mxu1 %v835_v32  ;;  %v859_v7 = vld [vmem:[%s8129_s5] sm:$0x7]  ;;  %v1227_v28 = vunpack.c.l.s4 %v6779_v27  ;;  %v1164_v29 = vunpack.c.0.s8 %v1163_v26 }
  0xd1   : > { %5973 = vmatpush3.msra.mxu0 %v852_v30  ;;  %892 = vmatprep.subr.mxu1 %v833_v34  ;;  %v864_v8 = vrot.slane %v859_v7, %v863_v6  ;;  %v868_v12 = vrot.slane %v859_v7, %v867_v9  ;;  %v872_v20 = vrot.slane %v859_v7, %v871_v19 }
  0xd2   : > { %5974 = vmatprep.subr.mxu0 %v849_v33  ;;  %893 = vmatpush1.msra.mxu1 %v832_v35  ;;  %v1228_v32 = vunpack.c.0.s8 %v1227_v28 }
  0xd3   : > { %5975 = vmatpush3.msra.mxu0 %v849_v33  ;;  %894 = vmatprep.subr.mxu1 %v830_v37  ;;  %v7213_v33 = vsub.s32 %v1164_v29, %v7112_v5 }
  0xd4   : > { %5976 = vmatprep.subr.mxu0 %v846_v36  ;;  %895 = vmatpush1.msra.mxu1 %v829_v38 }
  0xd5   : > { %5977 = vmatpush3.msra.mxu0 %v846_v36  ;;  %896 = vmatprep.subr.mxu1 %v827_v40  ;;  %v7218_v40 = vsub.s32 %v1228_v32, %v7112_v5 }
  0xd6   : > { %5978 = vmatprep.subr.mxu0 %v843_v39  ;;  %897 = vmatpush1.msra.mxu1 %v826_v41 }
  0xd7   : > { %5979 = vmatpush3.msra.mxu0 %v843_v39  ;;  %898 = vmatprep.subr.mxu1 %v824_v43 }
  0xd8   : > { %5980 = vmatprep.subr.mxu0 %v840_v42  ;;  %899 = vmatpush1.msra.mxu1 %v823_v44 }
  0xd9   : > { %5981 = vmatpush3.msra.mxu0 %v840_v42  ;;  %900 = vmatprep.subr.mxu1 %v821_v46 }
  0xda   : > { %5982 = vmatprep.subr.mxu0 %v837_v45  ;;  %901 = vmatpush1.msra.mxu1 %v820_v47 }
  0xdb   : > { %5983 = vmatpush3.msra.mxu0 %v837_v45  ;;  %902 = vmatprep.subr.mxu1 %v818_v49 }
  0xdc   : > { %5984 = vmatprep.subr.mxu0 %v834_v48  ;;  %903 = vmatpush1.msra.mxu1 %v817_v54 }
  0xdd   : > { %5985 = vmatpush3.msra.mxu0 %v834_v48  ;;  %904 = vmatprep.subr.mxu1 %v815_v56 }
  0xde   : > { %5986 = vmatprep.subr.mxu0 %v831_v50  ;;  %905 = vmatpush1.msra.mxu1 %v814_v57 }
  0xdf   : > { %5987 = vmatpush3.msra.mxu0 %v831_v50  ;;  %906 = vmatprep.subr.mxu1 %v812_v59 }
  0xe0   : > { %5988 = vmatprep.subr.mxu0 %v828_v51  ;;  %907 = vmatpush1.msra.mxu1 %v811_v60 }
  0xe1   : > { %5989 = vmatpush3.msra.mxu0 %v828_v51 }
  0xe2   : > { %5990 = vmatprep.subr.mxu0 %v825_v52 }
  0xe3   : > { %5991 = vmatpush3.msra.mxu0 %v825_v52 }
  0xe4   : > { %5992 = vmatprep.subr.mxu0 %v822_v53 }
  0xe5   : > { %5993 = vmatpush3.msra.mxu0 %v822_v53 }
  0xe6   : > { %5994 = vmatprep.subr.mxu0 %v819_v55 }
  0xe7   : > { %5995 = vmatpush3.msra.mxu0 %v819_v55 }
  0xe8   : > { %5996 = vmatprep.subr.mxu0 %v816_v58 }
  0xe9   : > { %5997 = vmatpush3.msra.mxu0 %v816_v58 }
  0xea   : > { %5998 = vmatprep.subr.mxu0 %v813_v61 }
  0xeb   : > { %5999 = vmatpush3.msra.mxu0 %v813_v61 }
 0x18c   : > { %v5967_v63 = vpop.f32.mrf.mxu0 }
 0x18d   : > { %v808_v3 = vadd.f32 %v5967_v63, %v5654_v0 }
 0x18e   : > { %v802_v1 = vpop.f32.mrf.mxu0 }
 0x18f   : > { %v803_v2 = vadd.f32 %v5654_v0, %v802_v1 }
 0x191   : > { %941 = vmatmul.mubr.f32.vlgmr.msra.gmra.mxu1 %v803_v2  ;;  %6000 = vmatprep.mubr.f32.mxu0 %v803_v2 }
 0x192   : > { %6001 = vmatmul.mubr.f32.vlgmr.msra.gmra.mxu0 %v808_v3  ;;  %946 = vmatprep.mubr.f32.mxu1 %v6770_v62 }
 0x195   : > { %947 = vmatmul.mubr.f32.gmra.mxu1 %v808_v3 }
 0x251   : > { %v942_v10 = vpop.f32.mrf.mxu1 }
 0x252   : > { %v7121_v11 = vadd.f32 %v942_v10, %v864_v8  ;;  %v6002_v21 = vpop.f32.mrf.mxu0 }
 0x253   : > { %v944_v13 = vpop.f32.mrf.mxu1  ;;  %v7188_v22 = vadd.f32 %v6002_v21, %v872_v20 }
 0x254   : > { %1036 = vrot.lane.b32.xlu1 %v7121_v11, %s6771_s20  ;;  %1030 = vrot.lane.b32.xlu0 %v7121_v11, %s6772_s21  ;;  %v7129_v14 = vadd.f32 %v944_v13, %v868_v12  ;;  %v1019_v23 = vpop.f32.mrf.mxu0 }
 0x255   : > { %v948_v15 = vpop.f32.mrf.mxu1  ;;  %v7194_v24 = vadd.f32 %v1019_v23, %v872_v20 }
 0x256   : > { %v7139_v16 = vadd.f32 %v948_v15, %v864_v8 }
 0x257   : > { %v950_v17 = vpop.f32.mrf.mxu1 }
 0x258   : > { %1074 = vrot.lane.b32.xlu1 %v7129_v14, %s6772_s21  ;;  %1042 = vrot.lane.b32.xlu0 %v7121_v11, %s6773_s19  ;;  %v7145_v18 = vadd.f32 %v950_v17, %v868_v12 }
 0x25c   : > { %1086 = vrot.lane.b32.xlu1 %v7129_v14, %s6773_s19  ;;  %1080 = vrot.lane.b32.xlu0 %v7129_v14, %s6771_s20 }
 0x260   : > { %1032 = vrot.lane.b32.xlu1 %v7139_v16, %s6772_s21  ;;  %1038 = vrot.lane.b32.xlu0 %v7139_v16, %s6771_s20 }
 0x264   : > { %1044 = vrot.lane.b32.xlu1 %v7139_v16, %s6773_s19  ;;  %1076 = vrot.lane.b32.xlu0 %v7145_v18, %s6772_s21 }
 0x268   : > { %1088 = vrot.lane.b32.xlu1 %v7145_v18, %s6773_s19  ;;  %1082 = vrot.lane.b32.xlu0 %v7145_v18, %s6771_s20 }
 0x26c   : > { %1098 = vrot.lane.b32.xlu1 %v7129_v14, %s6774_s2  ;;  %1092 = vrot.lane.b32.xlu0 %v7129_v14, %s6775_s17 }
 0x270   : > { %1110 = vrot.lane.b32.xlu1 %v7129_v14, %s6776_s24  ;;  %1104 = vrot.lane.b32.xlu0 %v7129_v14, %s6777_s14 }
 0x274   : > { %1054 = vrot.lane.b32.xlu1 %v7121_v11, %s6774_s2  ;;  %1048 = vrot.lane.b32.xlu0 %v7121_v11, %s6775_s17 }
 0x278   : > { %1066 = vrot.lane.b32.xlu1 %v7121_v11, %s6776_s24  ;;  %1060 = vrot.lane.b32.xlu0 %v7121_v11, %s6777_s14 }
 0x27c   : > { %1100 = vrot.lane.b32.xlu1 %v7145_v18, %s6774_s2  ;;  %1094 = vrot.lane.b32.xlu0 %v7145_v18, %s6775_s17 }
 0x280   : > { %1112 = vrot.lane.b32.xlu1 %v7145_v18, %s6776_s24  ;;  %1106 = vrot.lane.b32.xlu0 %v7145_v18, %s6777_s14 }
 0x284   : > { %1056 = vrot.lane.b32.xlu1 %v7139_v16, %s6774_s2  ;;  %1050 = vrot.lane.b32.xlu0 %v7139_v16, %s6775_s17 }
 0x288   : > { %1068 = vrot.lane.b32.xlu1 %v7139_v16, %s6776_s24  ;;  %1062 = vrot.lane.b32.xlu0 %v7139_v16, %s6777_s14 }
 0x28c   : > { %1120 = vrot.lane.b32.xlu1 %v7188_v22, %s6772_s21  ;;  %1126 = vrot.lane.b32.xlu0 %v7188_v22, %s6771_s20 }
 0x290   : > { %1132 = vrot.lane.b32.xlu1 %v7188_v22, %s6773_s19  ;;  %1118 = vrot.lane.b32.xlu0 %v7194_v24, %s6772_s21 }
 0x294   : > { %1124 = vrot.lane.b32.xlu1 %v7194_v24, %s6771_s20  ;;  %1144 = vrot.lane.b32.xlu0 %v7188_v22, %s6774_s2 }
 0x298   : > { %1130 = vrot.lane.b32.xlu1 %v7194_v24, %s6773_s19 }
 0x29c   : > { %1138 = vrot.lane.b32.xlu1 %v7188_v22, %s6775_s17 }
 0x2a0   : > { %1150 = vrot.lane.b32.xlu1 %v7188_v22, %s6777_s14 }
 0x2a4   : > { %1156 = vrot.lane.b32.xlu1 %v7188_v22, %s6776_s24 }
 0x2c6   : > { %v1037_v30 = vpop.permute.xlu1 %1036  ;;  %v1031_v31 = vpop.permute.xlu0 %1030 }
 0x2c7   : > { %v1160_v34 = vcombine.low %v7121_v11, %v1037_v30  ;;  %v1161_v35 = vcombine.high %v7121_v11, %v1037_v30 }
 0x2c9   : > { %v1168_v41 = vrot.slane %v1160_v34, %v7213_v33  ;;  %v1175_v42 = vrot.slane %v1161_v35, %v7213_v33 }
 0x2ca   : > { %v1075_v36 = vpop.permute.xlu1 %1074  ;;  %v1043_v37 = vpop.permute.xlu0 %1042 }
 0x2cb   : > { %v1176_v38 = vcombine.low %v1031_v31, %v1043_v37  ;;  %v1177_v39 = vcombine.high %v1031_v31, %v1043_v37 }
 0x2cd   : > { %v1184_v43 = vrot.slane %v1176_v38, %v7213_v33  ;;  %v1191_v44 = vrot.slane %v1177_v39, %v7213_v33 }
 0x2ce   : > { %v1087_v45 = vpop.permute.xlu1 %1086  ;;  %v1081_v46 = vpop.permute.xlu0 %1080 }
 0x2cf   : > { %v1224_v47 = vcombine.low %v1168_v41, %v1184_v43  ;;  %v1225_v48 = vcombine.high %v1168_v41, %v1184_v43  ;;  %v1240_v49 = vcombine.low %v1175_v42, %v1191_v44  ;;  %v1241_v50 = vcombine.high %v1175_v42, %v1191_v44 }
 0x2d0   : > { %v1312_v51 = vcombine.low %v1075_v36, %v1087_v45  ;;  %v1313_v52 = vcombine.high %v1075_v36, %v1087_v45  ;;  %v1296_v53 = vcombine.low %v7129_v14, %v1081_v46  ;;  %v1297_v54 = vcombine.high %v7129_v14, %v1081_v46 }
 0x2d1   : > { %v1232_v55 = vrot.slane %v1224_v47, %v7218_v40  ;;  %v1239_v56 = vrot.slane %v1225_v48, %v7218_v40  ;;  %v1248_v57 = vrot.slane %v1240_v49, %v7218_v40  ;;  %v1255_v58 = vrot.slane %v1241_v50, %v7218_v40 }
 0x2d2   : > { %v1320_v59 = vrot.slane %v1312_v51, %v7213_v33  ;;  %v1327_v60 = vrot.slane %v1313_v52, %v7213_v33  ;;  %v1304_v61 = vrot.slane %v1296_v53, %v7213_v33  ;;  %v1311_v63 = vrot.slane %v1297_v54, %v7213_v33  ;;  %v1033_v0 = vpop.permute.xlu1 %1032  ;;  %v1039_v1 = vpop.permute.xlu0 %1038 }
 0x2d3   : > { %v5657_v2 = vcombine.low %v1232_v55, %v1239_v56  ;;  %v5659_v3 = vcombine.high %v1232_v55, %v1239_v56  ;;  %v5661_v4 = vcombine.low %v1248_v57, %v1255_v58  ;;  %v5663_v7 = vcombine.high %v1248_v57, %v1255_v58 }
 0x2d4   : > { %v1360_v8 = vcombine.low %v1304_v61, %v1320_v59  ;;  %v1361_v10 = vcombine.high %v1304_v61, %v1320_v59  ;;  %v1376_v11 = vcombine.low %v1311_v63, %v1327_v60  ;;  %v1377_v12 = vcombine.high %v1311_v63, %v1327_v60 }
 0x2d5   : > { %v7235_v13 = vrot.slane %v5657_v2, %v7213_v33  ;;  %v7238_v14 = vrot.slane %v5659_v3, %v7213_v33  ;;  %v7241_v15 = vrot.slane %v5661_v4, %v7213_v33  ;;  %v7244_v17 = vrot.slane %v5663_v7, %v7213_v33 }
 0x2d6   : > { %v1368_v19 = vrot.slane %v1360_v8, %v7218_v40  ;;  %v1375_v20 = vrot.slane %v1361_v10, %v7218_v40  ;;  %v1384_v21 = vrot.slane %v1376_v11, %v7218_v40  ;;  %v1391_v23 = vrot.slane %v1377_v12, %v7218_v40  ;;  %v1045_v25 = vpop.permute.xlu1 %1044  ;;  %v1077_v26 = vpop.permute.xlu0 %1076 }
 0x2d7   : > { %v1568_v27 = vcombine.low %v7139_v16, %v1039_v1  ;;  %v1569_v28 = vcombine.high %v7139_v16, %v1039_v1  ;;  %v1584_v29 = vcombine.low %v1033_v0, %v1045_v25  ;;  %v1585_v30 = vcombine.high %v1033_v0, %v1045_v25 }
 0x2d8   : > { %v5673_v31 = vcombine.low %v1368_v19, %v1375_v20  ;;  %v5675_v32 = vcombine.high %v1368_v19, %v1375_v20  ;;  %v5677_v34 = vcombine.low %v1384_v21, %v1391_v23  ;;  %v5679_v35 = vcombine.high %v1384_v21, %v1391_v23 }
 0x2d9   : > { %v1576_v36 = vrot.slane %v1568_v27, %v7213_v33  ;;  %v1583_v37 = vrot.slane %v1569_v28, %v7213_v33  ;;  %v1592_v38 = vrot.slane %v1584_v29, %v7213_v33  ;;  %v1599_v39 = vrot.slane %v1585_v30, %v7213_v33 }
 0x2da   : > { %v7257_v41 = vrot.slane %v5673_v31, %v7213_v33  ;;  %v7260_v42 = vrot.slane %v5675_v32, %v7213_v33  ;;  %v7263_v16 = vrot.slane %v5677_v34, %v7213_v33  ;;  %v7266_v43 = vrot.slane %v5679_v35, %v7213_v33  ;;  %v1089_v44 = vpop.permute.xlu1 %1088  ;;  %v1083_v45 = vpop.permute.xlu0 %1082 }
 0x2db   : > { %v1632_v46 = vcombine.low %v1576_v36, %v1592_v38  ;;  %v1633_v47 = vcombine.high %v1576_v36, %v1592_v38  ;;  %v1648_v48 = vcombine.low %v1583_v37, %v1599_v39  ;;  %v1649_v49 = vcombine.high %v1583_v37, %v1599_v39 }
 0x2dc   : > { %v1720_v50 = vcombine.low %v1077_v26, %v1089_v44  ;;  %v1721_v51 = vcombine.high %v1077_v26, %v1089_v44  ;;  %v1704_v52 = vcombine.low %v7145_v18, %v1083_v45  ;;  %v1705_v53 = vcombine.high %v7145_v18, %v1083_v45 }
 0x2dd   : > { %v1640_v54 = vrot.slane %v1632_v46, %v7218_v40  ;;  %v1647_v55 = vrot.slane %v1633_v47, %v7218_v40  ;;  %v1656_v56 = vrot.slane %v1648_v48, %v7218_v40  ;;  %v1663_v57 = vrot.slane %v1649_v49, %v7218_v40 }
 0x2de   : > { %v1728_v58 = vrot.slane %v1720_v50, %v7213_v33  ;;  %v1735_v59 = vrot.slane %v1721_v51, %v7213_v33  ;;  %v1712_v60 = vrot.slane %v1704_v52, %v7213_v33  ;;  %v1719_v61 = vrot.slane %v1705_v53, %v7213_v33  ;;  %v1099_v63 = vpop.permute.xlu1 %1098  ;;  %v1093_v0 = vpop.permute.xlu0 %1092 }
 0x2df   : > { %v5665_v1 = vcombine.low %v1640_v54, %v1647_v55  ;;  %v5667_v18 = vcombine.high %v1640_v54, %v1647_v55  ;;  %v5669_v2 = vcombine.low %v1656_v56, %v1663_v57  ;;  %v5671_v3 = vcombine.high %v1656_v56, %v1663_v57 }
 0x2e0   : > { %v1768_v4 = vcombine.low %v1712_v60, %v1728_v58  ;;  %v1769_v7 = vcombine.high %v1712_v60, %v1728_v58  ;;  %v1784_v8 = vcombine.low %v1719_v61, %v1735_v59  ;;  %v1785_v10 = vcombine.high %v1719_v61, %v1735_v59 }
 0x2e1   : > { %v7279_v11 = vrot.slane %v5665_v1, %v7213_v33  ;;  %v7282_v12 = vrot.slane %v5667_v18, %v7213_v33  ;;  %v7285_v19 = vrot.slane %v5669_v2, %v7213_v33  ;;  %v7288_v20 = vrot.slane %v5671_v3, %v7213_v33 }
 0x2e2   : > { %v1776_v21 = vrot.slane %v1768_v4, %v7218_v40  ;;  %v1783_v23 = vrot.slane %v1769_v7, %v7218_v40  ;;  %v1792_v25 = vrot.slane %v1784_v8, %v7218_v40  ;;  %v1799_v26 = vrot.slane %v1785_v10, %v7218_v40  ;;  %v1111_v27 = vpop.permute.xlu1 %1110  ;;  %v1105_v28 = vpop.permute.xlu0 %1104 }
 0x2e3   : > { %v2176_v29 = vcombine.low %v7279_v11, %v7282_v12  ;;  %v2177_v30 = vcombine.high %v7279_v11, %v7282_v12  ;;  %v2208_v31 = vcombine.low %v7285_v19, %v7288_v20  ;;  %v2209_v32 = vcombine.high %v7285_v19, %v7288_v20 }
 0x2e4   : > { %v5681_v34 = vcombine.low %v1776_v21, %v1783_v23  ;;  %v5683_v35 = vcombine.high %v1776_v21, %v1783_v23  ;;  %v5685_v36 = vcombine.low %v1792_v25, %v1799_v26  ;;  %v5687_v37 = vcombine.high %v1792_v25, %v1799_v26 }
 0x2e5   : > { %v7303_v38 = vrot.slane %v2176_v29, %v7218_v40  ;;  %v7306_v39 = vrot.slane %v2208_v31, %v7218_v40  ;;  %v2040_v44 = vcombine.low %v7235_v13, %v7238_v14  ;;  %v2072_v45 = vcombine.low %v7241_v15, %v7244_v17 }
 0x2e6   : > { %v7313_v46 = vrot.slane %v5681_v34, %v7213_v33  ;;  %v7316_v47 = vrot.slane %v5683_v35, %v7213_v33  ;;  %v7319_v48 = vrot.slane %v5685_v36, %v7213_v33  ;;  %v7322_v49 = vrot.slane %v5687_v37, %v7213_v33  ;;  %v1055_v50 = vpop.permute.xlu1 %1054  ;;  %v1049_v51 = vpop.permute.xlu0 %1048 }
 0x2e7   : > { %v2240_v52 = vcombine.low %v7303_v38, %v7306_v39  ;;  %v7327_v53 = vrot.slane %v2040_v44, %v7218_v40  ;;  %v7330_v54 = vrot.slane %v2072_v45, %v7218_v40  ;;  %v2041_v55 = vcombine.high %v7235_v13, %v7238_v14 }
 0x2e8   : > { %v2073_v56 = vcombine.high %v7241_v15, %v7244_v17  ;;  %v1344_v57 = vcombine.low %v1099_v63, %v1111_v27  ;;  %v1345_v58 = vcombine.high %v1099_v63, %v1111_v27  ;;  %v1328_v59 = vcombine.low %v1093_v0, %v1105_v28 }
 0x2e9   : > { %v2104_v60 = vcombine.low %v7327_v53, %v7330_v54  ;;  %v7339_v61 = vrot.slane %v2041_v55, %v7218_v40  ;;  %v1329_v1 = vcombine.high %v1093_v0, %v1105_v28  ;;  %v2448_v18 = vcombine.low %v7313_v46, %v7316_v47 }
 0x2ea   : > { %v7344_v2 = vrot.slane %v2073_v56, %v7218_v40  ;;  %v1352_v13 = vrot.slane %v1344_v57, %v7213_v33  ;;  %v1359_v14 = vrot.slane %v1345_v58, %v7213_v33  ;;  %v1336_v15 = vrot.slane %v1328_v59, %v7213_v33  ;;  %v1067_v17 = vpop.permute.xlu1 %1066  ;;  %v1061_v63 = vpop.permute.xlu0 %1060 }
 0x2eb   : > { %v2792_v3 = vmul.f32 0.25, %v2104_v60  ;;  %v1343_v4 = vrot.slane %v1329_v1, %v7213_v33  ;;  %v1208_v7 = vcombine.low %v1055_v50, %v1067_v17  ;;  %v1209_v8 = vcombine.high %v1055_v50, %v1067_v17 }
 0x2ec   : > { %v2106_v0 = vcombine.low %v7339_v61, %v7344_v2  ;;  %v1392_v10 = vcombine.low %v1336_v15, %v1352_v13  ;;  %v1393_v21 = vcombine.high %v1336_v15, %v1352_v13  ;;  %v1192_v23 = vcombine.low %v1049_v51, %v1061_v63 }
 0x2ed   : > { %6007 = vmatprep.mubr.msk.f32.mxu1 %vm2808_vm1, %v2792_v3  ;;  %v1408_v25 = vcombine.low %v1343_v4, %v1359_v14  ;;  %v1409_v26 = vcombine.high %v1343_v4, %v1359_v14  ;;  %v1216_v27 = vrot.slane %v1208_v7, %v7213_v33  ;;  %v1223_v28 = vrot.slane %v1209_v8, %v7213_v33 }
 0x2ee   : > { %v2796_v29 = vmul.f32 0.25, %v2106_v0  ;;  %v1400_v31 = vrot.slane %v1392_v10, %v7218_v40  ;;  %v1407_v34 = vrot.slane %v1393_v21, %v7218_v40  ;;  %v1193_v35 = vcombine.high %v1049_v51, %v1061_v63  ;;  %v1101_v36 = vpop.permute.xlu1 %1100  ;;  %v7357_v37 = vpop.permute.xlu0 %1094 }
 0x2ef   : > { %v1416_v44 = vrot.slane %v1408_v25, %v7218_v40  ;;  %v1423_v45 = vrot.slane %v1409_v26, %v7218_v40  ;;  %v1200_v50 = vrot.slane %v1192_v23, %v7213_v33  ;;  %v2456_v55 = vrot.slane %v2448_v18, %v7218_v40 }
 0x2f0   : > { %6021 = vmatprep.mubr.msk.f32.mxu0 %vm2808_vm1, %v2796_v29  ;;  %v5674_v56 = vcombine.low %v1400_v31, %v1407_v34  ;;  %v5676_v57 = vcombine.high %v1400_v31, %v1407_v34  ;;  %v1207_v58 = vrot.slane %v1193_v35, %v7213_v33  ;;  %v2480_v51 = vcombine.low %v7319_v48, %v7322_v49 }
 0x2f1   : > { %v5678_v59 = vcombine.low %v1416_v44, %v1423_v45  ;;  %v5680_v60 = vcombine.high %v1416_v44, %v1423_v45  ;;  %v1256_v1 = vcombine.low %v1200_v50, %v1216_v27  ;;  %v1257_v13 = vcombine.high %v1200_v50, %v1216_v27 }
 0x2f2   : > { %v7368_v14 = vrot.slane %v5674_v56, %v7213_v33  ;;  %v7371_v15 = vrot.slane %v5676_v57, %v7213_v33  ;;  %v1272_v18 = vcombine.low %v1207_v58, %v1223_v28  ;;  %v1273_v17 = vcombine.high %v1207_v58, %v1223_v28  ;;  %v1113_v63 = vpop.permute.xlu1 %1112  ;;  %v1107_v3 = vpop.permute.xlu0 %1106 }
 0x2f3   : > { %v7374_v4 = vrot.slane %v5678_v59, %v7213_v33  ;;  %v7377_v7 = vrot.slane %v5680_v60, %v7213_v33  ;;  %v1264_v8 = vrot.slane %v1256_v1, %v7218_v40  ;;  %v1271_v0 = vrot.slane %v1257_v13, %v7218_v40 }
 0x2f4   : > { %v1280_v10 = vrot.slane %v1272_v18, %v7218_v40  ;;  %v1287_v21 = vrot.slane %v1273_v17, %v7218_v40  ;;  %v2488_v23 = vrot.slane %v2480_v51, %v7218_v40  ;;  %v2449_v25 = vcombine.high %v7313_v46, %v7316_v47 }
 0x2f5   : > { %v5658_v26 = vcombine.low %v1264_v8, %v1271_v0  ;;  %v5660_v27 = vcombine.high %v1264_v8, %v1271_v0  ;;  %v2481_v28 = vcombine.high %v7319_v48, %v7322_v49  ;;  %v2312_v29 = vcombine.low %v7257_v41, %v7260_v42 }
 0x2f6   : > { %v5662_v31 = vcombine.low %v1280_v10, %v1287_v21  ;;  %v5664_v34 = vcombine.high %v1280_v10, %v1287_v21  ;;  %v2512_v35 = vcombine.low %v2456_v55, %v2488_v23  ;;  %v7391_v44 = vrot.slane %v2449_v25, %v7218_v40  ;;  %v7393_v45 = vpop.permute.xlu1 %1056  ;;  %v7405_v49 = vpop.permute.xlu0 %1050 }
 0x2f7   : > { %v7396_v50 = vrot.slane %v5658_v26, %v7213_v33  ;;  %v7399_v46 = vrot.slane %v5660_v27, %v7213_v33  ;;  %v7402_v47 = vrot.slane %v2481_v28, %v7218_v40  ;;  %v2320_v48 = vrot.slane %v2312_v29, %v7218_v40 }
 0x2f8   : > { %v7408_v56 = vrot.slane %v5662_v31, %v7213_v33  ;;  %v7411_v57 = vrot.slane %v5664_v34, %v7213_v33  ;;  %6003 = vmatprep.subr.msk.mxu1 %vm2808_vm1, %v2512_v35  ;;  %v2344_v58 = vcombine.low %v7263_v16, %v7266_v43  ;;  %v2313_v51 = vcombine.high %v7257_v41, %v7260_v42 }
 0x2f9   : > { %v2514_v59 = vcombine.low %v7391_v44, %v7402_v47  ;;  %6004 = vmatpush3.xpose.msk.msra.mxu1 %vm2808_vm1, %v2512_v35  ;;  %v2345_v60 = vcombine.high %v7263_v16, %v7266_v43  ;;  %v1752_v1 = vcombine.low %v1101_v36, %v1113_v63  ;;  %v1753_v13 = vcombine.high %v1101_v36, %v1113_v63 }
 0x2fa   : > { %v2352_v18 = vrot.slane %v2344_v58, %v7218_v40  ;;  %v7425_v17 = vrot.slane %v2313_v51, %v7218_v40  ;;  %v1736_v8 = vcombine.low %v7357_v37, %v1107_v3  ;;  %v1737_v0 = vcombine.high %v7357_v37, %v1107_v3  ;;  %v1069_v41 = vpop.permute.xlu1 %1068  ;;  %v1063_v26 = vpop.permute.xlu0 %1062 }
 0x2fb   : > { %6017 = vmatprep.subr.msk.mxu0 %vm2808_vm1, %v2514_v59  ;;  %v7431_v42 = vrot.slane %v2345_v60, %v7218_v40  ;;  %v1760_v10 = vrot.slane %v1752_v1, %v7213_v33  ;;  %v1767_v16 = vrot.slane %v1753_v13, %v7213_v33  ;;  %v2513_v43 = vcombine.high %v2456_v55, %v2488_v23 }
 0x2fc   : > { %6018 = vmatpush3.xpose.msk.msra.mxu0 %vm2808_vm1, %v2514_v59  ;;  %v2376_v36 = vcombine.low %v2320_v48, %v2352_v18  ;;  %v1744_v63 = vrot.slane %v1736_v8, %v7213_v33  ;;  %v1751_v21 = vrot.slane %v1737_v0, %v7213_v33  ;;  %v2793_v37 = vmul.f32 0.25, %v2240_v52 }
 0x2fd   : > { %v2378_v3 = vcombine.low %v7425_v17, %v7431_v42  ;;  %v7447_v25 = vrot.slane %v2177_v30, %v7218_v40  ;;  %v7453_v55 = vrot.slane %v2209_v32, %v7218_v40  ;;  %v2105_v23 = vcombine.high %v7327_v53, %v7330_v54 }
 0x2fe   : > { %6005 = vmatprep.subr.msk.mxu1 %vm2808_vm1, %v2376_v36  ;;  %v1800_v52 = vcombine.low %v1744_v63, %v1760_v10  ;;  %v1801_v27 = vcombine.high %v1744_v63, %v1760_v10  ;;  %v1816_v28 = vcombine.low %v1751_v21, %v1767_v16  ;;  %v1817_v29 = vcombine.high %v1751_v21, %v1767_v16  ;;  %v7458_v31 = vpop.permute.xlu1 %1120  ;;  %v1127_v8 = vpop.permute.xlu0 %1126 }
 0x2ff   : > { %6019 = vmatprep.subr.msk.mxu0 %vm2808_vm1, %v2378_v3  ;;  %6006 = vmatpush3.xpose.msk.msra.mxu1 %vm2808_vm1, %v2376_v36  ;;  %v2242_v11 = vcombine.low %v7447_v25, %v7453_v55  ;;  %v2794_v12 = vmul.f32 0.25, %v2105_v23  ;;  %v2377_v19 = vcombine.high %v2320_v48, %v2352_v18  ;;  %v1616_v20 = vcombine.low %v7393_v45, %v1069_v41 }
 0x300   : > { %6020 = vmatpush3.xpose.msk.msra.mxu0 %vm2808_vm1, %v2378_v3  ;;  %v1808_v30 = vrot.slane %v1800_v52, %v7218_v40  ;;  %v1815_v32 = vrot.slane %v1801_v27, %v7218_v40  ;;  %v1824_v53 = vrot.slane %v1816_v28, %v7218_v40  ;;  %v1831_v54 = vrot.slane %v1817_v29, %v7218_v40 }
 0x301   : > { %6010 = vmatprep.subr.msk.mxu1 %vm2808_vm1, %v2513_v43  ;;  %v2797_v34 = vmul.f32 0.25, %v2242_v11  ;;  %v1617_v35 = vcombine.high %v7393_v45, %v1069_v41  ;;  %v1624_v58 = vrot.slane %v1616_v20, %v7213_v33  ;;  %v1600_v48 = vcombine.low %v7405_v49, %v1063_v26 }
 0x302   : > { %v5682_v51 = vcombine.low %v1808_v30, %v1815_v32  ;;  %v5684_v59 = vcombine.high %v1808_v30, %v1815_v32  ;;  %v5686_v60 = vcombine.low %v1824_v53, %v1831_v54  ;;  %v5688_v1 = vcombine.high %v1824_v53, %v1831_v54  ;;  %6008 = vmatmul.mubr.msk.f32.vlgmr.msra.gmra.mxu1 %vm2808_vm1, %v2793_v37  ;;  %v1133_v0 = vpop.permute.xlu1 %1132 }
 0x303   : > { %6022 = vmatmul.mubr.msk.f32.vlgmr.msra.gmra.mxu0 %vm2808_vm1, %v2797_v34  ;;  %6011 = vmatpush3.xpose.msk.msra.mxu1 %vm2808_vm1, %v2513_v43  ;;  %v1631_v13 = vrot.slane %v1617_v35, %v7213_v33  ;;  %v1601_v18 = vcombine.high %v7405_v49, %v1063_v26  ;;  %v1608_v45 = vrot.slane %v1600_v48, %v7213_v33 }
 0x304   : > { %v7481_v41 = vrot.slane %v5682_v51, %v7213_v33  ;;  %v7484_v10 = vrot.slane %v5684_v59, %v7213_v33  ;;  %v7487_v16 = vrot.slane %v5686_v60, %v7213_v33  ;;  %v7490_v36 = vrot.slane %v5688_v1, %v7213_v33  ;;  %6014 = vmatprep.mubr.msk.f32.mxu1 %vm2808_vm1, %v2794_v12 }
 0x305   : > { %6012 = vmatprep.subr.msk.mxu1 %vm2808_vm1, %v2377_v19  ;;  %v1615_v49 = vrot.slane %v1601_v18, %v7213_v33  ;;  %v1664_v43 = vcombine.low %v1608_v45, %v1624_v58  ;;  %v1665_v63 = vcombine.high %v1608_v45, %v1624_v58  ;;  %v2515_v21 = vcombine.high %v7391_v44, %v7402_v47 }
 0x306   : > { %v2241_v37 = vcombine.high %v7303_v38, %v7306_v39  ;;  %v2107_v3 = vcombine.high %v7339_v61, %v7344_v2  ;;  %v1840_v23 = vcombine.low %v7188_v22, %v1127_v8  ;;  %v1841_v26 = vcombine.high %v7188_v22, %v1127_v8  ;;  %v1125_v12 = vpop.permute.xlu1 %1124 }
 0x307   : > { %6013 = vmatpush3.xpose.msk.msra.mxu1 %vm2808_vm1, %v2377_v19  ;;  %v1672_v52 = vrot.slane %v1664_v43, %v7218_v40  ;;  %v1679_v27 = vrot.slane %v1665_v63, %v7218_v40  ;;  %v1680_v28 = vcombine.low %v1615_v49, %v1631_v13  ;;  %v1681_v29 = vcombine.high %v1615_v49, %v1631_v13 }
 0x308   : > { %6024 = vmatprep.subr.msk.mxu1 %vm2808_vm1, %v2515_v21  ;;  %v2795_v44 = vmul.f32 0.25, %v2241_v37  ;;  %v2798_v47 = vmul.f32 0.25, %v2107_v3  ;;  %v1848_v38 = vrot.slane %v1840_v23, %v7213_v33  ;;  %v1855_v39 = vrot.slane %v1841_v26, %v7213_v33 }
 0x309   : > { %v1688_v61 = vrot.slane %v1680_v28, %v7218_v40  ;;  %v1695_v22 = vrot.slane %v1681_v29, %v7218_v40  ;;  %v5666_v2 = vcombine.low %v1672_v52, %v1679_v27  ;;  %v5668_v11 = vcombine.high %v1672_v52, %v1679_v27 }
 0x30a   : > { %6015 = vmatmul.mubr.msk.f32.vlgmr.msra.gmra.mxu1 %vm2808_vm1, %v2795_v44  ;;  %v2379_v19 = vcombine.high %v7425_v17, %v7431_v42  ;;  %v2056_v20 = vcombine.low %v7396_v50, %v7399_v46  ;;  %v2088_v30 = vcombine.low %v7408_v56, %v7411_v57  ;;  %v1856_v32 = vcombine.low %v7458_v31, %v1133_v0  ;;  %v1131_v43 = vpop.permute.xlu1 %1130 }
 0x30b   : > { %v7520_v53 = vrot.slane %v5666_v2, %v7213_v33  ;;  %v7523_v54 = vrot.slane %v5668_v11, %v7213_v33  ;;  %v5670_v34 = vcombine.low %v1688_v61, %v1695_v22  ;;  %v5672_v35 = vcombine.high %v1688_v61, %v1695_v22  ;;  %6025 = vmatpush3.xpose.msk.msra.mxu1 %vm2808_vm1, %v2515_v21 }
 0x30c   : > { %6028 = vmatprep.mubr.msk.f32.mxu1 %vm2808_vm1, %v2798_v47  ;;  %6026 = vmatprep.subr.msk.mxu1 %vm2808_vm1, %v2379_v19  ;;  %v2064_v17 = vrot.slane %v2056_v20, %v7218_v40  ;;  %v2096_v42 = vrot.slane %v2088_v30, %v7218_v40  ;;  %v1857_v58 = vcombine.high %v7458_v31, %v1133_v0  ;;  %v1119_v30 = vpop.permute.xlu0 %1118 }
 0x30d   : > { %v7532_v48 = vrot.slane %v5670_v34, %v7213_v33  ;;  %v7535_v51 = vrot.slane %v5672_v35, %v7213_v33  ;;  %v2192_v59 = vcombine.low %v7520_v53, %v7523_v54  ;;  %v2193_v60 = vcombine.high %v7520_v53, %v7523_v54 }
 0x30e   : > { %v2108_v1 = vcombine.low %v2064_v17, %v2096_v42  ;;  %v1864_v13 = vrot.slane %v1856_v32, %v7213_v33  ;;  %v1871_v18 = vrot.slane %v1857_v58, %v7213_v33  ;;  %v2243_v31 = vcombine.high %v7447_v25, %v7453_v55  ;;  %v7584_v32 = vpop.permute.xlu1 %1138 }
 0x30f   : > { %v2224_v45 = vcombine.low %v7532_v48, %v7535_v51  ;;  %v2225_v8 = vcombine.high %v7532_v48, %v7535_v51  ;;  %6027 = vmatpush3.xpose.msk.msra.mxu1 %vm2808_vm1, %v2379_v19  ;;  %v2464_v0 = vcombine.low %v7481_v41, %v7484_v10  ;;  %v2496_v49 = vcombine.low %v7487_v16, %v7490_v36 }
 0x310   : > { %v2800_v63 = vmul.f32 0.25, %v2108_v1  ;;  %v1904_v21 = vcombine.low %v1848_v38, %v1864_v13  ;;  %v1905_v37 = vcombine.high %v1848_v38, %v1864_v13  ;;  %v1920_v3 = vcombine.low %v1855_v39, %v1871_v18 }
 0x311   : > { %v1921_v25 = vcombine.high %v1855_v39, %v1871_v18  ;;  %v2799_v55 = vmul.f32 0.25, %v2243_v31  ;;  %v2472_v23 = vrot.slane %v2464_v0, %v7218_v40  ;;  %v2504_v26 = vrot.slane %v2496_v49, %v7218_v40 }
 0x312   : > { %6035 = vmatprep.mubr.msk.f32.mxu0 %vm2808_vm1, %v2800_v63  ;;  %v7558_v52 = vrot.slane %v1904_v21, %v7218_v40  ;;  %v7561_v27 = vrot.slane %v1905_v37, %v7218_v40  ;;  %v7564_v28 = vrot.slane %v1920_v3, %v7218_v40  ;;  %v1432_v29 = vcombine.low %v7194_v24, %v1125_v12 }
 0x313   : > { %v7568_v44 = vrot.slane %v1921_v25, %v7218_v40  ;;  %6029 = vmatmul.mubr.msk.f32.vlgmr.msra.gmra.mxu1 %vm2808_vm1, %v2799_v55  ;;  %v2516_v47 = vcombine.low %v2472_v23, %v2504_v26  ;;  %v2517_v38 = vcombine.high %v2472_v23, %v2504_v26  ;;  %v1433_v39 = vcombine.high %v7194_v24, %v1125_v12  ;;  %v1151_v26 = vpop.permute.xlu1 %1150 }
 0x314   : > { %v5697_v61 = vcombine.low %v7558_v52, %v7561_v27  ;;  %v5699_v22 = vcombine.high %v7558_v52, %v7561_v27  ;;  %v1440_v2 = vrot.slane %v1432_v29, %v7213_v33  ;;  %v2109_v11 = vcombine.high %v2064_v17, %v2096_v42 }
 0x315   : > { %v5701_v19 = vcombine.low %v7564_v28, %v7568_v44  ;;  %v5703_v20 = vcombine.high %v7564_v28, %v7568_v44  ;;  %6031 = vmatprep.subr.msk.mxu0 %vm2808_vm1, %v2516_v47  ;;  %6038 = vmatprep.subr.msk.mxu1 %vm2808_vm1, %v2517_v38  ;;  %v1447_v12 = vrot.slane %v1433_v39, %v7213_v33 }
 0x316   : > { %6032 = vmatpush3.xpose.msk.msra.mxu0 %vm2808_vm1, %v2516_v47  ;;  %6039 = vmatpush3.xpose.msk.msra.mxu1 %vm2808_vm1, %v2517_v38  ;;  %v2802_v34 = vmul.f32 0.25, %v2109_v11  ;;  %v2328_v35 = vcombine.low %v7368_v14, %v7371_v15  ;;  %v2360_v17 = vcombine.low %v7374_v4, %v7377_v7  ;;  %v1448_v42 = vcombine.low %v1119_v30, %v1131_v43 }
 0x317   : > { %v1449_v58 = vcombine.high %v1119_v30, %v1131_v43  ;;  %v2465_v1 = vcombine.high %v7481_v41, %v7484_v10  ;;  %v2497_v13 = vcombine.high %v7487_v16, %v7490_v36  ;;  %v2200_v18 = vrot.slane %v2192_v59, %v7218_v40 }
 0x318   : > { %6042 = vmatprep.mubr.msk.f32.mxu1 %vm2808_vm1, %v2802_v34  ;;  %v2336_v31 = vrot.slane %v2328_v35, %v7218_v40  ;;  %v2368_v0 = vrot.slane %v2360_v17, %v7218_v40  ;;  %v1456_v49 = vrot.slane %v1448_v42, %v7213_v33  ;;  %v2232_v63 = vrot.slane %v2224_v45, %v7218_v40 }
 0x319   : > { %v1463_v43 = vrot.slane %v1449_v58, %v7213_v33  ;;  %v2479_v21 = vrot.slane %v2465_v1, %v7218_v40  ;;  %v2511_v41 = vrot.slane %v2497_v13, %v7218_v40  ;;  %v2329_v10 = vcombine.high %v7368_v14, %v7371_v15 }
 0x31a   : > { %v2380_v16 = vcombine.low %v2336_v31, %v2368_v0  ;;  %v2381_v36 = vcombine.high %v2336_v31, %v2368_v0  ;;  %v1496_v59 = vcombine.low %v1440_v2, %v1456_v49  ;;  %v1497_v37 = vcombine.high %v1440_v2, %v1456_v49  ;;  %v1145_v31 = vpop.permute.xlu0 %1144 }
 0x31b   : > { %v1512_v3 = vcombine.low %v1447_v12, %v1463_v43  ;;  %v1513_v25 = vcombine.high %v1447_v12, %v1463_v43  ;;  %v2518_v55 = vcombine.low %v2479_v21, %v2511_v41  ;;  %v2519_v23 = vcombine.high %v2479_v21, %v2511_v41 }
 0x31c   : > { %6033 = vmatprep.subr.msk.mxu0 %vm2808_vm1, %v2380_v16  ;;  %6040 = vmatprep.subr.msk.mxu1 %vm2808_vm1, %v2381_v36  ;;  %v7610_v45 = vrot.slane %v1496_v59, %v7218_v40  ;;  %v1511_v29 = vrot.slane %v1497_v37, %v7218_v40  ;;  %v2244_v47 = vcombine.low %v2200_v18, %v2232_v63 }
 0x31d   : > { %v7614_v14 = vrot.slane %v1512_v3, %v7218_v40  ;;  %v7617_v15 = vrot.slane %v1513_v25, %v7218_v40  ;;  %6034 = vmatpush3.xpose.msk.msra.mxu0 %vm2808_vm1, %v2380_v16  ;;  %6041 = vmatpush3.xpose.msk.msra.mxu1 %vm2808_vm1, %v2381_v36  ;;  %v2245_v38 = vcombine.high %v2200_v18, %v2232_v63 }
 0x31e   : > { %v5689_v39 = vcombine.low %v7610_v45, %v1511_v29  ;;  %v5691_v2 = vcombine.high %v7610_v45, %v1511_v29  ;;  %6045 = vmatprep.subr.msk.mxu0 %vm2808_vm1, %v2518_v55  ;;  %6052 = vmatprep.subr.msk.mxu1 %vm2808_vm1, %v2519_v23  ;;  %v2801_v11 = vmul.f32 0.25, %v2244_v47  ;;  %v2343_v30 = vrot.slane %v2329_v10, %v7218_v40 }
 0x31f   : > { %v5693_v12 = vcombine.low %v7614_v14, %v7617_v15  ;;  %v5695_v34 = vcombine.high %v7614_v14, %v7617_v15  ;;  %v2803_v35 = vmul.f32 0.25, %v2245_v38  ;;  %v2361_v17 = vcombine.high %v7374_v4, %v7377_v7 }
 0x320   : > { %6036 = vmatmul.mubr.msk.f32.vlgmr.msra.gmra.mxu0 %vm2808_vm1, %v2801_v11  ;;  %v2057_v42 = vcombine.high %v7396_v50, %v7399_v46  ;;  %v2089_v58 = vcombine.high %v7408_v56, %v7411_v57  ;;  %v1872_v1 = vcombine.low %v7584_v32, %v1151_v26  ;;  %v1873_v13 = vcombine.high %v7584_v32, %v1151_v26  ;;  %v1157_v50 = vpop.permute.xlu1 %1156 }
 0x321   : > { %6043 = vmatmul.mubr.msk.f32.vlgmr.msra.gmra.mxu1 %vm2808_vm1, %v2803_v35  ;;  %6046 = vmatpush3.xpose.msk.msra.mxu0 %vm2808_vm1, %v2518_v55  ;;  %v2375_v18 = vrot.slane %v2361_v17, %v7218_v40  ;;  %v7646_v4 = vrot.slane %v5697_v61, %v7213_v33  ;;  %v7652_v7 = vrot.slane %v5699_v22, %v7213_v33 }
 0x322   : > { %6053 = vmatpush3.xpose.msk.msra.mxu1 %vm2808_vm1, %v2519_v23  ;;  %v2071_v46 = vrot.slane %v2057_v42, %v7218_v40  ;;  %v2103_v56 = vrot.slane %v2089_v58, %v7218_v40  ;;  %v1880_v57 = vrot.slane %v1872_v1, %v7213_v33  ;;  %v1887_v32 = vrot.slane %v1873_v13, %v7213_v33 }
 0x323   : > { %v2382_v61 = vcombine.low %v2343_v30, %v2375_v18  ;;  %v2383_v0 = vcombine.high %v2343_v30, %v2375_v18  ;;  %v2696_v52 = vrot.slane %v5701_v19, %v7213_v33  ;;  %v2712_v27 = vrot.slane %v5703_v20, %v7213_v33 }
 0x324   : > { %v2110_v22 = vcombine.low %v2071_v46, %v2103_v56  ;;  %v2111_v49 = vcombine.high %v2071_v46, %v2103_v56  ;;  %v2720_v63 = vcombine.low %v7646_v4, %v7652_v7  ;;  %v1888_v43 = vcombine.low %v1145_v31, %v1157_v50 }
 0x325   : > { %6047 = vmatprep.subr.msk.mxu0 %vm2808_vm1, %v2382_v61  ;;  %6054 = vmatprep.subr.msk.mxu1 %vm2808_vm1, %v2383_v0  ;;  %v2752_v21 = vcombine.low %v2696_v52, %v2712_v27  ;;  %v1889_v41 = vcombine.high %v1145_v31, %v1157_v50  ;;  %v2207_v19 = vrot.slane %v2193_v60, %v7218_v40 }
 0x326   : > { %v2804_v10 = vmul.f32 0.25, %v2110_v22  ;;  %v2806_v28 = vmul.f32 0.25, %v2111_v49  ;;  %6048 = vmatpush3.xpose.msk.msra.mxu0 %vm2808_vm1, %v2382_v61  ;;  %6055 = vmatpush3.xpose.msk.msra.mxu1 %vm2808_vm1, %v2383_v0  ;;  %v2728_v44 = vrot.slane %v2720_v63, %v7218_v40  ;;  %v1896_v20 = vrot.slane %v1888_v43, %v7213_v33 }
 0x327   : > { %v2760_v16 = vrot.slane %v2752_v21, %v7218_v40  ;;  %v1903_v36 = vrot.slane %v1889_v41, %v7213_v33  ;;  %v2239_v53 = vrot.slane %v2225_v8, %v7218_v40  ;;  %v2528_v54 = vrot.slane %v5689_v39, %v7213_v33 }
 0x328   : > { %6049 = vmatprep.mubr.msk.f32.mxu0 %vm2808_vm1, %v2804_v10  ;;  %6056 = vmatprep.mubr.msk.f32.mxu1 %vm2808_vm1, %v2806_v28  ;;  %v1936_v60 = vcombine.low %v1880_v57, %v1896_v20  ;;  %v1937_v59 = vcombine.high %v1880_v57, %v1896_v20  ;;  %v2544_v37 = vrot.slane %v5691_v2, %v7213_v33 }
 0x329   : > { %v2784_v3 = vcombine.low %v2728_v44, %v2760_v16  ;;  %v2785_v25 = vcombine.high %v2728_v44, %v2760_v16  ;;  %v1952_v55 = vcombine.low %v1887_v32, %v1903_v36  ;;  %v1953_v23 = vcombine.high %v1887_v32, %v1903_v36 }
 0x32a   : > { %v1944_v26 = vrot.slane %v1936_v60, %v7218_v40  ;;  %v1951_v45 = vrot.slane %v1937_v59, %v7218_v40  ;;  %v2246_v48 = vcombine.low %v2207_v19, %v2239_v53  ;;  %v2247_v51 = vcombine.high %v2207_v19, %v2239_v53 }
 0x32b   : > { %6059 = vmatprep.subr.mxu0 %v2784_v3  ;;  %6066 = vmatprep.subr.mxu1 %v2785_v25  ;;  %v1960_v8 = vrot.slane %v1952_v55, %v7218_v40  ;;  %v1967_v29 = vrot.slane %v1953_v23, %v7218_v40  ;;  %v2560_v47 = vrot.slane %v5693_v12, %v7213_v33 }
 0x32c   : > { %v5698_v38 = vcombine.low %v1944_v26, %v1951_v45  ;;  %v5700_v39 = vcombine.high %v1944_v26, %v1951_v45  ;;  %v2805_v2 = vmul.f32 0.25, %v2246_v48  ;;  %v2807_v11 = vmul.f32 0.25, %v2247_v51 }
 0x32d   : > { %v5702_v30 = vcombine.low %v1960_v8, %v1967_v29  ;;  %v5704_v35 = vcombine.high %v1960_v8, %v1967_v29  ;;  %v2576_v17 = vrot.slane %v5695_v34, %v7213_v33  ;;  %v2584_v42 = vcombine.low %v2528_v54, %v2544_v37 }
 0x32e   : > { %6050 = vmatmul.mubr.msk.f32.vlgmr.msra.gmra.mxu0 %vm2808_vm1, %v2805_v2  ;;  %6057 = vmatmul.mubr.msk.f32.vlgmr.msra.gmra.mxu1 %vm2808_vm1, %v2807_v11  ;;  %v2721_v58 = vcombine.high %v7646_v4, %v7652_v7  ;;  %v2753_v12 = vcombine.high %v2696_v52, %v2712_v27  ;;  %v2585_v1 = vcombine.high %v2528_v54, %v2544_v37 }
 0x32f   : > { %6060 = vmatpush3.msra.mxu0 %v2784_v3  ;;  %6067 = vmatpush3.msra.mxu1 %v2785_v25  ;;  %v2592_v13 = vrot.slane %v2584_v42, %v7218_v40  ;;  %v2616_v18 = vcombine.low %v2560_v47, %v2576_v17  ;;  %v2617_v50 = vcombine.high %v2560_v47, %v2576_v17 }
 0x330   : > { %v2735_v46 = vrot.slane %v2721_v58, %v7218_v40  ;;  %v2767_v14 = vrot.slane %v2753_v12, %v7218_v40  ;;  %v2599_v15 = vrot.slane %v2585_v1, %v7218_v40  ;;  %v2671_v34 = vrot.slane %v5698_v38, %v7213_v33 }
 0x331   : > { %v2624_v56 = vrot.slane %v2616_v18, %v7218_v40  ;;  %v2631_v4 = vrot.slane %v2617_v50, %v7218_v40  ;;  %v2687_v7 = vrot.slane %v5700_v39, %v7213_v33  ;;  %v2703_v57 = vrot.slane %v5702_v30, %v7213_v33 }
 0x332   : > { %v2719_v32 = vrot.slane %v5704_v35, %v7213_v33  ;;  %v7716_v43 = vcombine.low %v2735_v46, %v2767_v14  ;;  %v7718_v21 = vcombine.high %v2735_v46, %v2767_v14 }
 0x333   : > { %v2648_v31 = vcombine.low %v2592_v13, %v2624_v56  ;;  %v2649_v61 = vcombine.high %v2592_v13, %v2624_v56  ;;  %v7712_v0 = vcombine.low %v2599_v15, %v2631_v4  ;;  %v2736_v52 = vcombine.low %v2671_v34, %v2687_v7 }
 0x334   : > { %v2768_v27 = vcombine.low %v2703_v57, %v2719_v32  ;;  %v7714_v22 = vcombine.high %v2599_v15, %v2631_v4  ;;  %v2737_v49 = vcombine.high %v2671_v34, %v2687_v7  ;;  %v2769_v63 = vcombine.high %v2703_v57, %v2719_v32 }
 0x335   : > { %6061 = vmatprep.subr.mxu0 %v2648_v31  ;;  %6068 = vmatprep.subr.mxu1 %v2649_v61  ;;  %v2744_v41 = vrot.slane %v2736_v52, %v7218_v40 }
 0x336   : > { %6062 = vmatpush3.msra.mxu0 %v2648_v31  ;;  %6069 = vmatpush3.msra.mxu1 %v2649_v61  ;;  %v2776_v19 = vrot.slane %v2768_v27, %v7218_v40  ;;  %v2751_v10 = vrot.slane %v2737_v49, %v7218_v40  ;;  %v2783_v28 = vrot.slane %v2769_v63, %v7218_v40 }
 0x337   : > { %6073 = vmatprep.subr.mxu0 %v7716_v43  ;;  %6080 = vmatprep.subr.mxu1 %v7718_v21 }
 0x338   : > { %v7726_v44 = vcombine.low %v2744_v41, %v2776_v19  ;;  %v7728_v20 = vcombine.high %v2744_v41, %v2776_v19  ;;  %v7730_v16 = vcombine.low %v2751_v10, %v2783_v28  ;;  %v7732_v36 = vcombine.high %v2751_v10, %v2783_v28 }
 0x3c2   : > { %v6009_v53 = vpop.f32.mrf.mxu1 }
 0x3c3   : > { %v6023_v54 = vpop.f32.mrf.mxu0  ;;  %v3508_v60 = vsel %vm2808_vm1, %v6009_v53, -inf }
 0x3c4   : > { %v3520_v59 = vsel %vm2808_vm1, %v6023_v54, -inf  ;;  %3509 = vmax.xlane.f32.xlu0 %v3508_v60  ;;  %v2887_v37 = vpop.f32.mrf.mxu1 }
 0x3c5   : > { %3521 = vmax.xlane.f32.xlu1 %v3520_v59  ;;  %v3061_v3 = vpop.f32.mrf.mxu0  ;;  %v3505_v25 = vsel %vm2808_vm1, %v2887_v37, -inf }
 0x3c6   : > { %v3517_v55 = vsel %vm2808_vm1, %v3061_v3, -inf }
 0x3c8   : > { %3506 = vmax.xlane.f32.xlu0 %v3505_v25 }
 0x3c9   : > { %3518 = vmax.xlane.f32.xlu1 %v3517_v55 }
 0x3ca   : > { %v6016_v23 = vpop.f32.mrf.mxu1 }
 0x3cb   : > { %v3514_v26 = vsel %vm2808_vm1, %v6016_v23, -inf }
 0x3cc   : > { %3515 = vmax.xlane.f32.xlu0 %v3514_v26  ;;  %v7739_v45 = vpop.f32.mrf.mxu1 }
 0x3cd   : > { %v3511_v30 = vsel %vm2808_vm1, %v7739_v45, -inf }
 0x3d3   : > { %v7741_v48 = vpop.f32.mrf.mxu1 }
 0x3d4   : > { %v3526_v51 = vsel %vm2808_vm1, %v7741_v48, -inf }
 0x3d5   : > { %3527 = vmax.xlane.f32.xlu0 %v3526_v51  ;;  %v7745_v8 = vpop.f32.mrf.mxu1 }
 0x3d6   : > { %v3523_v29 = vsel %vm2808_vm1, %v7745_v8, -inf }
 0x3d9   : > { %3524 = vmax.xlane.f32.xlu0 %v3523_v29 }
 0x3e0   : > { %v7749_v47 = vpop.f32.mrf.mxu0 }
 0x3e1   : > { %v7751_v38 = vpop.f32.mrf.mxu1  ;;  %v3532_v39 = vsel %vm2808_vm1, %v7749_v47, -inf }
 0x3e2   : > { %v3538_v2 = vsel %vm2808_vm1, %v7751_v38, -inf  ;;  %3533 = vmax.xlane.f32.xlu1 %v3532_v39  ;;  %v7761_v35 = vpop.f32.mrf.mxu0 }
 0x3e3   : > { %3539 = vmax.xlane.f32.xlu0 %v3538_v2  ;;  %v7757_v11 = vpop.f32.mrf.mxu1  ;;  %v3529_v42 = vsel %vm2808_vm1, %v7761_v35, -inf }
 0x3e4   : > { %v3535_v17 = vsel %vm2808_vm1, %v7757_v11, -inf }
 0x3e6   : > { %3512 = vmax.xlane.f32.xlu1 %v3511_v30 }
 0x3e7   : > { %3536 = vmax.xlane.f32.xlu0 %v3535_v17 }
 0x3ea   : > { %3530 = vmax.xlane.f32.xlu1 %v3529_v42 }
 0x3ee   : > { %v7767_v58 = vpop.f32.mrf.mxu0  ;;  %v7769_v12 = vpop.f32.mrf.mxu1 }
 0x3ef   : > { %v3550_v1 = vsel %vm2808_vm1, %v7769_v12, -inf  ;;  %v3544_v13 = vsel %vm2808_vm1, %v7767_v58, -inf }
 0x3f0   : > { %v7775_v18 = vpop.f32.mrf.mxu0  ;;  %v7777_v50 = vpop.f32.mrf.mxu1  ;;  %3551 = vmax.xlane.f32.xlu0 %v3550_v1  ;;  %3545 = vmax.xlane.f32.xlu1 %v3544_v13 }
 0x3f1   : > { %v3547_v46 = vsel %vm2808_vm1, %v7777_v50, -inf  ;;  %v3541_v14 = vsel %vm2808_vm1, %v7775_v18, -inf }
 0x3f4   : > { %3548 = vmax.xlane.f32.xlu0 %v3547_v46  ;;  %3542 = vmax.xlane.f32.xlu1 %v3541_v14 }
 0x405   : > { %1142 = vrot.lane.b32.xlu1 %v7194_v24, %s6774_s2 }
 0x40a   : > { %1136 = vrot.lane.b32.xlu0 %v7194_v24, %s6775_s17 }
 0x44d   : > { %v3510_v15 = vpop.xlane.xlu0 %3509 }
 0x44e   : > { %v3522_v34 = vpop.xlane.xlu1 %3521  ;;  %v3554_v56 = vsub.f32 %v6009_v53, %v3510_v15 }
 0x44f   : > { %v3558_v4 = vsub.f32 %v6023_v54, %v3522_v34 }
 0x450   : > { %v3571_v7 = vmul.f32 1.442695, %v3554_v56 }
 0x451   : > { %v3579_v57 = vmul.f32 1.442695, %v3558_v4  ;;  %v3507_v32 = vpop.xlane.xlu0 %3506 }
 0x452   : > { %6365 = vpow2.f32 %v3571_v7  ;;  %v3519_v31 = vpop.xlane.xlu1 %3518  ;;  %v3553_v61 = vsub.f32 %v2887_v37, %v3507_v32 }
 0x453   : > { %6367 = vpow2.f32 %v3579_v57  ;;  %v3557_v52 = vsub.f32 %v3061_v3, %v3519_v31 }
 0x454   : > { %v3569_v27 = vmul.f32 1.442695, %v3553_v61 }
 0x455   : > { %v3516_v49 = vpop.xlane.xlu0 %3515  ;;  %v3577_v41 = vmul.f32 1.442695, %v3557_v52 }
 0x456   : > { %v3556_v63 = vsub.f32 %v6016_v23, %v3516_v49  ;;  %6369 = vpow2.f32 %v3569_v27 }
 0x458   : > { %v3575_v19 = vmul.f32 1.442695, %v3556_v63 }
 0x45a   : > { %6371 = vpow2.f32 %v3575_v19 }
 0x45b   : > { %6373 = vpow2.f32 %v3577_v41 }
 0x45e   : > { %v3528_v59 = vpop.xlane.xlu0 %3527 }
 0x45f   : > { %v7787_v10 = vpop.eup %6365  ;;  %v3560_v39 = vsub.f32 %v7741_v48, %v3528_v59 }
 0x460   : > { %v3604_v28 = vsel %vm2808_vm1, %v7787_v10, 0.0  ;;  %v7791_v53 = vpop.eup %6367 }
 0x461   : > { %3605 = vadd.xlane.f32.xlu1 %v3604_v28  ;;  %v3616_v54 = vsel %vm2808_vm1, %v7791_v53, 0.0  ;;  %v3583_v1 = vmul.f32 1.442695, %v3560_v39 }
 0x462   : > { %v3525_v26 = vpop.xlane.xlu0 %3524 }
 0x463   : > { %v7795_v60 = vpop.eup %6369  ;;  %v3559_v13 = vsub.f32 %v7745_v8, %v3525_v26 }
 0x464   : > { %v3601_v3 = vsel %vm2808_vm1, %v7795_v60, 0.0 }
 0x465   : > { %3617 = vadd.xlane.f32.xlu1 %v3616_v54  ;;  %v3581_v15 = vmul.f32 1.442695, %v3559_v13 }
 0x467   : > { %v7797_v37 = vpop.eup %6371 }
 0x468   : > { %v3610_v25 = vsel %vm2808_vm1, %v7797_v37, 0.0  ;;  %v7803_v55 = vpop.eup %6373 }
 0x469   : > { %3602 = vadd.xlane.f32.xlu1 %v3601_v3  ;;  %3611 = vadd.xlane.f32.xlu0 %v3610_v25  ;;  %v3613_v29 = vsel %vm2808_vm1, %v7803_v55, 0.0 }
 0x46b   : > { %v3534_v23 = vpop.xlane.xlu1 %3533 }
 0x46c   : > { %v3562_v51 = vsub.f32 %v7749_v47, %v3534_v23  ;;  %v3540_v17 = vpop.xlane.xlu0 %3539 }
 0x46d   : > { %3614 = vadd.xlane.f32.xlu1 %v3613_v29  ;;  %v3564_v48 = vsub.f32 %v7751_v38, %v3540_v17 }
 0x46e   : > { %v3587_v2 = vmul.f32 1.442695, %v3562_v51 }
 0x46f   : > { %v3513_v30 = vpop.xlane.xlu1 %3512  ;;  %v3591_v8 = vmul.f32 1.442695, %v3564_v48 }
 0x470   : > { %6375 = vpow2.f32 %v3587_v2  ;;  %v3555_v42 = vsub.f32 %v7739_v45, %v3513_v30  ;;  %v3537_v34 = vpop.xlane.xlu0 %3536 }
 0x471   : > { %v3563_v31 = vsub.f32 %v7757_v11, %v3537_v34 }
 0x472   : > { %v3573_v46 = vmul.f32 1.442695, %v3555_v42 }
 0x473   : > { %v3531_v14 = vpop.xlane.xlu1 %3530 }
 0x474   : > { %6377 = vpow2.f32 %v3573_v46  ;;  %v3561_v47 = vsub.f32 %v7761_v35, %v3531_v14 }
 0x475   : > { %6379 = vpow2.f32 %v3583_v1 }
 0x476   : > { %v3585_v56 = vmul.f32 1.442695, %v3561_v47 }
 0x478   : > { %6381 = vpow2.f32 %v3585_v56 }
 0x479   : > { %v3546_v4 = vpop.xlane.xlu1 %3545  ;;  %6383 = vpow2.f32 %v3581_v15  ;;  %v3552_v45 = vpop.xlane.xlu0 %3551 }
 0x47a   : > { %v3566_v7 = vsub.f32 %v7767_v58, %v3546_v4  ;;  %v3589_v58 = vmul.f32 1.442695, %v3563_v31  ;;  %v3568_v49 = vsub.f32 %v7769_v12, %v3552_v45 }
 0x47c   : > { %v3595_v57 = vmul.f32 1.442695, %v3566_v7  ;;  %v3599_v19 = vmul.f32 1.442695, %v3568_v49 }
 0x47d   : > { %v7814_v32 = vpop.eup %6375  ;;  %v3543_v61 = vpop.xlane.xlu1 %3542 }
 0x47e   : > { %v3565_v35 = vsub.f32 %v7775_v18, %v3543_v61  ;;  %v3628_v52 = vsel %vm2808_vm1, %v7814_v32, 0.0  ;;  %6385 = vpow2.f32 %v3595_v57  ;;  %v3549_v63 = vpop.xlane.xlu0 %3548 }
 0x47f   : > { %3629 = vadd.xlane.f32.xlu0 %v3628_v52  ;;  %6387 = vpow2.f32 %v3591_v8  ;;  %v3567_v28 = vsub.f32 %v7777_v50, %v3549_v63 }
 0x480   : > { %v3593_v38 = vmul.f32 1.442695, %v3565_v35 }
 0x481   : > { %v7820_v27 = vpop.eup %6377  ;;  %v3597_v3 = vmul.f32 1.442695, %v3567_v28  ;;  %v7866_v46 = vpop.permute.xlu1 %1142 }
 0x482   : > { %v3607_v41 = vsel %vm2808_vm1, %v7820_v27, 0.0  ;;  %v7825_v11 = vpop.eup %6379  ;;  %6389 = vpow2.f32 %v3593_v38  ;;  %v7868_v4 = vpop.permute.xlu0 %1136 }
 0x483   : > { %3608 = vadd.xlane.f32.xlu0 %v3607_v41  ;;  %6391 = vpow2.f32 %v3589_v58  ;;  %v3622_v12 = vsel %vm2808_vm1, %v7825_v11, 0.0 }
 0x484   : > { %6393 = vpow2.f32 %v3599_v19 }
 0x485   : > { %v7827_v18 = vpop.eup %6381  ;;  %6395 = vpow2.f32 %v3597_v3 }
 0x486   : > { %v3625_v54 = vsel %vm2808_vm1, %v7827_v18, 0.0  ;;  %v7834_v59 = vpop.eup %6383 }
 0x487   : > { %3626 = vadd.xlane.f32.xlu1 %v3625_v54  ;;  %3623 = vadd.xlane.f32.xlu0 %v3622_v12  ;;  %v3619_v25 = vsel %vm2808_vm1, %v7834_v59, 0.0 }
 0x48b   : > { %3620 = vadd.xlane.f32.xlu0 %v3619_v25  ;;  %v7838_v23 = vpop.eup %6385 }
 0x48c   : > { %v3640_v50 = vsel %vm2808_vm1, %v7838_v23, 0.0  ;;  %v7842_v26 = vpop.eup %6387 }
 0x48d   : > { %3641 = vadd.xlane.f32.xlu1 %v3640_v50  ;;  %v3634_v39 = vsel %vm2808_vm1, %v7842_v26, 0.0 }
 0x48f   : > { %v7844_v51 = vpop.eup %6389 }
 0x490   : > { %v3637_v29 = vsel %vm2808_vm1, %v7844_v51, 0.0  ;;  %v7850_v2 = vpop.eup %6391 }
 0x491   : > { %3638 = vadd.xlane.f32.xlu0 %v3637_v29  ;;  %3635 = vadd.xlane.f32.xlu1 %v3634_v39  ;;  %v3631_v30 = vsel %vm2808_vm1, %v7850_v2, 0.0  ;;  %v7854_v17 = vpop.eup %6393 }
 0x492   : > { %v3646_v42 = vsel %vm2808_vm1, %v7854_v17, 0.0  ;;  %v7858_v1 = vpop.eup %6395 }
 0x493   : > { %v3643_v13 = vsel %vm2808_vm1, %v7858_v1, 0.0 }
 0x495   : > { %3632 = vadd.xlane.f32.xlu0 %v3631_v30 }
 0x499   : > { %3647 = vadd.xlane.f32.xlu0 %v3646_v42 }
 0x49d   : > { %3644 = vadd.xlane.f32.xlu0 %v3643_v13 }
 0x4a2   : > { %1154 = vrot.lane.b32.xlu1 %v7194_v24, %s6776_s24 }
 0x4b3   : > { %1148 = vrot.lane.b32.xlu0 %v7194_v24, %s6777_s14 }
 0x4ea   : > { %v3606_v14 = vpop.xlane.xlu1 %3605 }
 0x4eb   : > { %6397 = vrcp.f32 %v3606_v14 }
 0x4ee   : > { %v3618_v47 = vpop.xlane.xlu1 %3617 }
 0x4f2   : > { %v3603_v15 = vpop.xlane.xlu1 %3602  ;;  %v3612_v8 = vpop.xlane.xlu0 %3611 }
 0x4f3   : > { %6399 = vrcp.f32 %v3603_v15 }
 0x4f4   : > { %6401 = vrcp.f32 %v3618_v47 }
 0x4f6   : > { %v3615_v34 = vpop.xlane.xlu1 %3614 }
 0x4f7   : > { %6403 = vrcp.f32 %v3615_v34 }
 0x4f8   : > { %v6398_v56 = vpop.eup %6397  ;;  %6405 = vrcp.f32 %v3612_v8 }
 0x4f9   : > { %v3666_v45 = vmul.f32 %v6398_v56, %v7787_v10 }
 0x500   : > { %v6400_v48 = vpop.eup %6399 }
 0x501   : > { %v3665_v7 = vmul.f32 %v6400_v48, %v7795_v60  ;;  %v6402_v57 = vpop.eup %6401 }
 0x502   : > { %v3670_v61 = vmul.f32 %v6402_v57, %v7791_v53 }
 0x503   : > { %6063 = vmatprep.mubr.msk.f32.mxu0 %vm2808_vm1, %v3665_v7 }
 0x504   : > { %v6404_v24 = vpop.eup %6403  ;;  %6064 = vmatmul.mubr.msk.f32.vlgmr.msra.gmra.mxu0 %vm2808_vm1, %v3666_v45 }
 0x505   : > { %6074 = vmatpush3.msra.mxu0 %v7716_v43  ;;  %v3669_v31 = vmul.f32 %v6404_v24, %v7803_v55  ;;  %v6406_v53 = vpop.eup %6405 }
 0x506   : > { %6075 = vmatprep.subr.mxu0 %v7712_v0  ;;  %v3668_v49 = vmul.f32 %v6406_v53, %v7797_v37 }
 0x507   : > { %6076 = vmatpush3.msra.mxu0 %v7712_v0  ;;  %6077 = vmatprep.mubr.msk.f32.mxu0 %vm2808_vm1, %v3669_v31 }
 0x508   : > { %v3630_v10 = vpop.xlane.xlu0 %3629  ;;  %6087 = vmatprep.subr.mxu0 %v7726_v44  ;;  %6078 = vmatmul.mubr.msk.f32.vlgmr.msra.gmra.mxu0 %vm2808_vm1, %v3670_v61 }
 0x509   : > { %6088 = vmatpush3.msra.mxu0 %v7726_v44 }
 0x50c   : > { %v3609_v60 = vpop.xlane.xlu0 %3608 }
 0x50d   : > { %6407 = vrcp.f32 %v3609_v60 }
 0x510   : > { %v3627_v43 = vpop.xlane.xlu1 %3626  ;;  %v3624_v55 = vpop.xlane.xlu0 %3623 }
 0x511   : > { %6409 = vrcp.f32 %v3627_v43 }
 0x512   : > { %6411 = vrcp.f32 %v3624_v55 }
 0x514   : > { %v3621_v35 = vpop.xlane.xlu0 %3620 }
 0x515   : > { %6413 = vrcp.f32 %v3621_v35 }
 0x516   : > { %v3642_v52 = vpop.xlane.xlu1 %3641 }
 0x51a   : > { %v6408_v0 = vpop.eup %6407  ;;  %v3639_v38 = vpop.xlane.xlu0 %3638 }
 0x51b   : > { %v3667_v58 = vmul.f32 %v6408_v0, %v7820_v27  ;;  %v3636_v19 = vpop.xlane.xlu1 %3635 }
 0x51d   : > { %6070 = vmatprep.mubr.msk.f32.mxu1 %vm2808_vm1, %v3667_v58 }
 0x51e   : > { %v6410_v44 = vpop.eup %6409  ;;  %6071 = vmatmul.mubr.msk.f32.vlgmr.msra.gmra.mxu1 %vm2808_vm1, %v3668_v49  ;;  %v3633_v63 = vpop.xlane.xlu0 %3632 }
 0x51f   : > { %6081 = vmatpush3.msra.mxu1 %v7718_v21  ;;  %v3673_v41 = vmul.f32 %v6410_v44, %v7827_v18  ;;  %6415 = vrcp.f32 %v3633_v63  ;;  %v6412_v28 = vpop.eup %6411  ;;  %v1155_v21 = vpop.permute.xlu1 %1154 }
 0x520   : > { %6082 = vmatprep.subr.mxu1 %v7714_v22  ;;  %v3672_v12 = vmul.f32 %v6412_v28, %v7825_v11  ;;  %v1481_v3 = vcombine.high %v7866_v46, %v1155_v21  ;;  %6417 = vrcp.f32 %v3630_v10 }
 0x521   : > { %6083 = vmatpush3.msra.mxu1 %v7714_v22  ;;  %6091 = vmatprep.mubr.msk.f32.mxu0 %vm2808_vm1, %v3673_v41  ;;  %v1480_v22 = vcombine.low %v7866_v46, %v1155_v21  ;;  %6419 = vrcp.f32 %v3642_v52 }
 0x522   : > { %v6414_v37 = vpop.eup %6413  ;;  %6094 = vmatprep.subr.mxu1 %v7728_v20  ;;  %v3648_v27 = vpop.xlane.xlu0 %3647  ;;  %6421 = vrcp.f32 %v3636_v19  ;;  %v1495_v39 = vrot.slane %v1481_v3, %v7213_v33 }
 0x523   : > { %v3671_v54 = vmul.f32 %v6414_v37, %v7834_v59  ;;  %v1488_v29 = vrot.slane %v1480_v22, %v7213_v33  ;;  %6423 = vrcp.f32 %v3639_v38 }
 0x525   : > { %6084 = vmatprep.mubr.msk.f32.mxu1 %vm2808_vm1, %v3671_v54 }
 0x526   : > { %6085 = vmatmul.mubr.msk.f32.vlgmr.msra.gmra.mxu1 %vm2808_vm1, %v3672_v12  ;;  %v3645_v18 = vpop.xlane.xlu0 %3644 }
 0x527   : > { %6095 = vmatpush3.msra.mxu1 %v7728_v20  ;;  %6425 = vrcp.f32 %v3645_v18 }
 0x528   : > { %6427 = vrcp.f32 %v3648_v27 }
 0x52a   : > { %v1149_v25 = vpop.permute.xlu0 %1148 }
 0x52b   : > { %v1464_v50 = vcombine.low %v7868_v4, %v1149_v25  ;;  %v1465_v59 = vcombine.high %v7868_v4, %v1149_v25 }
 0x52c   : > { %v6416_v11 = vpop.eup %6415 }
 0x52d   : > { %v1472_v30 = vrot.slane %v1464_v50, %v7213_v33  ;;  %v1479_v20 = vrot.slane %v1465_v59, %v7213_v33  ;;  %v3675_v42 = vmul.f32 %v6416_v11, %v7850_v2  ;;  %v6418_v61 = vpop.eup %6417 }
 0x52e   : > { %v6420_v43 = vpop.eup %6419  ;;  %v3674_v44 = vmul.f32 %v6418_v61, %v7814_v32 }
 0x52f   : > { %v1528_v13 = vcombine.low %v1472_v30, %v1488_v29  ;;  %v1529_v46 = vcombine.high %v1472_v30, %v1488_v29  ;;  %v1544_v14 = vcombine.low %v1479_v20, %v1495_v39  ;;  %v1545_v47 = vcombine.high %v1479_v20, %v1495_v39  ;;  %6098 = vmatprep.mubr.msk.f32.mxu1 %vm2808_vm1, %v3675_v42  ;;  %v6422_v55 = vpop.eup %6421 }
 0x530   : > { %v6424_v38 = vpop.eup %6423  ;;  %v3676_v41 = vmul.f32 %v6422_v55, %v7842_v26 }
 0x531   : > { %v1536_v15 = vrot.slane %v1528_v13, %v7218_v40  ;;  %v1543_v34 = vrot.slane %v1529_v46, %v7218_v40  ;;  %v1552_v56 = vrot.slane %v1544_v14, %v7218_v40  ;;  %v1559_v48 = vrot.slane %v1545_v47, %v7218_v40 }
 0x532   : > { %v3677_v27 = vmul.f32 %v6424_v38, %v7844_v51  ;;  %v3678_v51 = vmul.f32 %v6420_v43, %v7838_v23 }
 0x533   : > { %v5690_v4 = vcombine.low %v1536_v15, %v1543_v34  ;;  %v5692_v7 = vcombine.high %v1536_v15, %v1543_v34  ;;  %v5694_v2 = vcombine.low %v1552_v56, %v1559_v48  ;;  %v5696_v45 = vcombine.high %v1552_v56, %v1559_v48 }
 0x534   : > { %v6426_v63 = vpop.eup %6425 }
 0x535   : > { %v2535_v57 = vrot.slane %v5690_v4, %v7213_v33  ;;  %v2551_v24 = vrot.slane %v5692_v7, %v7213_v33  ;;  %v2567_v8 = vrot.slane %v5694_v2, %v7213_v33  ;;  %v2583_v31 = vrot.slane %v5696_v45, %v7213_v33  ;;  %v6428_v37 = vpop.eup %6427 }
 0x536   : > { %v3679_v32 = vmul.f32 %v6426_v63, %v7858_v1  ;;  %v3680_v12 = vmul.f32 %v6428_v37, %v7854_v17 }
 0x537   : > { %v2600_v10 = vcombine.low %v2535_v57, %v2551_v24  ;;  %v2632_v60 = vcombine.low %v2567_v8, %v2583_v31  ;;  %v2601_v0 = vcombine.high %v2535_v57, %v2551_v24  ;;  %v2633_v52 = vcombine.high %v2567_v8, %v2583_v31 }
 0x539   : > { %v2608_v35 = vrot.slane %v2600_v10, %v7218_v40  ;;  %v2640_v53 = vrot.slane %v2632_v60, %v7218_v40  ;;  %v2615_v19 = vrot.slane %v2601_v0, %v7218_v40  ;;  %v2647_v28 = vrot.slane %v2633_v52, %v7218_v40 }
 0x53b   : > { %v2652_v58 = vcombine.low %v2608_v35, %v2640_v53  ;;  %v2653_v49 = vcombine.high %v2608_v35, %v2640_v53  ;;  %v2654_v26 = vcombine.low %v2615_v19, %v2647_v28  ;;  %v2655_v54 = vcombine.high %v2615_v19, %v2647_v28 }
 0x53d   : > { %6089 = vmatprep.subr.mxu0 %v2652_v58  ;;  %6096 = vmatprep.subr.mxu1 %v2653_v49 }
 0x53e   : > { %6090 = vmatpush3.msra.mxu0 %v2652_v58  ;;  %6097 = vmatpush3.msra.mxu1 %v2653_v49 }
 0x53f   : > { %6092 = vmatmul.mubr.msk.f32.vlgmr.msra.gmra.mxu0 %vm2808_vm1, %v3674_v44  ;;  %6099 = vmatmul.mubr.msk.f32.vlgmr.msra.gmra.mxu1 %vm2808_vm1, %v3676_v41 }
 0x540   : > { %6101 = vmatprep.subr.mxu0 %v7730_v16  ;;  %6108 = vmatprep.subr.mxu1 %v7732_v36 }
 0x541   : > { %6102 = vmatpush3.msra.mxu0 %v7730_v16  ;;  %6105 = vmatprep.mubr.msk.f32.mxu0 %vm2808_vm1, %v3677_v27 }
 0x542   : > { %6109 = vmatpush3.msra.mxu1 %v7732_v36  ;;  %6112 = vmatprep.mubr.msk.f32.mxu1 %vm2808_vm1, %v3679_v32 }
 0x543   : > { %6103 = vmatprep.subr.mxu0 %v2654_v26  ;;  %6110 = vmatprep.subr.mxu1 %v2655_v54 }
 0x544   : > { %6104 = vmatpush3.msra.mxu0 %v2654_v26  ;;  %6111 = vmatpush3.msra.mxu1 %v2655_v54 }
 0x545   : > { %6106 = vmatmul.mubr.msk.f32.vlgmr.msra.gmra.mxu0 %vm2808_vm1, %v3678_v51  ;;  %6113 = vmatmul.mubr.msk.f32.vlgmr.msra.gmra.mxu1 %vm2808_vm1, %v3680_v12 }
 0x546   : > { %5195 = vmatprep.mubr.f32.mxu1 %v6770_v62 }
 0x5c4   : > { %v6065_v16 = vpop.f32.mrf.mxu0 }
 0x5c6   : > { %v3753_v1 = vpop.f32.mrf.mxu0 }
 0x5c8   : > { %v6079_v36 = vpop.f32.mrf.mxu0 }
 0x5c9   : > { %v4465_v18 = vcombine.low %v6065_v16, %v6079_v36  ;;  %v4466_v22 = vcombine.high %v6065_v16, %v6079_v36 }
 0x5ca   : > { %v3915_v25 = vpop.f32.mrf.mxu0 }
 0x5cb   : > { %v4473_v17 = vrot.slane %v4465_v18, %v7213_v33  ;;  %v4480_v11 = vrot.slane %v4466_v22, %v7213_v33  ;;  %v4329_v29 = vcombine.low %v3753_v1, %v3915_v25  ;;  %v4330_v39 = vcombine.high %v3753_v1, %v3915_v25 }
 0x5cd   : > { %v4337_v56 = vrot.slane %v4329_v29, %v7213_v33  ;;  %v4344_v48 = vrot.slane %v4330_v39, %v7213_v33 }
 0x5de   : > { %v6072_v21 = vpop.f32.mrf.mxu1 }
 0x5e0   : > { %v3834_v3 = vpop.f32.mrf.mxu1 }
 0x5e6   : > { %v6086_v50 = vpop.f32.mrf.mxu1 }
 0x5e7   : > { %v4481_v23 = vcombine.low %v6072_v21, %v6086_v50  ;;  %v4482_v59 = vcombine.high %v6072_v21, %v6086_v50 }
 0x5e8   : > { %v3996_v30 = vpop.f32.mrf.mxu1 }
 0x5e9   : > { %v4489_v20 = vrot.slane %v4481_v23, %v7213_v33  ;;  %v4496_v42 = vrot.slane %v4482_v59, %v7213_v33  ;;  %v4345_v13 = vcombine.low %v3834_v3, %v3996_v30  ;;  %v4346_v46 = vcombine.high %v3834_v3, %v3996_v30 }
 0x5eb   : > { %v4529_v14 = vcombine.low %v4473_v17, %v4489_v20  ;;  %v4530_v47 = vcombine.high %v4473_v17, %v4489_v20  ;;  %v4545_v15 = vcombine.low %v4480_v11, %v4496_v42  ;;  %v4546_v34 = vcombine.high %v4480_v11, %v4496_v42  ;;  %v4963_v17 = vld [vmem:[#allocation11 + $0x78] sm:$0xff]  ;;  %v4962_v11 = vld [vmem:[#allocation11 + $0x70] sm:$0xff] }
 0x5ec   : > { %v4353_v4 = vrot.slane %v4345_v13, %v7213_v33  ;;  %v4360_v7 = vrot.slane %v4346_v46, %v7213_v33  ;;  %6115 = vmatprep.subr.mxu0 %v4963_v17  ;;  %v4961_v13 = vld [vmem:[#allocation11 + $0x68] sm:$0xff] }
 0x5ed   : > { %v4537_v2 = vrot.slane %v4529_v14, %v7218_v40  ;;  %v4544_v45 = vrot.slane %v4530_v47, %v7218_v40  ;;  %v4553_v57 = vrot.slane %v4545_v15, %v7218_v40  ;;  %v4560_v24 = vrot.slane %v4546_v34, %v7218_v40  ;;  %6116 = vmatpush3.msra.mxu0 %v4963_v17 }
 0x5ee   : > { %v4393_v8 = vcombine.low %v4337_v56, %v4353_v4  ;;  %v4394_v31 = vcombine.high %v4337_v56, %v4353_v4  ;;  %v4409_v61 = vcombine.low %v4344_v48, %v4360_v7  ;;  %v4410_v10 = vcombine.high %v4344_v48, %v4360_v7  ;;  %6117 = vmatprep.subr.mxu0 %v4962_v11  ;;  %v4960_v4 = vld [vmem:[#allocation11 + $0x60] sm:$0xff] }
 0x5ef   : > { %v5761_v60 = vcombine.low %v4537_v2, %v4544_v45  ;;  %v5763_v43 = vcombine.high %v4537_v2, %v4544_v45  ;;  %v5765_v55 = vcombine.low %v4553_v57, %v4560_v24  ;;  %v5767_v35 = vcombine.high %v4553_v57, %v4560_v24  ;;  %6118 = vmatpush3.msra.mxu0 %v4962_v11  ;;  %v4959_v2 = vld [vmem:[#allocation11 + $0x58] sm:$0xff] }
 0x5f0   : > { %v4401_v53 = vrot.slane %v4393_v8, %v7218_v40  ;;  %v4408_v0 = vrot.slane %v4394_v31, %v7218_v40  ;;  %v4417_v52 = vrot.slane %v4409_v61, %v7218_v40  ;;  %v4424_v38 = vrot.slane %v4410_v10, %v7218_v40  ;;  %6119 = vmatprep.subr.mxu0 %v4961_v13  ;;  %v4958_v8 = vld [vmem:[#allocation11 + $0x50] sm:$0xff]  ;;  %v4957_v10 = vld [vmem:[#allocation11 + $0x48] sm:$0xff] }
 0x5f1   : > { %v4745_v58 = vrot.slane %v5761_v60, %v7213_v33  ;;  %v4761_v49 = vrot.slane %v5763_v43, %v7213_v33  ;;  %v4777_v44 = vrot.slane %v5765_v55, %v7213_v33  ;;  %v4793_v63 = vrot.slane %v5767_v35, %v7213_v33  ;;  %6120 = vmatpush3.msra.mxu0 %v4961_v13  ;;  %v4956_v60 = vld [vmem:[#allocation11 + $0x40] sm:$0xff]  ;;  %v4955_v35 = vld [vmem:[#allocation11 + $0x38] sm:$0xff] }
 0x5f2   : > { %v5753_v41 = vcombine.low %v4401_v53, %v4408_v0  ;;  %v5755_v19 = vcombine.high %v4401_v53, %v4408_v0  ;;  %v5757_v28 = vcombine.low %v4417_v52, %v4424_v38  ;;  %v5759_v37 = vcombine.high %v4417_v52, %v4424_v38  ;;  %6121 = vmatprep.subr.mxu0 %v4960_v4 }
 0x5f3   : > { %v4802_v27 = vcombine.high %v4745_v58, %v4761_v49  ;;  %v4834_v32 = vcombine.high %v4777_v44, %v4793_v63  ;;  %v4801_v26 = vcombine.low %v4745_v58, %v4761_v49  ;;  %v4833_v54 = vcombine.low %v4777_v44, %v4793_v63  ;;  %6122 = vmatpush3.msra.mxu0 %v4960_v4  ;;  %v4954_v44 = vld [vmem:[#allocation11 + $0x30] sm:$0xff] }
 0x5f4   : > { %v4609_v51 = vrot.slane %v5753_v41, %v7213_v33  ;;  %v4625_v12 = vrot.slane %v5755_v19, %v7213_v33  ;;  %v4641_v16 = vrot.slane %v5757_v28, %v7213_v33  ;;  %v4657_v1 = vrot.slane %v5759_v37, %v7213_v33  ;;  %6123 = vmatprep.subr.mxu0 %v4959_v2 }
 0x5f5   : > { %v4816_v21 = vrot.slane %v4802_v27, %v7218_v40  ;;  %v4848_v36 = vrot.slane %v4834_v32, %v7218_v40  ;;  %v7964_v18 = vrot.slane %v4801_v26, %v7218_v40  ;;  %v7967_v22 = vrot.slane %v4833_v54, %v7218_v40  ;;  %6124 = vmatpush3.msra.mxu0 %v4959_v2  ;;  %v4953_v54 = vld [vmem:[#allocation11 + $0x28] sm:$0xff] }
 0x5f6   : > { %v4666_v3 = vcombine.high %v4609_v51, %v4625_v12  ;;  %v4698_v25 = vcombine.high %v4641_v16, %v4657_v1  ;;  %v4665_v50 = vcombine.low %v4609_v51, %v4625_v12  ;;  %v4697_v23 = vcombine.low %v4641_v16, %v4657_v1  ;;  %6125 = vmatprep.subr.mxu0 %v4958_v8 }
 0x5f7   : > { %v4865_v59 = vcombine.low %v7964_v18, %v7967_v22  ;;  %v4867_v42 = vcombine.low %v4816_v21, %v4848_v36  ;;  %v4866_v47 = vcombine.high %v7964_v18, %v7967_v22  ;;  %v4868_v7 = vcombine.high %v4816_v21, %v4848_v36  ;;  %6126 = vmatpush3.msra.mxu0 %v4958_v8 }
 0x5f8   : > { %v4680_v29 = vrot.slane %v4666_v3, %v7218_v40  ;;  %v4712_v39 = vrot.slane %v4698_v25, %v7218_v40  ;;  %v7974_v30 = vrot.slane %v4665_v50, %v7218_v40  ;;  %v7977_v20 = vrot.slane %v4697_v23, %v7218_v40  ;;  %6127 = vmatprep.subr.mxu0 %v4957_v10  ;;  %v4952_v50 = vld [vmem:[#allocation11 + $0x20] sm:$0xff] }
 0x5f9   : > { %6128 = vmatpush3.msra.mxu0 %v4957_v10 }
 0x5fa   : > { %v4731_v46 = vcombine.low %v4680_v29, %v4712_v39  ;;  %v4730_v14 = vcombine.high %v7974_v30, %v7977_v20  ;;  %v4729_v15 = vcombine.low %v7974_v30, %v7977_v20  ;;  %v4732_v48 = vcombine.high %v4680_v29, %v4712_v39  ;;  %6129 = vmatprep.subr.mxu0 %v4956_v60 }
 0x5fb   : > { %6130 = vmatpush3.msra.mxu0 %v4956_v60 }
 0x5fc   : > { %v6335_v34 = vpack.i.bf16 %v4867_v42, %v4731_v46  ;;  %v6330_v56 = vpack.i.bf16 %v4866_v47, %v4730_v14  ;;  %v6340_v24 = vpack.i.bf16 %v4868_v7, %v4732_v48  ;;  %6131 = vmatprep.subr.mxu0 %v4955_v35 }
 0x5fd   : > { %6132 = vmatpush3.msra.mxu0 %v4955_v35 }
 0x5fe   : > { %6336 = vrot.lane.b32.xlu1 %v6335_v34, %s6777_s14  ;;  %6331 = vrot.lane.b32.xlu0 %v6330_v56, %s6776_s24  ;;  %s8196_s14 = sld [smem:[#allocation36_spill]] }
 0x5ff   : > { %v6093_v45 = vpop.f32.mrf.mxu0  ;;  %v6100_v57 = vpop.f32.mrf.mxu1  ;;  %6133 = vmatprep.subr.mxu0 %v4954_v44 }
 0x600   : > { %6134 = vmatpush3.msra.mxu0 %v4954_v44 }
 0x601   : > { %v4077_v31 = vpop.f32.mrf.mxu0  ;;  %v4158_v61 = vpop.f32.mrf.mxu1  ;;  %6135 = vmatprep.subr.mxu0 %v4953_v54 }
 0x602   : > { %6341 = vrot.lane.b32.xlu0 %v6340_v24, %s6774_s2  ;;  %6136 = vmatpush3.msra.mxu0 %v4953_v54  ;;  %s5782_s2 = sshll.u32 %s6899_s1, 8  ;;  %s6780_s1 = smov [#allocation17]  }
 0x603   : > { %6137 = vmatprep.subr.mxu0 %v4952_v50  ;;  %s6677_s18 = sshll.u32 %s6780_s1, 4  ;;  %s6678_s18 = int_to_ptr.vmem [resolvable:$false] %s6677_s18 }
 0x604   : > { %6138 = vmatpush3.msra.mxu0 %v4952_v50 }
 0x605   : > { %v6107_v43 = vpop.f32.mrf.mxu0  ;;  %v6114_v55 = vpop.f32.mrf.mxu1 }
 0x606   : > { %v4497_v53 = vcombine.low %v6093_v45, %v6107_v43  ;;  %v4498_v0 = vcombine.high %v6093_v45, %v6107_v43  ;;  %v4513_v52 = vcombine.low %v6100_v57, %v6114_v55  ;;  %v4514_v38 = vcombine.high %v6100_v57, %v6114_v55 }
 0x607   : > { %v4239_v58 = vpop.f32.mrf.mxu0  ;;  %v4320_v49 = vpop.f32.mrf.mxu1 }
 0x608   : > { %v4505_v63 = vrot.slane %v4497_v53, %v7213_v33  ;;  %v4512_v41 = vrot.slane %v4498_v0, %v7213_v33  ;;  %v4521_v19 = vrot.slane %v4513_v52, %v7213_v33  ;;  %v4528_v28 = vrot.slane %v4514_v38, %v7213_v33  ;;  %v4951_v38 = vld [vmem:[#allocation11 + $0x18] sm:$0xff] }
 0x609   : > { %v4361_v37 = vcombine.low %v4077_v31, %v4239_v58  ;;  %v4362_v27 = vcombine.high %v4077_v31, %v4239_v58  ;;  %v4377_v32 = vcombine.low %v4158_v61, %v4320_v49  ;;  %v4378_v26 = vcombine.high %v4158_v61, %v4320_v49  ;;  %v4950_v58 = vld [vmem:[#allocation11 + $0x10] sm:$0xff]  ;;  %6139 = vmatprep.subr.mxu0 %v4951_v38 }
 0x60a   : > { %v4561_v51 = vcombine.low %v4505_v63, %v4521_v19  ;;  %v4562_v12 = vcombine.high %v4505_v63, %v4521_v19  ;;  %v4577_v16 = vcombine.low %v4512_v41, %v4528_v28  ;;  %v4578_v1 = vcombine.high %v4512_v41, %v4528_v28  ;;  %6140 = vmatpush3.msra.mxu0 %v4951_v38 }
 0x60b   : > { %v4369_v21 = vrot.slane %v4361_v37, %v7213_v33  ;;  %v4376_v36 = vrot.slane %v4362_v27, %v7213_v33  ;;  %v4385_v3 = vrot.slane %v4377_v32, %v7213_v33  ;;  %v4392_v25 = vrot.slane %v4378_v26, %v7213_v33  ;;  %v4949_v32 = vld [vmem:[#allocation11 + $0x8] sm:$0xff]  ;;  %6141 = vmatprep.subr.mxu0 %v4950_v58 }
 0x60c   : > { %v4569_v23 = vrot.slane %v4561_v51, %v7218_v40  ;;  %v4576_v17 = vrot.slane %v4562_v12, %v7218_v40  ;;  %v4585_v11 = vrot.slane %v4577_v16, %v7218_v40  ;;  %v4592_v29 = vrot.slane %v4578_v1, %v7218_v40  ;;  %6142 = vmatpush3.msra.mxu0 %v4950_v58  ;;  %v4948_v12 = vld [vmem:[#allocation11] sm:$0xff] }
 0x60d   : > { %v4425_v39 = vcombine.low %v4369_v21, %v4385_v3  ;;  %v4426_v42 = vcombine.high %v4369_v21, %v4385_v3  ;;  %v4441_v13 = vcombine.low %v4376_v36, %v4392_v25  ;;  %v4442_v46 = vcombine.high %v4376_v36, %v4392_v25  ;;  %6143 = vmatprep.subr.mxu0 %v4949_v32 }
 0x60e   : > { %v5762_v14 = vcombine.low %v4569_v23, %v4576_v17  ;;  %v5764_v47 = vcombine.high %v4569_v23, %v4576_v17  ;;  %v5766_v34 = vcombine.low %v4585_v11, %v4592_v29  ;;  %v5768_v56 = vcombine.high %v4585_v11, %v4592_v29  ;;  %6144 = vmatpush3.msra.mxu0 %v4949_v32  ;;  %v5118_v32 = vld [vmem:[#allocation13 + $0xf8] sm:$0xff] }
 0x60f   : > { %v4433_v48 = vrot.slane %v4425_v39, %v7218_v40  ;;  %v4440_v4 = vrot.slane %v4426_v42, %v7218_v40  ;;  %v4449_v7 = vrot.slane %v4441_v13, %v7218_v40  ;;  %v4456_v2 = vrot.slane %v4442_v46, %v7218_v40  ;;  %6145 = vmatprep.subr.mxu0 %v4948_v12 }
 0x610   : > { %v4752_v45 = vrot.slane %v5762_v14, %v7213_v33  ;;  %v4768_v57 = vrot.slane %v5764_v47, %v7213_v33  ;;  %v4784_v24 = vrot.slane %v5766_v34, %v7213_v33  ;;  %v4800_v8 = vrot.slane %v5768_v56, %v7213_v33  ;;  %6146 = vmatpush3.msra.mxu0 %v4948_v12  ;;  %v5113_v12 = vld [vmem:[#allocation13 + $0xd0] sm:$0xff] }
 0x611   : > { %v5754_v31 = vcombine.low %v4433_v48, %v4440_v4  ;;  %v5756_v61 = vcombine.high %v4433_v48, %v4440_v4  ;;  %v5758_v10 = vcombine.low %v4449_v7, %v4456_v2  ;;  %v5760_v60 = vcombine.high %v4449_v7, %v4456_v2  ;;  %5131 = vmatprep.subr.mxu1 %v5118_v32  ;;  %v5233_v32 = vld [vmem:[#allocation14 + $0xa8] sm:$0xff] }
 0x612   : > { %v4817_v43 = vcombine.low %v4752_v45, %v4768_v57  ;;  %v4849_v55 = vcombine.low %v4784_v24, %v4800_v8  ;;  %v4818_v63 = vcombine.high %v4752_v45, %v4768_v57  ;;  %v4850_v41 = vcombine.high %v4784_v24, %v4800_v8 }
 0x613   : > { %v4616_v35 = vrot.slane %v5754_v31, %v7213_v33  ;;  %v4632_v53 = vrot.slane %v5756_v61, %v7213_v33  ;;  %v4648_v0 = vrot.slane %v5758_v10, %v7213_v33  ;;  %v4664_v52 = vrot.slane %v5760_v60, %v7213_v33 }
 0x614   : > { %v4825_v49 = vrot.slane %v4817_v43, %v7218_v40  ;;  %v4857_v44 = vrot.slane %v4849_v55, %v7218_v40  ;;  %v4832_v16 = vrot.slane %v4818_v63, %v7218_v40  ;;  %v4864_v1 = vrot.slane %v4850_v41, %v7218_v40  ;;  %v5769_v41 = vld [vmem:[%s8131_s7] ss:$0 sm:$0xff] }
 0x615   : > { %v4681_v19 = vcombine.low %v4616_v35, %v4632_v53  ;;  %v4713_v28 = vcombine.low %v4648_v0, %v4664_v52  ;;  %v4682_v37 = vcombine.high %v4616_v35, %v4632_v53  ;;  %v4714_v27 = vcombine.high %v4648_v0, %v4664_v52 }
 0x616   : > { %v4870_v36 = vcombine.high %v4825_v49, %v4857_v44  ;;  %v4869_v25 = vcombine.low %v4825_v49, %v4857_v44  ;;  %v4872_v29 = vcombine.high %v4832_v16, %v4864_v1  ;;  %v4871_v39 = vcombine.low %v4832_v16, %v4864_v1 }
 0x617   : > { %v4689_v26 = vrot.slane %v4681_v19, %v7218_v40  ;;  %v4721_v33 = vrot.slane %v4713_v28, %v7218_v40  ;;  %v4696_v54 = vrot.slane %v4682_v37, %v7218_v40  ;;  %v4728_v51 = vrot.slane %v4714_v27, %v7218_v40 }
 0x619   : > { %v4734_v21 = vcombine.high %v4689_v26, %v4721_v33  ;;  %v4733_v3 = vcombine.low %v4689_v26, %v4721_v33  ;;  %v4736_v17 = vcombine.high %v4696_v54, %v4728_v51  ;;  %v4735_v11 = vcombine.low %v4696_v54, %v4728_v51  ;;  %v5117_v26 = vld [vmem:[#allocation13 + $0xf0] sm:$0xff]  ;;  %v5116_v33 = vld [vmem:[#allocation13 + $0xe8] sm:$0xff]  ;;  %v5115_v54 = vld [vmem:[#allocation13 + $0xe0] sm:$0xff] }
 0x61a   : > { %5132 = vmatpush1.msra.mxu1 %v5117_v26  ;;  %v5114_v51 = vld [vmem:[#allocation13 + $0xd8] sm:$0xff]  ;;  %v5217_v26 = vld [vmem:[#allocation14 + $0x28] sm:$0xff] }
 0x61b   : > { %v6350_v50 = vpack.i.bf16 %v4870_v36, %v4734_v21  ;;  %v6345_v23 = vpack.i.bf16 %v4869_v25, %v4733_v3  ;;  %v6360_v42 = vpack.i.bf16 %v4872_v29, %v4736_v17  ;;  %v6355_v40 = vpack.i.bf16 %v4871_v39, %v4735_v11  ;;  %5133 = vmatprep.subr.mxu1 %v5116_v33  ;;  %v5112_v17 = vld [vmem:[#allocation13 + $0xc8] sm:$0xff]  ;;  %v5111_v11 = vld [vmem:[#allocation13 + $0xc0] sm:$0xff]  ;;  %v5110_v29 = vld [vmem:[#allocation13 + $0xb8] sm:$0xff] }
 0x61c   : > { %5134 = vmatpush1.msra.mxu1 %v5115_v54  ;;  %v5109_v39 = vld [vmem:[#allocation13 + $0xb0] sm:$0xff]  ;;  %v5232_v33 = vld [vmem:[#allocation14 + $0xa0] sm:$0xff] }
 0x61d   : > { %6351 = vrot.lane.b32.xlu0 %v6350_v50, %s6773_s19  ;;  %6346 = vrot.lane.b32.xlu1 %v6345_v23, %s6775_s17  ;;  %v5216_v54 = vld [vmem:[#allocation14 + $0x20] sm:$0xff]  ;;  %s8192_s17 = sld [smem:[#allocation32_spill]] }
 0x61e   : > { %5135 = vmatprep.subr.mxu1 %v5114_v51 }
 0x61f   : > { %5136 = vmatpush1.msra.mxu1 %v5113_v12 }
 0x620   : > { %5137 = vmatprep.subr.mxu1 %v5112_v17 }
 0x621   : > { %6361 = vrot.lane.b32.xlu0 %v6360_v42, %s6772_s21  ;;  %6356 = vrot.lane.b32.xlu1 %v6355_v40, %s6771_s20  ;;  %v5108_v42 = vld [vmem:[#allocation13 + $0xa8] sm:$0xff]  ;;  %v5107_v40 = vld [vmem:[#allocation13 + $0xa0] sm:$0xff]  ;;  %s8195_s20 = sld [smem:[#allocation35_spill]]  ;;  %s707_s21 = scalar_lea.vmem [#allocation17], %s5644_s12 }
 0x622   : > { %5138 = vmatpush1.msra.mxu1 %v5111_v11  ;;  %s5480_s19 = sshll.u32 %s707_s21, 4  ;;  %s8076_s19 = int_to_ptr.vmem [resolvable:$true] %s5480_s19 }
 0x623   : > { %5139 = vmatprep.subr.mxu1 %v5110_v29  ;;  %v5770_v29 = vld [vmem:[%s8132_s8] ss:$0 sm:$0xff]  ;;  %s6673_s12 = scalar_lea.vmem %s8076_s19, 256  ;;  %p6680_p1 = scmp.lt.s32.totalorder %s8076_s19, %s6678_s18 }
 0x624   : > { %5140 = vmatpush1.msra.mxu1 %v5109_v39  ;;  %v5772_v5 = vld [vmem:[%s8192_s17] ss:$0 sm:$0xff]  ;;  %p6674_p2 = scmp.ne.s32.totalorder %s8076_s19, %s6673_s12 }
 0x625   : > { %5141 = vmatprep.subr.mxu1 %v5108_v42  ;;  %v5771_v42 = vld [vmem:[%s8133_s9] ss:$0 sm:$0xff] }
 0x626   : > { %5142 = vmatpush1.msra.mxu1 %v5107_v40  ;;  %p6675_p10 = pnand %p6674_p2, %p8197_p5 }
 0x628   : > { %p6676_p12 = pneg %p6675_p10 }
 0x670   : > { %v6332_v13 = vpop.permute.xlu0 %6331  ;;  %v6337_v46 = vpop.permute.xlu1 %6336 }
 0x671   : > { %v6334_v14 = vunpack.i.h.bf16 %v6332_v13  ;;  %v6333_v47 = vunpack.i.l.bf16 %v6332_v13  ;;  %v6339_v56 = vunpack.i.h.bf16 %v6337_v46  ;;  %v6338_v48 = vunpack.i.l.bf16 %v6337_v46  ;;  %v5106_v13 = vld [vmem:[#allocation13 + $0x98] sm:$0xff]  ;;  %v5105_v46 = vld [vmem:[#allocation13 + $0x90] sm:$0xff] }
 0x672   : > { %5143 = vmatprep.subr.mxu1 %v5106_v13 }
 0x673   : > { %v4930_v4 = vsel %vm2808_vm1, %v4865_v59, %v6334_v14  ;;  %v4929_v7 = vsel %vm2808_vm1, %v4729_v15, %v6333_v47  ;;  %v5104_v14 = vld [vmem:[#allocation13 + $0x88] sm:$0xff]  ;;  %v5103_v47 = vld [vmem:[#allocation13 + $0x80] sm:$0xff]  ;;  %5144 = vmatpush1.msra.mxu1 %v5105_v46 }
 0x674   : > { %v6342_v34 = vpop.permute.xlu0 %6341  ;;  %v4932_v8 = vsel %vm4931_vm2, %v4929_v7, %v6338_v48  ;;  %v4933_v31 = vsel %vm4931_vm2, %v4930_v4, %v6339_v56  ;;  %5145 = vmatprep.subr.mxu1 %v5104_v14  ;;  %v5101_v56 = vld [vmem:[#allocation13 + $0x70] sm:$0xff]  ;;  %v5100_v48 = vld [vmem:[#allocation13 + $0x68] sm:$0xff]  ;;  %v5099_v4 = vld [vmem:[#allocation13 + $0x60] sm:$0xff] }
 0x675   : > { %v6344_v2 = vunpack.i.h.bf16 %v6342_v34  ;;  %v6343_v45 = vunpack.i.l.bf16 %v6342_v34  ;;  %v5102_v34 = vld [vmem:[#allocation13 + $0x78] sm:$0xff]  ;;  %5146 = vmatpush1.msra.mxu1 %v5103_v47  ;;  %v5214_v47 = vld [vmem:[#allocation14 + $0x10] sm:$0xff] }
 0x676   : > { %5147 = vmatprep.subr.mxu1 %v5102_v34  ;;  %v5098_v7 = vld [vmem:[#allocation13 + $0x58] sm:$0xff]  ;;  %v5229_v34 = vld [vmem:[#allocation14 + $0x88] sm:$0xff] }
 0x677   : > { %v4935_v60 = vsel %vm4934_vm3, %v4932_v8, %v6343_v45  ;;  %v4936_v43 = vsel %vm4934_vm3, %v4933_v31, %v6344_v2  ;;  %5148 = vmatpush1.msra.mxu1 %v5101_v56  ;;  %v5097_v2 = vld [vmem:[#allocation13 + $0x50] sm:$0xff]  ;;  %v5096_v45 = vld [vmem:[#allocation13 + $0x48] sm:$0xff]  ;;  %v5231_v14 = vld [vmem:[#allocation14 + $0x98] sm:$0xff] }
 0x678   : > { %5149 = vmatprep.subr.mxu1 %v5100_v48  ;;  %v5093_v8 = vld [vmem:[#allocation13 + $0x30] sm:$0xff]  ;;  %v5092_v31 = vld [vmem:[#allocation13 + $0x28] sm:$0xff]  ;;  %v5228_v48 = vld [vmem:[#allocation14 + $0x80] sm:$0xff] }
 0x679   : > { %5150 = vmatpush1.msra.mxu1 %v5099_v4  ;;  %v5213_v56 = vld [vmem:[#allocation14 + $0x8] sm:$0xff]  ;;  %v5212_v4 = vld [vmem:[#allocation14] sm:$0xff] }
 0x67a   : > { %5151 = vmatprep.subr.mxu1 %v5098_v7 }
 0x67b   : > { %5152 = vmatpush1.msra.mxu1 %v5097_v2 }
 0x67c   : > { %5153 = vmatprep.subr.mxu1 %v5096_v45 }
 0x68f   : > { %v6347_v57 = vpop.permute.xlu1 %6346  ;;  %v6352_v24 = vpop.permute.xlu0 %6351 }
 0x690   : > { %v6349_v61 = vunpack.i.h.bf16 %v6347_v57  ;;  %v6348_v10 = vunpack.i.l.bf16 %v6347_v57  ;;  %v6354_v55 = vunpack.i.h.bf16 %v6352_v24  ;;  %v6353_v18 = vunpack.i.l.bf16 %v6352_v24  ;;  %v5095_v57 = vld [vmem:[#allocation13 + $0x40] sm:$0xff]  ;;  %v5094_v24 = vld [vmem:[#allocation13 + $0x38] sm:$0xff] }
 0x691   : > { %5154 = vmatpush1.msra.mxu1 %v5095_v57 }
 0x692   : > { %v4937_v22 = vsel %vm729_vm0, %v4935_v60, %v6348_v10  ;;  %v4938_v59 = vsel %vm729_vm0, %v4936_v43, %v6349_v61  ;;  %5155 = vmatprep.subr.mxu1 %v5094_v24  ;;  %v5091_v61 = vld [vmem:[#allocation13 + $0x20] sm:$0xff]  ;;  %v5090_v10 = vld [vmem:[#allocation13 + $0x18] sm:$0xff]  ;;  %v5089_v60 = vld [vmem:[#allocation13 + $0x10] sm:$0xff] }
 0x693   : > { %v6357_v30 = vpop.permute.xlu1 %6356  ;;  %v6362_v20 = vpop.permute.xlu0 %6361  ;;  %v4941_v52 = vsel %vm4939_vm4, %v4938_v59, %v6354_v55  ;;  %v4940_v38 = vsel %vm4939_vm4, %v4937_v22, %v6353_v18  ;;  %5156 = vmatpush1.msra.mxu1 %v5093_v8  ;;  %v5088_v43 = vld [vmem:[#allocation13 + $0x8] sm:$0xff]  ;;  %v5087_v55 = vld [vmem:[#allocation13] sm:$0xff]  ;;  %v5243_v18 = vld [vmem:[#allocation14 + $0xf8] sm:$0xff] }
 0x694   : > { %v6359_v15 = vunpack.i.h.bf16 %v6357_v30  ;;  %v6358_v35 = vunpack.i.l.bf16 %v6357_v30  ;;  %v6364_v53 = vunpack.i.h.bf16 %v6362_v20  ;;  %v6363_v0 = vunpack.i.l.bf16 %v6362_v20  ;;  %5157 = vmatprep.subr.mxu1 %v5092_v31  ;;  %v5227_v22 = vld [vmem:[#allocation14 + $0x78] sm:$0xff]  ;;  %v5242_v59 = vld [vmem:[#allocation14 + $0xf0] sm:$0xff]  ;;  %5893 = vmatprep.subr.mxu0 %v5243_v18  ;;  %v5241_v20 = vld [vmem:[#allocation14 + $0xe8] sm:$0xff] }
 0x695   : > { %5158 = vmatpush1.msra.mxu1 %v5091_v61  ;;  %v5226_v30 = vld [vmem:[#allocation14 + $0x70] sm:$0xff] }
 0x696   : > { %v4943_v58 = vsel %vm4942_vm5, %v4940_v38, %v6358_v35  ;;  %v4944_v49 = vsel %vm4942_vm5, %v4941_v52, %v6359_v15  ;;  %5159 = vmatprep.subr.mxu1 %v5090_v10  ;;  %v5225_v15 = vld [vmem:[#allocation14 + $0x68] sm:$0xff]  ;;  %v5240_v35 = vld [vmem:[#allocation14 + $0xe0] sm:$0xff]  ;;  %v5223_v52 = vld [vmem:[#allocation14 + $0x58] sm:$0xff] }
 0x697   : > { %v4946_v44 = vsel %vm4945_vm6, %v4943_v58, %v6363_v0  ;;  %v4947_v63 = vsel %vm4945_vm6, %v4944_v49, %v6364_v53  ;;  %5160 = vmatpush1.msra.mxu1 %v5089_v60  ;;  %v5224_v53 = vld [vmem:[#allocation14 + $0x60] sm:$0xff]  ;;  %v5239_v0 = vld [vmem:[#allocation14 + $0xd8] sm:$0xff]  ;;  %v5238_v38 = vld [vmem:[#allocation14 + $0xd0] sm:$0xff] }
 0x698   : > { %6147 = vmatprep.mubr.f32.mxu0 %v4946_v44  ;;  %5161 = vmatprep.subr.mxu1 %v5088_v43  ;;  %v5222_v58 = vld [vmem:[#allocation14 + $0x50] sm:$0xff]  ;;  %v5237_v49 = vld [vmem:[#allocation14 + $0xc8] sm:$0xff] }
 0x699   : > { %6148 = vmatmul.mubr.f32.vlgmr.msra.gmra.mxu0 %v4947_v63  ;;  %5162 = vmatpush1.msra.mxu1 %v5087_v55  ;;  %v5221_v44 = vld [vmem:[#allocation14 + $0x48] sm:$0xff]  ;;  %v5236_v63 = vld [vmem:[#allocation14 + $0xc0] sm:$0xff] }
 0x69a   : > { %5894 = vmatpush3.msra.mxu0 %v5227_v22 }
 0x69b   : > { %5895 = vmatprep.subr.mxu0 %v5242_v59 }
 0x69c   : > { %5896 = vmatpush3.msra.mxu0 %v5226_v30 }
 0x69d   : > { %5897 = vmatprep.subr.mxu0 %v5241_v20 }
 0x69e   : > { %5898 = vmatpush3.msra.mxu0 %v5225_v15 }
 0x69f   : > { %5899 = vmatprep.subr.mxu0 %v5240_v35 }
 0x6a0   : > { %5900 = vmatpush3.msra.mxu0 %v5224_v53 }
 0x6a1   : > { %5901 = vmatprep.subr.mxu0 %v5239_v0  ;;  %v5381_v0 = vld [vmem:[#allocation16 + $0x78] sm:$0xff] }
 0x6a2   : > { %5902 = vmatpush3.msra.mxu0 %v5223_v52  ;;  %v5380_v52 = vld [vmem:[#allocation16 + $0x70] sm:$0xff]  ;;  %6150 = vmatprep.subr.mxu1 %v5381_v0 }
 0x6a3   : > { %5903 = vmatprep.subr.mxu0 %v5238_v38 }
 0x6a4   : > { %5904 = vmatpush3.msra.mxu0 %v5222_v58 }
 0x6a5   : > { %5905 = vmatprep.subr.mxu0 %v5237_v49 }
 0x6a6   : > { %5906 = vmatpush3.msra.mxu0 %v5221_v44 }
 0x6a7   : > { %5907 = vmatprep.subr.mxu0 %v5236_v63 }
 0x759   : > { %v6149_v19 = vpop.f32.mrf.mxu0 }
 0x75a   : > { %v5043_v28 = vadd.f32 %v6149_v19, %v5769_v41  ;;  %v5235_v19 = vld [vmem:[#allocation14 + $0xb8] sm:$0xff] }
 0x75b   : > { %v5037_v37 = vpop.f32.mrf.mxu0 }
 0x75c   : > { %v5038_v27 = vadd.f32 %v5769_v41, %v5037_v37  ;;  %5050 = vadd.xlane.f32.xlu0 %v5043_v28  ;;  %v5220_v41 = vld [vmem:[#allocation14 + $0x40] sm:$0xff]  ;;  %v5234_v37 = vld [vmem:[#allocation14 + $0xb0] sm:$0xff] }
 0x75d   : > { %5908 = vmatpush3.msra.mxu0 %v5220_v41 }
 0x75e   : > { %5048 = vadd.xlane.f32.xlu1 %v5038_v27  ;;  %5909 = vmatprep.subr.mxu0 %v5235_v19 }
 0x7e5   : > { %v5051_v16 = vpop.xlane.xlu0 %5050 }
 0x7e6   : > { %v5054_v1 = vmul.f32 0.0078125, %v5051_v16 }
 0x7e7   : > { %v5049_v21 = vpop.xlane.xlu1 %5048 }
 0x7e8   : > { %v8037_v36 = vsub.f32 %v5043_v28, %v5054_v1  ;;  %v5053_v3 = vmul.f32 0.0078125, %v5049_v21  ;;  %v5219_v28 = vld [vmem:[#allocation14 + $0x38] sm:$0xff] }
 0x7e9   : > { %5910 = vmatpush3.msra.mxu0 %v5219_v28 }
 0x7ea   : > { %v8039_v25 = vsub.f32 %v5038_v27, %v5053_v3  ;;  %v5058_v50 = vmul.f32 %v8037_v36, %v8037_v36  ;;  %v5218_v27 = vld [vmem:[#allocation14 + $0x30] sm:$0xff]  ;;  %5911 = vmatprep.subr.mxu0 %v5234_v37  ;;  %v5379_v37 = vld [vmem:[#allocation16 + $0x68] sm:$0xff] }
 0x7eb   : > { %5912 = vmatpush3.msra.mxu0 %v5218_v27  ;;  %v5378_v27 = vld [vmem:[#allocation16 + $0x60] sm:$0xff] }
 0x7ec   : > { %5061 = vadd.xlane.f32.xlu1 %v5058_v50  ;;  %v5057_v23 = vmul.f32 %v8039_v25, %v8039_v25  ;;  %5913 = vmatprep.subr.mxu0 %v5233_v32  ;;  %v5377_v32 = vld [vmem:[#allocation16 + $0x58] sm:$0xff] }
 0x7ed   : > { %5914 = vmatpush3.msra.mxu0 %v5217_v26  ;;  %v5376_v26 = vld [vmem:[#allocation16 + $0x50] sm:$0xff] }
 0x7ee   : > { %5059 = vadd.xlane.f32.xlu0 %v5057_v23  ;;  %5915 = vmatprep.subr.mxu0 %v5232_v33  ;;  %v5375_v33 = vld [vmem:[#allocation16 + $0x48] sm:$0xff] }
 0x7ef   : > { %5916 = vmatpush3.msra.mxu0 %v5216_v54  ;;  %v5374_v54 = vld [vmem:[#allocation16 + $0x40] sm:$0xff] }
 0x7f0   : > { %5917 = vmatprep.subr.mxu0 %v5231_v14 }
 0x875   : > { %v5062_v51 = vpop.xlane.xlu1 %5061 }
 0x876   : > { %v5064_v12 = vmul.f32 0.0078125, %v5062_v51  ;;  %v5373_v51 = vld [vmem:[#allocation16 + $0x38] sm:$0xff] }
 0x877   : > { %v5060_v16 = vpop.xlane.xlu0 %5059 }
 0x878   : > { %v5066_v1 = vadd.f32 1e-05, %v5064_v12  ;;  %v5063_v21 = vmul.f32 0.0078125, %v5060_v16  ;;  %v5372_v12 = vld [vmem:[#allocation16 + $0x30] sm:$0xff]  ;;  %v5371_v16 = vld [vmem:[#allocation16 + $0x28] sm:$0xff] }
 0x87a   : > { %6429 = vrsqrt.f32 %v5066_v1  ;;  %v5065_v3 = vadd.f32 1e-05, %v5063_v21  ;;  %v5370_v1 = vld [vmem:[#allocation16 + $0x20] sm:$0xff]  ;;  %v5369_v21 = vld [vmem:[#allocation16 + $0x18] sm:$0xff] }
 0x87c   : > { %6431 = vrsqrt.f32 %v5065_v3  ;;  %v5368_v3 = vld [vmem:[#allocation16 + $0x10] sm:$0xff] }
 0x887   : > { %v6430_v50 = vpop.eup %6429 }
 0x888   : > { %v5070_v11 = vmul.f32 %v6430_v50, %v8037_v36  ;;  %v5230_v36 = vld [vmem:[#allocation14 + $0x90] sm:$0xff]  ;;  %v5367_v50 = vld [vmem:[#allocation16 + $0x8] sm:$0xff] }
 0x889   : > { %v6432_v23 = vpop.eup %6431 }
 0x88a   : > { %v5069_v17 = vmul.f32 %v6432_v23, %v8039_v25  ;;  %v5078_v13 = vmul.f32 %v5770_v29, %v5070_v11  ;;  %v5215_v25 = vld [vmem:[#allocation14 + $0x18] sm:$0xff]  ;;  %v5366_v23 = vld [vmem:[#allocation16] sm:$0xff] }
 0x88b   : > { %5918 = vmatpush3.msra.mxu0 %v5215_v25  ;;  %v5774_v25 = vld [vmem:[%s8194_s4] ss:$0 sm:$0xff]  ;;  %s6679_s4 = scalar_lea.vmem %s6678_s18, 512 }
 0x88c   : > { %v5077_v39 = vmul.f32 %v5770_v29, %v5069_v17  ;;  %v5086_v46 = vadd.f32 %v5771_v42, %v5078_v13  ;;  %5919 = vmatprep.subr.mxu0 %v5230_v36  ;;  %p6681_p3 = scmp.lt.s32.totalorder %s6679_s4, %s6673_s12 }
 0x88d   : > { %5920 = vmatpush3.msra.mxu0 %v5214_v47 }
 0x88e   : > { %v5085_v40 = vadd.f32 %v5771_v42, %v5077_v39  ;;  %5921 = vmatprep.subr.mxu0 %v5229_v34  ;;  %p6682_p4 = por %p6681_p3, %p6680_p1 }
 0x88f   : > { %5922 = vmatpush3.msra.mxu0 %v5213_v56 }
 0x890   : > { %5196 = vmatmul.mubr.f32.vlgmr.msra.gmra.mxu1 %v5085_v40  ;;  %5923 = vmatprep.subr.mxu0 %v5228_v48  ;;  %p6683_p6 = pnand %p6682_p4, %p6676_p12 }
 0x891   : > { %5201 = vmatprep.mubr.f32.mxu1 %v6770_v62  ;;  %5924 = vmatpush3.msra.mxu0 %v5212_v4  ;;  %v5119_v62 = vld [vmem:[%s8135_s11] sm:$0x3] }
 0x892   : > { %v5124_v7 = vrot.slane %v5119_v62, %v863_v6  ;;  %v5128_v2 = vrot.slane %v5119_v62, %v867_v9  ;;  %6151 = vmatpush3.msra.mxu1 %v5381_v0  ;;  %v5775_v62 = vld [vmem:[%s8195_s20] ss:$0 sm:$0xff] }
 0x893   : > { %6152 = vmatprep.subr.mxu1 %v5380_v52 }
 0x894   : > { %5202 = vmatmul.mubr.f32.gmra.mxu1 %v5086_v46  ;;  %v5773_v46 = vld [vmem:[%s8193_s10] ss:$0 sm:$0xff]  ;;  %s8081_s10 = scalar_lea.hbm %s8196_s14, %s5782_s2 }
 0x895   : > { %6153 = vmatpush3.msra.mxu1 %v5380_v52 }
 0x896   : > { %6154 = vmatprep.subr.mxu1 %v5379_v37 }
 0x897   : > { %6155 = vmatpush3.msra.mxu1 %v5379_v37 }
 0x898   : > { %6156 = vmatprep.subr.mxu1 %v5378_v27 }
 0x899   : > { %6157 = vmatpush3.msra.mxu1 %v5378_v27 }
 0x89a   : > { %6158 = vmatprep.subr.mxu1 %v5377_v32 }
 0x89b   : > { %6159 = vmatpush3.msra.mxu1 %v5377_v32 }
 0x89c   : > { %6160 = vmatprep.subr.mxu1 %v5376_v26 }
 0x89d   : > { %6161 = vmatpush3.msra.mxu1 %v5376_v26 }
 0x89e   : > { %6162 = vmatprep.subr.mxu1 %v5375_v33 }
 0x89f   : > { %6163 = vmatpush3.msra.mxu1 %v5375_v33 }
 0x8a0   : > { %6164 = vmatprep.subr.mxu1 %v5374_v54 }
 0x8a1   : > { %6165 = vmatpush3.msra.mxu1 %v5374_v54 }
 0x8a2   : > { %6166 = vmatprep.subr.mxu1 %v5373_v51 }
 0x8a3   : > { %6167 = vmatpush3.msra.mxu1 %v5373_v51 }
 0x8a4   : > { %6168 = vmatprep.subr.mxu1 %v5372_v12 }
 0x8a5   : > { %6169 = vmatpush3.msra.mxu1 %v5372_v12 }
 0x8a6   : > { %6170 = vmatprep.subr.mxu1 %v5371_v16 }
 0x8a7   : > { %6171 = vmatpush3.msra.mxu1 %v5371_v16 }
 0x8a8   : > { %6172 = vmatprep.subr.mxu1 %v5370_v1 }
 0x8a9   : > { %6173 = vmatpush3.msra.mxu1 %v5370_v1 }
 0x8aa   : > { %6174 = vmatprep.subr.mxu1 %v5369_v21 }
 0x8ab   : > { %6175 = vmatpush3.msra.mxu1 %v5369_v21 }
 0x8ac   : > { %6176 = vmatprep.subr.mxu1 %v5368_v3 }
 0x8ad   : > { %6177 = vmatpush3.msra.mxu1 %v5368_v3 }
 0x8ae   : > { %6178 = vmatprep.subr.mxu1 %v5367_v50 }
 0x8af   : > { %6179 = vmatpush3.msra.mxu1 %v5367_v50 }
 0x8b0   : > { %6180 = vmatprep.subr.mxu1 %v5366_v23 }
 0x8b1   : > { %6181 = vmatpush3.msra.mxu1 %v5366_v23 }
 0x950   : > { %v5197_v45 = vpop.f32.mrf.mxu1 }
 0x951   : > { %v5198_v57 = vadd.f32 %v5197_v45, %v5124_v7 }
 0x952   : > { %v5199_v24 = vpop.f32.mrf.mxu1 }
 0x953   : > { %v5200_v8 = vadd.f32 %v5199_v24, %v5128_v2  ;;  %v5208_v10 = vmax.f32 %v5198_v57, 0.0 }
 0x954   : > { %v5203_v31 = vpop.f32.mrf.mxu1 }
 0x955   : > { %v5209_v61 = vmax.f32 %v5200_v8, 0.0  ;;  %v5204_v60 = vadd.f32 %v5203_v31, %v5124_v7 }
 0x956   : > { %v5205_v43 = vpop.f32.mrf.mxu1 }
 0x957   : > { %v5206_v55 = vadd.f32 %v5205_v43, %v5128_v2  ;;  %5315 = vmatprep.mubr.f32.mxu0 %v5209_v61  ;;  %v5210_v22 = vmax.f32 %v5204_v60, 0.0 }
 0x958   : > { %5316 = vmatmul.mubr.f32.vlgmr.msra.gmra.mxu0 %v5208_v10 }
 0x959   : > { %v5211_v18 = vmax.f32 %v5206_v55, 0.0 }
 0x95b   : > { %5320 = vmatprep.mubr.f32.mxu0 %v5211_v18 }
 0x95c   : > { %5321 = vmatmul.mubr.f32.gmra.mxu0 %v5210_v22 }
 0xa18   : > { %v5925_v6 = vpop.f32.mrf.mxu0 }
 0xa1a   : > { %v5926_v59 = vpop.f32.mrf.mxu0 }
 0xa1b   : > { %v5927_v9 = vadd.f32 %v5926_v59, %v5925_v6 }
 0xa1c   : > { %v5928_v30 = vpop.f32.mrf.mxu0 }
 0xa1d   : > { %v5318_v20 = vadd.f32 %v5927_v9, %v5772_v5 }
 0xa1e   : > { %v5929_v15 = vpop.f32.mrf.mxu0 }
 0xa1f   : > { %v5930_v35 = vadd.f32 %v5929_v15, %v5928_v30  ;;  %5328 = vadd.xlane.f32.xlu0 %v5318_v20 }
 0xa21   : > { %v5323_v53 = vadd.f32 %v5930_v35, %v5772_v5 }
 0xa23   : > { %5330 = vadd.xlane.f32.xlu1 %v5323_v53 }
 0xaa8   : > { %v5329_v38 = vpop.xlane.xlu0 %5328 }
 0xaa9   : > { %v5332_v58 = vmul.f32 0.0078125, %v5329_v38 }
 0xaab   : > { %v5334_v49 = vsub.f32 %v5318_v20, %v5332_v58 }
 0xaac   : > { %v5331_v44 = vpop.xlane.xlu1 %5330 }
 0xaad   : > { %v5333_v63 = vmul.f32 0.0078125, %v5331_v44  ;;  %v5336_v41 = vmul.f32 %v5334_v49, %v5334_v49 }
 0xaaf   : > { %v5335_v19 = vsub.f32 %v5323_v53, %v5333_v63  ;;  %5338 = vadd.xlane.f32.xlu0 %v5336_v41 }
 0xab1   : > { %v5337_v28 = vmul.f32 %v5335_v19, %v5335_v19 }
 0xab3   : > { %5340 = vadd.xlane.f32.xlu1 %v5337_v28 }
 0xb38   : > { %v5339_v17 = vpop.xlane.xlu0 %5338 }
 0xb39   : > { %v5342_v11 = vmul.f32 0.0078125, %v5339_v17 }
 0xb3b   : > { %v5344_v29 = vadd.f32 1e-05, %v5342_v11 }
 0xb3c   : > { %v5341_v39 = vpop.xlane.xlu1 %5340 }
 0xb3d   : > { %6433 = vrsqrt.f32 %v5344_v29  ;;  %v5343_v42 = vmul.f32 0.0078125, %v5341_v39 }
 0xb3f   : > { %v5345_v40 = vadd.f32 1e-05, %v5343_v42 }
 0xb41   : > { %6435 = vrsqrt.f32 %v5345_v40 }
 0xb4a   : > { %v6434_v13 = vpop.eup %6433 }
 0xb4b   : > { %v5348_v14 = vmul.f32 %v6434_v13, %v5334_v49 }
 0xb4d   : > { %v5356_v36 = vmul.f32 %v5773_v46, %v5348_v14 }
 0xb4e   : > { %v6436_v47 = vpop.eup %6435 }
 0xb4f   : > { %v5349_v34 = vmul.f32 %v6436_v47, %v5335_v19  ;;  %v5364_v56 = vadd.f32 %v5774_v25, %v5356_v36 }
 0xb51   : > { %v5357_v48 = vmul.f32 %v5773_v46, %v5349_v34  ;;  %6182 = vmatprep.mubr.f32.mxu1 %v5364_v56 }
 0xb53   : > { %v5365_v4 = vadd.f32 %v5774_v25, %v5357_v48 }
 0xb55   : > { %6183 = vmatmul.mubr.f32.vlgmr.msra.gmra.mxu1 %v5365_v4 }
 0xc15   : > { %v6184_v7 = vpop.f32.mrf.mxu1 }
 0xc16   : > { %v5461_v2 = vadd.f32 %v6184_v7, %v5775_v62 }
 0xc17   : > { %v5455_v45 = vpop.f32.mrf.mxu1 }
 0xc18   : > { %5465 = vst [vmem:[%s707_s21 + $0x8] sm:$0xff] %v5461_v2  ;;  %v5456_v57 = vadd.f32 %v5775_v62, %v5455_v45 }
 0xc1a   : > { %5464 = vst [vmem:[%s707_s21] sm:$0xff] %v5456_v57 }
 0xc1b   : > { %6686 = shalt.err (!%p6683_p6)
}
 0xc1c   : > { %s6687_s3 = scalar_lea.hbm %s8081_s10, 256  ;;  %s6691_s21 = scalar_lea.hbm %s8196_s14, 512 }
 0xc1d   : > { %p6688_p9 = scmp.ne.s32.totalorder %s8081_s10, %s6687_s3  ;;  %p6692_p11 = scmp.lt.s32.totalorder %s8081_s10, %s8196_s14 }
 0xc1e   : > { %p6693_p13 = scmp.lt.s32.totalorder %s6691_s21, %s6687_s3 }
 0xc1f   : > { %p6689_p8 = pnand %p6688_p9, %p8197_p5 }
 0xc20   : > { %p6694_p0 = por %p6693_p13, %p6692_p11 }
 0xc21   : > { %p6690_p7 = pneg %p6689_p8 }
 0xc23   : > { %p6695_p2 = pnand %p6694_p0, %p6690_p7 }
 0xc25   : > { %6698 = shalt.err (!%p6695_p2)
}
 0xc26   : > { %s6781_s24 = smov 128   ;;  %s6782_s12 = smov 8  }
 0xc27   : > { %6219 = dma.vmem_to_hbm [thread:$0]  (%p8197_p5), %s8076_s19, 256, %s8081_s10, %s5467_s15, %s6781_s24, %s6781_s24, %s6782_s12  }
 0xc28 PF: > { %s5495_s1 = sand.u32 1, %s6741_s27   ;;  %p8198_p10 = scmp.ne.s32.totalorder %s8177_s22, 0 }
 0xc29   : > { %p8199_p12 = scmp.ge.s32.totalorder %s6753_s30, 2  ;;  %s5496_s18 = scalar_lea.sflag [#allocation4], %s5495_s1 }
 0xc2b   : > { %p6251_p1 = pnand %p8199_p12, %p8198_p10 }
 0xc2d   : > { %p6252_p3 = pneg %p6251_p1 }
 0xc2f   : > { %6736 = dma.done.wait (%p6252_p3), %s5496_s18, 256  }
 0xc30   : > { %6738 = vsyncadd (%p6252_p3), %s5496_s18, 4294967040  ;;  %p35_p4 = scmp.ge.s32.totalorder %s7003_s25, 4   ;;  %s8200_s27 = smov %s6745_s28 }
 0xc31   : > { %s8201_s28 = smov %s6749_s29  ;;  %s8202_s29 = smov %s7014_s23 }
 0xc32   : > { %s8203_s30 = smov %s7003_s25  ;;  %37 = sbr.rel (!%p35_p4) target bundleno = 23 (0x17), region = 169 }
 0xc37   :  { %5501 = vsyncpa [#allocation3], 1 }
 0xc38   :  { %5503 = vsyncpa [#allocation3 + $0x1], 1 }
 0xc39   :  { %5504 = vsyncpa [#allocation6], 1 }
 0xc3a   :  { %5505 = vsyncpa [#allocation9], 1 }
 0xc3b   :  { %5506 = vsyncpa [#allocation12], 1 }
 0xc3c   :  { %5507 = vsyncpa [#allocation15], 1 }
 0xc3d   :  { %5508 = vsyncpa [#allocation4], 1 }
 0xc3e   :  { %5510 = vsyncpa [#allocation4 + $0x1], 1 }

</bundles_post_ra>
